<compile_context>
chip_gen: v6e
topology: v6e:2x2x1
jax: 0.10.0
libtpu: 0.0.40
codegen_flags: <defaults>
</compile_context>

<pallas_src>
import jax
import jax.numpy as jnp
from jax.experimental import pallas as pl
from jax.experimental.pallas import tpu as pltpu

K_IN = 30720     # fc1 input features
H = 128          # fc1 output / fc2 input features
N_OUT = 11       # fc2 output features
TK = 15360       # K-tile size (30720 / 15360 = 2 grid steps)


def mlp_kernel(x_ref, w1_ref, b1_ref, w2_ref, b2_ref, o_ref, acc_ref):
    k = pl.program_id(0)

    @pl.when(k == 0)
    def _():
        acc_ref[...] = jnp.zeros_like(acc_ref)

    # Slice this step's K window out of the resident (B, K_IN) x block and
    # cast to bf16 so the MXU runs the bf16 path against the bf16 W1 tile.
    start = pl.multiple_of(k * TK, TK)
    x_tile = x_ref[:, pl.ds(start, TK)].astype(jnp.bfloat16)   # (B, TK)

    # fc1 partial matmul over this K tile (MXU bf16 inputs, f32 accumulate).
    acc_ref[...] += jnp.dot(
        x_tile, w1_ref[...], preferred_element_type=jnp.float32
    )

    @pl.when(k == pl.num_programs(0) - 1)
    def _():
        h = acc_ref[...] + b1_ref[...]             # (B, 128) + (1, 128)
        h = jnp.maximum(h, 0.0)                    # ReLU
        out = jnp.dot(h, w2_ref[...], preferred_element_type=jnp.float32)
        out = out + b2_ref[...]                    # (B, 11) + (1, 11)
        o_ref[...] = out.astype(o_ref.dtype)


def mlp_forward(x, w1_bf16, b1, w2, b2):
    """x: (B, 30720) f32; w1_bf16: (30720, 128) bf16 (stored once in bf16);
    b1: (1, 128) f32; w2: (128, 11) f32; b2: (1, 11) f32."""
    B, K = x.shape
    assert K == K_IN and K % TK == 0
    assert w1_bf16.dtype == jnp.bfloat16
    grid = (K // TK,)

    bytes_accessed = (
        B * K_IN * 4                   # x (f32, ~245 KB)
        + K_IN * H * 2                 # w1 (bf16, dominant ~7.9 MB stream)
        + H * 4                        # b1
        + H * N_OUT * 4                # w2
        + N_OUT * 4                    # b2
        + B * N_OUT * 4                # out
    )
    cost = pl.CostEstimate(
        flops=2 * B * K_IN * H + 2 * B * H * N_OUT,
        transcendentals=0,
        bytes_accessed=bytes_accessed,
    )

    return pl.pallas_call(
        mlp_kernel,
        out_shape=jax.ShapeDtypeStruct((B, N_OUT), jnp.float32),
        grid_spec=pltpu.PrefetchScalarGridSpec(
            num_scalar_prefetch=0,
            grid=grid,
            in_specs=[
                pl.BlockSpec((B, K_IN), lambda k: (0, 0)),     # x (full, resident)
                pl.BlockSpec((TK, H), lambda k: (k, 0)),       # w1 K-tile (bf16, streamed)
                pl.BlockSpec((1, H), lambda k: (0, 0)),        # b1 (full)
                pl.BlockSpec((H, N_OUT), lambda k: (0, 0)),    # w2 (full)
                pl.BlockSpec((1, N_OUT), lambda k: (0, 0)),    # b2 (full)
            ],
            out_specs=pl.BlockSpec((B, N_OUT), lambda k: (0, 0)),
            scratch_shapes=[pltpu.VMEM((B, H), jnp.float32)],
        ),
        compiler_params=pltpu.CompilerParams(
            dimension_semantics=("arbitrary",),
            vmem_limit_bytes=32 * 1024 * 1024,   # headroom for 2x3.93 MB w1 buffers
        ),
        cost_estimate=cost,
    )(x, w1_bf16, b1, w2, b2)


if __name__ == "__main__":
    key = jax.random.PRNGKey(0)
    kx, kw1, kb1, kw2, kb2 = jax.random.split(key, 5)

    B = 2
    # Deterministic synthetic parameters (shapes from nn.Linear in __init__).
    x = jax.random.normal(kx, (B, K_IN), dtype=jnp.float32)
    w1 = jax.random.normal(kw1, (K_IN, H), dtype=jnp.float32) * 0.01
    b1 = jax.random.normal(kb1, (1, H), dtype=jnp.float32) * 0.01
    w2 = jax.random.normal(kw2, (H, N_OUT), dtype=jnp.float32) * 0.1
    b2 = jax.random.normal(kb2, (1, N_OUT), dtype=jnp.float32) * 0.1

    # One-time (out of the hot path) bf16 weight storage, per the perf review.
    w1_bf16 = w1.astype(jnp.bfloat16)

    fwd = jax.jit(mlp_forward)
    out = jax.block_until_ready(fwd(x, w1_bf16, b1, w2, b2))
    assert out.shape == (B, N_OUT)

    hi = jax.lax.Precision.HIGHEST

    # Reference using the same bf16-rounded fc1 operands (matches kernel
    # numerics up to f32 accumulation order): tight tolerance.
    xb = x.astype(jnp.bfloat16).astype(jnp.float32)
    wb = w1_bf16.astype(jnp.float32)
    h_b = jnp.maximum(jnp.dot(xb, wb, precision=hi) + b1, 0.0)
    ref_bf16 = jnp.dot(h_b, w2, precision=hi) + b2
    assert jnp.allclose(out, ref_bf16, atol=5e-3, rtol=5e-3)

    # Full-f32 reference (PyTorch module semantics): bf16 weight storage
    # introduces ~0.5% relative deviation, so use a loose tolerance here.
    h_f = jnp.maximum(jnp.dot(x, w1, precision=hi) + b1, 0.0)
    ref_f32 = jnp.dot(h_f, w2, precision=hi) + b2
    assert jnp.allclose(out, ref_f32, atol=5e-2, rtol=5e-2)

    print("KERNEL_OK")
</pallas_src>

<mosaic_0001>
module attributes {stable_mosaic.version = 11 : i64} {
  func.func @mlp_kernel(%arg0: i32, %arg1: memref<2x30720xf32, #tpu.memory_space<vmem>>, %arg2: memref<15360x128xbf16, #tpu.memory_space<vmem>>, %arg3: memref<1x128xf32, #tpu.memory_space<vmem>>, %arg4: memref<128x11xf32, #tpu.memory_space<vmem>>, %arg5: memref<1x11xf32, #tpu.memory_space<vmem>>, %arg6: memref<2x11xf32, #tpu.memory_space<vmem>>, %arg7: memref<2x128xf32, #tpu.memory_space<vmem>>) attributes {dimension_semantics = [#tpu.dimension_semantics<arbitrary>], iteration_bounds = array<i64: 2>, scalar_prefetch = 0 : i64, scratch_operands = 1 : i64, tpu.core_type = #tpu.core_type<tc>, window_params = [{pipeline_mode = #tpu.pipeline_mode<synchronous>, transform_indices = @transform_0, window_bounds = array<i64: 2, 30720>}, {transform_indices = @transform_1, window_bounds = array<i64: 15360, 128>}, {pipeline_mode = #tpu.pipeline_mode<synchronous>, transform_indices = @transform_2, window_bounds = array<i64: 1, 128>}, {pipeline_mode = #tpu.pipeline_mode<synchronous>, transform_indices = @transform_3, window_bounds = array<i64: 128, 11>}, {pipeline_mode = #tpu.pipeline_mode<synchronous>, transform_indices = @transform_4, window_bounds = array<i64: 1, 11>}, {pipeline_mode = #tpu.pipeline_mode<synchronous>, transform_indices = @transform_5, window_bounds = array<i64: 2, 11>}]} {
    %c0_i32 = arith.constant 0 : i32
    %0 = arith.cmpi eq, %arg0, %c0_i32 : i32
    %1 = arith.extui %0 : i1 to i32
    %c0_i32_0 = arith.constant 0 : i32
    %2 = arith.cmpi ne, %1, %c0_i32_0 : i32
    scf.if %2 {
      %cst_8 = arith.constant 0.000000e+00 : f32
      %16 = vector.broadcast %cst_8 : f32 to vector<2x128xf32>
      %c0_9 = arith.constant 0 : index
      %c0_10 = arith.constant 0 : index
      %17 = vector.load %arg7[%c0_9, %c0_10] : memref<2x128xf32, #tpu.memory_space<vmem>>, vector<2x128xf32>
      tpu.vector_store %arg7[%c0_9, %c0_10], %16 {strides = array<i32>} : memref<2x128xf32, #tpu.memory_space<vmem>>, vector<2x128xf32>,
    } else {
    }
    %c15360_i32 = arith.constant 15360 : i32
    %3 = arith.muli %arg0, %c15360_i32 : i32
    %4 = tpu.assume_multiple %3, 15360 : i32
    %c0 = arith.constant 0 : index
    %5 = arith.index_cast %4 : i32 to index
    %6 = vector.load %arg1[%c0, %5] : memref<2x30720xf32, #tpu.memory_space<vmem>>, vector<2x15360xf32>
    %7 = arith.truncf %6 : vector<2x15360xf32> to vector<2x15360xbf16>
    %c0_1 = arith.constant 0 : index
    %c0_2 = arith.constant 0 : index
    %8 = vector.load %arg7[%c0_1, %c0_2] : memref<2x128xf32, #tpu.memory_space<vmem>>, vector<2x128xf32>
    %c0_3 = arith.constant 0 : index
    %c0_4 = arith.constant 0 : index
    %9 = vector.load %arg2[%c0_3, %c0_4] : memref<15360x128xbf16, #tpu.memory_space<vmem>>, vector<15360x128xbf16>
    %cst = arith.constant dense<0.000000e+00> : vector<2x128xf32>
    %10 = tpu.matmul %7, %9, %cst {dimension_numbers = #tpu.dot_dimension_numbers<[1], [0], [0], [1], [0, 0, 1, 1], [], []>} : vector<2x15360xbf16>, vector<15360x128xbf16>, vector<2x128xf32> -> vector<2x128xf32>
    %11 = arith.addf %8, %10 : vector<2x128xf32>
    %c0_5 = arith.constant 0 : index
    %c0_6 = arith.constant 0 : index
    %12 = vector.load %arg7[%c0_5, %c0_6] : memref<2x128xf32, #tpu.memory_space<vmem>>, vector<2x128xf32>
    tpu.vector_store %arg7[%c0_5, %c0_6], %11 {strides = array<i32>} : memref<2x128xf32, #tpu.memory_space<vmem>>, vector<2x128xf32>,
    %c1_i32 = arith.constant 1 : i32
    %13 = arith.cmpi eq, %arg0, %c1_i32 : i32
    %14 = arith.extui %13 : i1 to i32
    %c0_i32_7 = arith.constant 0 : i32
    %15 = arith.cmpi ne, %14, %c0_i32_7 : i32
    scf.if %15 {
      %c0_8 = arith.constant 0 : index
      %c0_9 = arith.constant 0 : index
      %16 = vector.load %arg7[%c0_8, %c0_9] : memref<2x128xf32, #tpu.memory_space<vmem>>, vector<2x128xf32>
      %c0_10 = arith.constant 0 : index
      %c0_11 = arith.constant 0 : index
      %17 = vector.load %arg3[%c0_10, %c0_11] : memref<1x128xf32, #tpu.memory_space<vmem>>, vector<1x128xf32>
      %18 = vector.broadcast %17 : vector<1x128xf32> to vector<2x128xf32>
      %19 = arith.addf %16, %18 : vector<2x128xf32>
      %cst_12 = arith.constant 0.000000e+00 : f32
      %20 = vector.broadcast %cst_12 : f32 to vector<2x128xf32>
      %21 = arith.maximumf %19, %20 : vector<2x128xf32>
      %c0_13 = arith.constant 0 : index
      %c0_14 = arith.constant 0 : index
      %22 = vector.load %arg4[%c0_13, %c0_14] : memref<128x11xf32, #tpu.memory_space<vmem>>, vector<128x11xf32>
      %cst_15 = arith.constant dense<0.000000e+00> : vector<2x11xf32>
      %23 = tpu.matmul %21, %22, %cst_15 {dimension_numbers = #tpu.dot_dimension_numbers<[1], [0], [0], [1], [0, 0, 1, 1], [], []>} : vector<2x128xf32>, vector<128x11xf32>, vector<2x11xf32> -> vector<2x11xf32>
      %c0_16 = arith.constant 0 : index
      %c0_17 = arith.constant 0 : index
      %24 = vector.load %arg5[%c0_16, %c0_17] : memref<1x11xf32, #tpu.memory_space<vmem>>, vector<1x11xf32>
      %25 = vector.broadcast %24 : vector<1x11xf32> to vector<2x11xf32>
      %26 = arith.addf %23, %25 : vector<2x11xf32>
      %c0_18 = arith.constant 0 : index
      %c0_19 = arith.constant 0 : index
      %27 = vector.load %arg6[%c0_18, %c0_19] : memref<2x11xf32, #tpu.memory_space<vmem>>, vector<2x11xf32>
      tpu.vector_store %arg6[%c0_18, %c0_19], %26 {strides = array<i32>} : memref<2x11xf32, #tpu.memory_space<vmem>>, vector<2x11xf32>,
    } else {
    }
    return
  }
  func.func @transform_0(%arg0: i32) -> (i32, i32) {
    %c0_i32 = arith.constant 0 : i32
    %c0_i32_0 = arith.constant 0 : i32
    %c0_i32_1 = arith.constant 0 : i32
    return %c0_i32, %c0_i32_0 : i32, i32
  }
  func.func @transform_1(%arg0: i32) -> (i32, i32) {
    %c0_i32 = arith.constant 0 : i32
    %c0_i32_0 = arith.constant 0 : i32
    return %arg0, %c0_i32 : i32, i32
  }
  func.func @transform_2(%arg0: i32) -> (i32, i32) {
    %c0_i32 = arith.constant 0 : i32
    %c0_i32_0 = arith.constant 0 : i32
    %c0_i32_1 = arith.constant 0 : i32
    return %c0_i32, %c0_i32_0 : i32, i32
  }
  func.func @transform_3(%arg0: i32) -> (i32, i32) {
    %c0_i32 = arith.constant 0 : i32
    %c0_i32_0 = arith.constant 0 : i32
    %c0_i32_1 = arith.constant 0 : i32
    return %c0_i32, %c0_i32_0 : i32, i32
  }
  func.func @transform_4(%arg0: i32) -> (i32, i32) {
    %c0_i32 = arith.constant 0 : i32
    %c0_i32_0 = arith.constant 0 : i32
    %c0_i32_1 = arith.constant 0 : i32
    return %c0_i32, %c0_i32_0 : i32, i32
  }
  func.func @transform_5(%arg0: i32) -> (i32, i32) {
    %c0_i32 = arith.constant 0 : i32
    %c0_i32_0 = arith.constant 0 : i32
    %c0_i32_1 = arith.constant 0 : i32
    return %c0_i32, %c0_i32_0 : i32, i32
  }
}

</mosaic_0001>

<bundles_post_ra>
// kernel: mlp_forward.1
= control target key start
LH: loop header
LB: loop body
LE: loop exit
PB: predicated region body
PF: predicated region fallthrough
CT: control target
= control target key end

     0   :  { %10 = vsyncpa [#allocation4], 0  ;;  %s16370_s0 = inlined_call_operand.hbm [shape: f32[2,30720], index: 0, kind: input, shape index: {}]   ;;  %s16371_s1 = inlined_call_operand.hbm [shape: bf16[30720,128], index: 1, kind: input, shape index: {}]   ;;  %s16372_s2 = inlined_call_operand.hbm [shape: f32[1,128], index: 2, kind: input, shape index: {}]   ;;  %s16373_s3 = inlined_call_operand.vmem [shape: f32[128,11], index: 3, kind: input, shape index: {}]   ;;  %s16374_s4 = inlined_call_operand.hbm [shape: f32[1,11], index: 4, kind: input, shape index: {}]   ;;  %s16375_s5 = inlined_call_operand.hbm [shape: f32[2,11], index: 5, kind: output, shape index: {}]  }
   0x1   :  { %11 = vsyncpa [#allocation7], 0 }
   0x2   :  { %13 = vsyncpa [#allocation7 + $0x1], 0 }
   0x3   :  { %14 = vsyncpa [#allocation10], 0 }
   0x4   :  { %15 = vsyncpa [#allocation5], 0  ;;  %s15024_s18 = smov 0   ;;  %s15026_s19 = smov 0  }
   0x5   :  { %s15028_s20 = smov 0   ;;  %s15030_s21 = smov 0  }
   0x6 LB: > { %s15043_s22 = sadd.s32 4294967295, %s14981_s21   ;;  %s15046_s23 = sadd.s32 1, %s14981_s21   ;;  %s14981_s21 = sphi %s15030_s21, %s16396_s21   ;;  %s14977_s20 = sphi %s15028_s20, %s16395_s20   ;;  %s14973_s19 = sphi %s15026_s19, %s16394_s19   ;;  %s14969_s18 = sphi %s15024_s18, %s16393_s18  }
   0x7   : > { %s46_s24 = ssub.s32 %s14981_s21, %s15046_s23  ;;  %s49_s25 = sadd.s32 1, %s14977_s20 }
   0x8   : > { %p47_p0 = scmp.eq.s32.totalorder %s46_s24, 0  ;;  %p56_p1 = scmp.ne.s32.totalorder %s14977_s20, %s14973_s19 }
   0x9   : > { %p57_p2 = scmp.eq.s32.totalorder %s14981_s21, 0  ;;  %p62_p3 = scmp.ne.s32.totalorder %s14973_s19, %s14969_s18 }
   0xa   : > { %s15056_s26 = scalar_select %p47_p0, %s14977_s20, %s49_s25  }
   0xb   : > { %p15058_p4 = por %p57_p2, %p56_p1  ;;  %p16376_p5 = scmp.eq.s32.totalorder %s15043_s22, 0 }
   0xc   : > { %p11374_p6 = scmp.ge.s32.totalorder %s14981_s21, 1  ;;  %p157_p7 = scmp.lt.s32.totalorder %s14981_s21, 3 }
   0xd   : > { %p15067_p8 = por %p16376_p5, %p62_p3  ;;  %s14983_s30 = smov [#allocation8]  }
   0xe   : > { %p15072_p10 = pnand %p11374_p6, %p157_p7  ;;  %s181_s6 = sshll.u32 %s14983_s30, 4  ;;  %s182_s6 = int_to_ptr.vmem [resolvable:$true] %s181_s6 }
   0xf   : > { %s16380_s28 = scalar_select %p15067_p8, 1, 0 }
  0x10   : > { %s16381_s29 = scalar_select %p15072_p10, 1, 0 }
  0x11   : > { %p13746_p11 = pneg %p15072_p10  ;;  %p13763_p12 = scmp.lt.s32.totalorder %s14981_s21, 2 }
  0x12   : > { %s14984_s8 = smov [#allocation3]   ;;  %s14812_s11 = scalar_lea.vmem %s182_s6, 16 }
  0x13   : > { %p15081_p13 = pnand %p13746_p11, %p16376_p5  ;;  %s170_s9 = sshll.u32 %s14984_s8, 4  ;;  %s171_s9 = int_to_ptr.vmem [resolvable:$true] %s170_s9 }
  0x14   : > { %p15087_p0 = pnand %p13763_p12, %p15058_p4  ;;  %p14813_p2 = scmp.ne.s32.totalorder %s182_s6, %s14812_s11 }
  0x15   : > { %p14803_p1 = pneg %p15081_p13  ;;  %s14819_s12 = scalar_lea.vmem %s182_s6, 32 }
  0x16   : > { %p14820_p7 = scmp.lt.s32.totalorder %s182_s6, %s182_s6  ;;  %p14821_p11 = scmp.lt.s32.totalorder %s14819_s12, %s14812_s11 }
  0x17   : > { %p14815_p3 = pnand %p14813_p2, %p14803_p1 }
  0x18   : > { %p14822_p9 = por %p14821_p11, %p14820_p7 }
  0x19   : > { %p14816_p6 = pneg %p14815_p3 }
  0x1b   : > { %p14823_p5 = pnand %p14822_p9, %p14816_p6 }
  0x1d   : > { %14826 = shalt.err (!%p14823_p5)
}
  0x1e   : > { %13752 = dma.hbm_to_vmem [thread:$0]  (!%p15081_p13), %s16372_s2, 16, %s182_s6, [#allocation7]  }
  0x1f   : > { %s14985_s15 = smov [#allocation9]   ;;  %s14838_s17 = scalar_lea.vmem %s171_s9, 7680 }
  0x20   : > { %s195_s16 = sshll.u32 %s14985_s15, 4  ;;  %p14839_p4 = scmp.ne.s32.totalorder %s171_s9, %s14838_s17  ;;  %s196_s16 = int_to_ptr.vmem [resolvable:$true] %s195_s16 }
  0x21   : > { %p14846_p3 = scmp.lt.s32.totalorder %s171_s9, %s171_s9  ;;  %p14847_p8 = scmp.lt.s32.totalorder %s14838_s17, %s14838_s17 }
  0x22   : > { %p14841_p12 = pnand %p14839_p4, %p14803_p1 }
  0x23   : > { %p14848_p7 = por %p14847_p8, %p14846_p3 }
  0x24   : > { %p14842_p2 = pneg %p14841_p12 }
  0x26   : > { %p14849_p9 = pnand %p14848_p7, %p14842_p2 }
  0x28   : > { %14852 = shalt.err (!%p14849_p9)
}
  0x29   : > { %13749 = dma.hbm_to_vmem [thread:$0]  (!%p15081_p13), %s16370_s0, 7680, %s171_s9, [#allocation4]  }
  0x2a   : > { %s206_s25 = sand.u32 1, %s14981_s21   ;;  %s14864_s27 = scalar_lea.vmem %s196_s16, 16 }
  0x2b   : > { %p14865_p5 = scmp.ne.s32.totalorder %s196_s16, %s14864_s27  ;;  %s14871_s30 = scalar_lea.vmem %s196_s16, 32 }
  0x2c   : > { %p14872_p8 = scmp.lt.s32.totalorder %s196_s16, %s196_s16  ;;  %p14873_p4 = scmp.lt.s32.totalorder %s14871_s30, %s14864_s27 }
  0x2d   : > { %p14867_p6 = pnand %p14865_p5, %p14803_p1 }
  0x2e   : > { %p14874_p12 = por %p14873_p4, %p14872_p8 }
  0x2f   : > { %p14868_p11 = pneg %p14867_p6 }
  0x31   : > { %p14875_p2 = pnand %p14874_p12, %p14868_p11 }
  0x33   : > { %14878 = shalt.err (!%p14875_p2)
}
  0x34   : > { %13755 = dma.hbm_to_vmem [thread:$0]  (!%p15081_p13), %s16374_s4, 16, %s196_s16, [#allocation10]  }
  0x35   : > { %s208_s9 = sand.u32 1, %s14977_s20   ;;  %s12353_s12 = smul.u32 122880, %s14981_s21 }
  0x36   : > { %s13726_s11 = smul.u32 7680, %s208_s9  ;;  %s15127_s18 = scalar_lea.sflag [#allocation7], %s206_s25 }
  0x37   : > { %s15123_s15 = scalar_lea.hbm %s16371_s1, %s12353_s12  ;;  %p14881_p13 = pneg %p15087_p0 }
  0x38   : > { %s210_s17 = scalar_lea.vmem [#allocation6], %s13726_s11  ;;  %s14879_s24 = scalar_lea.hbm %s15123_s15, 122880 }
  0x39   : > { %s217_s7 = sshll.u32 %s210_s17, 4  ;;  %p14880_p1 = scmp.ne.s32.totalorder %s15123_s15, %s14879_s24  ;;  %s15125_s7 = int_to_ptr.vmem [resolvable:$true] %s217_s7 }
  0x3a   : > { %s14884_s27 = scalar_lea.hbm %s16371_s1, 245760  ;;  %p14885_p9 = scmp.lt.s32.totalorder %s15123_s15, %s16371_s1 }
  0x3b   : > { %p14882_p3 = pnand %p14881_p13, %p14880_p1  ;;  %p14886_p5 = scmp.lt.s32.totalorder %s14884_s27, %s14879_s24 }
  0x3d   : > { %p14883_p7 = pneg %p14882_p3  ;;  %p14887_p6 = por %p14886_p5, %p14885_p9 }
  0x3f   : > { %p14888_p11 = pnand %p14887_p6, %p14883_p7 }
  0x41   : > { %14891 = shalt.err (!%p14888_p11)
}
  0x42   : > { %s14892_s25 = scalar_lea.vmem %s15125_s7, 122880  ;;  %s14986_s8 = smov [#allocation6]  }
  0x43   : > { %p14893_p8 = scmp.ne.s32.totalorder %s15125_s7, %s14892_s25  ;;  %s14897_s9 = sshll.u32 %s14986_s8, 4  ;;  %s14898_s9 = int_to_ptr.vmem [resolvable:$false] %s14897_s9 }
  0x44   : > { %s14899_s11 = scalar_lea.vmem %s14898_s9, 245760  ;;  %p14900_p2 = scmp.lt.s32.totalorder %s15125_s7, %s14898_s9 }
  0x45   : > { %p14895_p4 = pnand %p14893_p8, %p14881_p13  ;;  %p14901_p1 = scmp.lt.s32.totalorder %s14899_s11, %s14892_s25 }
  0x47   : > { %p14896_p12 = pneg %p14895_p4  ;;  %p14902_p3 = por %p14901_p1, %p14900_p2 }
  0x49   : > { %p14903_p10 = pnand %p14902_p3, %p14896_p12 }
  0x4b   : > { %14906 = shalt.err (!%p14903_p10)
}
  0x4c   : > { %s14987_s12 = smov 64   ;;  %s14988_s13 = smov 4  }
  0x4d   : > { %13759 = dma.hbm_to_vmem [thread:$0]  (!%p15087_p0), %s15123_s15, 122880, %s15125_s7, %s15127_s18, %s14987_s12, %s14987_s12, %s14988_s13  }
  0x4e   : > { %p16384_p13 = scmp.ne.s32.totalorder %s16381_s29, 0 }
  0x4f   : > { %p16385_p7 = scmp.eq.s32.totalorder (!%p16384_p13), %s15043_s22, 0 }
  0x50   : > { %229 = sbr.rel (%p16384_p13) target bundleno = 1516 (0x5ec), region = 40 }
  0x55   : > { %14948 = dma.done.wait (%p16385_p7), [#allocation4], 7680   ;;  %p16386_p9 = pmov %p16385_p7 }
  0x56   : > { %s235_s14 = sand.u32 1, %s15043_s22   ;;  %s237_s17 = sand.u32 1, %s14973_s19  }
  0x57   : > { %14950 = vsyncadd (%p16386_p9), [#allocation4], 4294959616  ;;  %s13727_s24 = smul.u32 7680, %s237_s17  ;;  %s236_s21 = scalar_lea.sflag [#allocation7], %s235_s14 }
  0x58   : > { %p16387_p10 = scmp.ne.s32.totalorder %s16380_s28, 0 }
  0x59   : > { %s15156_s16 = scalar_lea.vmem [#allocation6], %s13727_s24 }
  0x5a   : > { %14952 = dma.done.wait (%p16387_p10), %s236_s21, 122880  }
  0x5b   : > { %14954 = vsyncadd (%p16387_p10), %s236_s21, 4294844416  ;;  %p16388_p0 = pmov %p16385_p7 }
  0x5d   : > { %14956 = dma.done.wait (%p16388_p0), [#allocation7], 16   ;;  %p16389_p5 = pmov %p16388_p0 }
  0x5e   : > { %p16390_p6 = pmov %p16388_p0 }
  0x5f   : > { %14958 = vsyncadd (%p16389_p5), [#allocation7], 4294967280 }
  0x60   : > { %14960 = dma.done.wait (%p16390_p6), [#allocation10], 16   ;;  %p16391_p11 = pmov %p16388_p0 }
  0x61   : > { %p16392_p8 = scmp.ne.s32.totalorder %s15043_s22, 0 }
  0x62   : > { %14962 = vsyncadd (%p16391_p11), [#allocation10], 4294967280 }
  0x63   : > { %274 = sbr.rel (%p16392_p8) target bundleno = 106 (0x6a), region = 60 }
  0x68   : > { %v14989_v0 = vmov 0.0  }
  0x69   : > { %275 = vst [vmem:[#allocation2] sm:$0x3] %v14989_v0 }
  0x6a PF: > { %v13811_v1 = vld [vmem:[%s15156_s16 + $0x78] sm:$0xff]   ;;  %v13815_v5 = vld [vmem:[%s15156_s16 + $0x70] sm:$0xff]   ;;  %v13819_v9 = vld [vmem:[%s15156_s16 + $0x68] sm:$0xff]   ;;  %s276_s28 = smul.u32 15360, %s15043_s22  ;;  %v345_v29 = vlaneseq  ;;  %v14990_v37 = vmov 1983009808  }
  0x6b   : > { %v13812_v2 = vld [vmem:[%s15156_s16 + $0xf8] sm:$0xff]   ;;  %12354 = vmatprep.subr.bf16.mxu0 %v13811_v1  ;;  %v13816_v6 = vld [vmem:[%s15156_s16 + $0xf0] sm:$0xff]   ;;  %v13820_v10 = vld [vmem:[%s15156_s16 + $0xe8] sm:$0xff]   ;;  %v343_v38 = vunpack.c.l.s4 %v14990_v37  ;;  %p12346_p4 = scmp.ne.s32.totalorder %s15043_s22, 1 }
  0x6c   : > { %v13813_v3 = vld [vmem:[%s15156_s16 + $0x38] sm:$0xff]   ;;  %12376 = vmatprep.subr.bf16.mxu1 %v13812_v2  ;;  %v13817_v7 = vld [vmem:[%s15156_s16 + $0x30] sm:$0xff]   ;;  %v13821_v11 = vld [vmem:[%s15156_s16 + $0x28] sm:$0xff]   ;;  %s277_s29 = sshra.s32 %s276_s28, 7  ;;  %v346_v34 = vshrl.u32 %v345_v29, 7 }
  0x6d   : > { %v13814_v4 = vld [vmem:[%s15156_s16 + $0xb8] sm:$0xff]   ;;  %12355 = vmatpush3.bf16.msra.mxu0 %v13813_v3  ;;  %v13818_v8 = vld [vmem:[%s15156_s16 + $0xb0] sm:$0xff]   ;;  %v13822_v12 = vld [vmem:[%s15156_s16 + $0xa8] sm:$0xff]   ;;  %s11385_s10 = sshll.u32 %s277_s29, 1  ;;  %v344_v40 = vunpack.c.0.s8 %v343_v38 }
  0x6e   : > { %12377 = vmatpush3.bf16.msra.mxu1 %v13814_v4  ;;  %12356 = vmatprep.subr.bf16.mxu0 %v13815_v5  ;;  %v13823_v13 = vld [vmem:[%s15156_s16 + $0x60] sm:$0xff]   ;;  %v13827_v17 = vld [vmem:[%s15156_s16 + $0x58] sm:$0xff]   ;;  %v13831_v21 = vld [vmem:[%s15156_s16 + $0x50] sm:$0xff]   ;;  %s15205_s15 = scalar_lea.vmem [#allocation3], %s11385_s10 }
  0x6f   : > { %12378 = vmatprep.subr.bf16.mxu1 %v13816_v6  ;;  %v13824_v14 = vld [vmem:[%s15156_s16 + $0xe0] sm:$0xff]   ;;  %v13828_v18 = vld [vmem:[%s15156_s16 + $0xd8] sm:$0xff]   ;;  %v13832_v22 = vld [vmem:[%s15156_s16 + $0xd0] sm:$0xff]   ;;  %v15210_v42 = vsub.s32 %v344_v40, %v346_v34 }
  0x70   : > { %v13825_v15 = vld [vmem:[%s15156_s16 + $0x20] sm:$0xff]   ;;  %v13829_v19 = vld [vmem:[%s15156_s16 + $0x18] sm:$0xff]   ;;  %v13833_v23 = vld [vmem:[%s15156_s16 + $0x10] sm:$0xff]  }
  0x71   : > { %12357 = vmatpush3.bf16.msra.mxu0 %v13817_v7  ;;  %v13826_v16 = vld [vmem:[%s15156_s16 + $0xa0] sm:$0xff]   ;;  %v13830_v20 = vld [vmem:[%s15156_s16 + $0x98] sm:$0xff]   ;;  %v13834_v24 = vld [vmem:[%s15156_s16 + $0x90] sm:$0xff]  }
  0x72   : > { %12379 = vmatpush3.bf16.msra.mxu1 %v13818_v8  ;;  %12358 = vmatprep.subr.bf16.mxu0 %v13819_v9  ;;  %v13835_v25 = vld [vmem:[%s15156_s16 + $0x48] sm:$0xff]   ;;  %v13839_v30 = vld [vmem:[%s15156_s16 + $0x40] sm:$0xff]   ;;  %v13844_v36 = vld [vmem:[%s15156_s16 + $0x178] sm:$0xff]  }
  0x73   : > { %12380 = vmatprep.subr.bf16.mxu1 %v13820_v10  ;;  %v13836_v26 = vld [vmem:[%s15156_s16 + $0xc8] sm:$0xff]   ;;  %v13840_v31 = vld [vmem:[%s15156_s16 + $0xc0] sm:$0xff]   ;;  %v13845_v39 = vld [vmem:[%s15156_s16 + $0x1f8] sm:$0xff]  }
  0x74   : > { %v13837_v27 = vld [vmem:[%s15156_s16 + $0x8] sm:$0xff]   ;;  %v13841_v32 = vld [vmem:[%s15156_s16] sm:$0xff]   ;;  %v13846_v47 = vld [vmem:[%s15156_s16 + $0x138] sm:$0xff]  }
  0x75   : > { %12359 = vmatpush3.bf16.msra.mxu0 %v13821_v11  ;;  %v13838_v28 = vld [vmem:[%s15156_s16 + $0x88] sm:$0xff]   ;;  %v13842_v33 = vld [vmem:[%s15156_s16 + $0x80] sm:$0xff]   ;;  %v13847_v50 = vld [vmem:[%s15156_s16 + $0x1b8] sm:$0xff]  }
  0x76   : > { %12381 = vmatpush3.bf16.msra.mxu1 %v13822_v12  ;;  %12360 = vmatprep.subr.bf16.mxu0 %v13823_v13  ;;  %v281_v35 = vld [vmem:[%s15205_s15] sm:$0xff]  ;;  %v13848_v53 = vld [vmem:[%s15156_s16 + $0x170] sm:$0xff]   ;;  %v13852_v57 = vld [vmem:[%s15156_s16 + $0x168] sm:$0xff]  }
  0x77   : > { %12382 = vmatprep.subr.bf16.mxu1 %v13824_v14  ;;  %v341_v41 = vcombine.high %v281_v35, %v281_v35  ;;  %v348_v43 = vrot.slane %v281_v35, %v15210_v42  ;;  %v13849_v54 = vld [vmem:[%s15156_s16 + $0x1f0] sm:$0xff]   ;;  %v13853_v58 = vld [vmem:[%s15156_s16 + $0x1e8] sm:$0xff]   ;;  %v13856_v61 = vld [vmem:[%s15156_s16 + $0x160] sm:$0xff]  }
  0x78   : > { %v13850_v55 = vld [vmem:[%s15156_s16 + $0x130] sm:$0xff]   ;;  %v13854_v59 = vld [vmem:[%s15156_s16 + $0x128] sm:$0xff]   ;;  %v13857_v62 = vld [vmem:[%s15156_s16 + $0x1e0] sm:$0xff]  }
  0x79   : > { %12361 = vmatpush3.bf16.msra.mxu0 %v13825_v15  ;;  %v355_v44 = vrot.slane %v341_v41, %v15210_v42  ;;  %v356_v45 = vcombine.high %v348_v43, %v348_v43  ;;  %v971_v48 = vpack.c.bf16 %v348_v43, %v348_v43  ;;  %v13851_v56 = vld [vmem:[%s15156_s16 + $0x1b0] sm:$0xff]   ;;  %v13855_v60 = vld [vmem:[%s15156_s16 + $0x1a8] sm:$0xff]   ;;  %v13858_v63 = vld [vmem:[%s15156_s16 + $0x120] sm:$0xff]  }
  0x7a   : > { %12383 = vmatpush3.bf16.msra.mxu1 %v13826_v16  ;;  %12362 = vmatprep.subr.bf16.mxu0 %v13827_v17  ;;  %v13859_v0 = vld [vmem:[%s15156_s16 + $0x1a0] sm:$0xff]   ;;  %v13860_v1 = vld [vmem:[%s15156_s16 + $0x158] sm:$0xff]   ;;  %v13864_v5 = vld [vmem:[%s15156_s16 + $0x150] sm:$0xff]  }
  0x7b   : > { %12384 = vmatprep.subr.bf16.mxu1 %v13828_v18  ;;  %v357_v46 = vcombine.high %v355_v44, %v355_v44  ;;  %v973_v49 = vpack.c.bf16 %v355_v44, %v355_v44  ;;  %v972_v51 = vpack.c.bf16 %v356_v45, %v356_v45  ;;  %v13861_v2 = vld [vmem:[%s15156_s16 + $0x1d8] sm:$0xff]   ;;  %v13865_v6 = vld [vmem:[%s15156_s16 + $0x1d0] sm:$0xff]   ;;  %v13868_v9 = vld [vmem:[%s15156_s16 + $0x148] sm:$0xff]  }
  0x7c   : > { %v13862_v3 = vld [vmem:[%s15156_s16 + $0x118] sm:$0xff]   ;;  %v13866_v7 = vld [vmem:[%s15156_s16 + $0x110] sm:$0xff]   ;;  %v13869_v10 = vld [vmem:[%s15156_s16 + $0x1c8] sm:$0xff]  }
  0x7d   : > { %12363 = vmatpush3.bf16.msra.mxu0 %v13829_v19  ;;  %v974_v52 = vpack.c.bf16 %v357_v46, %v357_v46  ;;  %8804 = vmatprep.mubr.bf16.mxu0 %v972_v51  ;;  %v13863_v4 = vld [vmem:[%s15156_s16 + $0x198] sm:$0xff]   ;;  %v13867_v8 = vld [vmem:[%s15156_s16 + $0x190] sm:$0xff]   ;;  %v282_v11 = vld [vmem:[%s15205_s15 + $0x8] sm:$0xff] }
  0x7e   : > { %12385 = vmatpush3.bf16.msra.mxu1 %v13830_v20  ;;  %12364 = vmatprep.subr.bf16.mxu0 %v13831_v21  ;;  %v13870_v12 = vld [vmem:[%s15156_s16 + $0x108] sm:$0xff]   ;;  %v365_v13 = vrot.slane %v282_v11, %v15210_v42  ;;  %v358_v14 = vcombine.high %v282_v11, %v282_v11  ;;  %v13872_v16 = vld [vmem:[%s15156_s16 + $0x140] sm:$0xff]   ;;  %v13884_v34 = vld [vmem:[%s15156_s16 + $0x2b0] sm:$0xff]  }
  0x7f   : > { %12386 = vmatprep.subr.bf16.mxu1 %v13832_v22  ;;  %8844 = vmatprep.mubr.bf16.mxu1 %v974_v52  ;;  %v13871_v15 = vld [vmem:[%s15156_s16 + $0x188] sm:$0xff]   ;;  %v13873_v19 = vld [vmem:[%s15156_s16 + $0x1c0] sm:$0xff]   ;;  %v13893_v44 = vld [vmem:[%s15156_s16 + $0x258] sm:$0xff]  }
  0x80   : > { %v373_v17 = vcombine.high %v365_v13, %v365_v13  ;;  %v372_v18 = vrot.slane %v358_v14, %v15210_v42  ;;  %v13874_v20 = vld [vmem:[%s15156_s16 + $0x100] sm:$0xff]   ;;  %v13885_v35 = vld [vmem:[%s15156_s16 + $0x268] sm:$0xff]   ;;  %v13894_v45 = vld [vmem:[%s15156_s16 + $0x2d8] sm:$0xff]  }
  0x81   : > { %12365 = vmatpush3.bf16.msra.mxu0 %v13833_v23  ;;  %v13875_v23 = vld [vmem:[%s15156_s16 + $0x180] sm:$0xff]   ;;  %v13887_v37 = vld [vmem:[%s15156_s16 + $0x228] sm:$0xff]   ;;  %v13895_v46 = vld [vmem:[%s15156_s16 + $0x218] sm:$0xff]  }
  0x82   : > { %12387 = vmatpush3.bf16.msra.mxu1 %v13834_v24  ;;  %12366 = vmatprep.subr.bf16.mxu0 %v13835_v25  ;;  %v976_v21 = vpack.c.bf16 %v373_v17, %v373_v17  ;;  %v374_v22 = vcombine.high %v372_v18, %v372_v18  ;;  %v13877_v25 = vld [vmem:[%s15156_s16 + $0x278] sm:$0xff]   ;;  %v977_v29 = vpack.c.bf16 %v372_v18, %v372_v18  ;;  %v13888_v38 = vld [vmem:[%s15156_s16 + $0x2a8] sm:$0xff]   ;;  %v13890_v40 = vld [vmem:[%s15156_s16 + $0x2e0] sm:$0xff]  }
  0x83   : > { %12388 = vmatprep.subr.bf16.mxu1 %v13836_v26  ;;  %v13878_v26 = vld [vmem:[%s15156_s16 + $0x2f8] sm:$0xff]   ;;  %v13891_v41 = vld [vmem:[%s15156_s16 + $0x220] sm:$0xff]   ;;  %v13900_v51 = vld [vmem:[%s15156_s16 + $0x290] sm:$0xff]  }
  0x84   : > { %v978_v24 = vpack.c.bf16 %v374_v22, %v374_v22  ;;  %v13892_v43 = vld [vmem:[%s15156_s16 + $0x2a0] sm:$0xff]   ;;  %v13901_v52 = vld [vmem:[%s15156_s16 + $0x248] sm:$0xff]   ;;  %v13915_v11 = vld [vmem:[%s15156_s16 + $0x3f0] sm:$0xff]  }
  0x85   : > { %12367 = vmatpush3.bf16.msra.mxu0 %v13837_v27  ;;  %v13879_v27 = vld [vmem:[%s15156_s16 + $0x238] sm:$0xff]   ;;  %v13918_v14 = vld [vmem:[%s15156_s16 + $0x368] sm:$0xff]   ;;  %v13922_v18 = vld [vmem:[%s15156_s16 + $0x360] sm:$0xff]  }
  0x86   : > { %12389 = vmatpush3.bf16.msra.mxu1 %v13838_v28  ;;  %12368 = vmatprep.subr.bf16.mxu0 %v13839_v30  ;;  %v975_v28 = vpack.c.bf16 %v365_v13, %v365_v13  ;;  %v13880_v30 = vld [vmem:[%s15156_s16 + $0x2b8] sm:$0xff]   ;;  %v13917_v13 = vld [vmem:[%s15156_s16 + $0x3b0] sm:$0xff]   ;;  %v13921_v17 = vld [vmem:[%s15156_s16 + $0x3a8] sm:$0xff]  }
  0x87   : > { %12390 = vmatprep.subr.bf16.mxu1 %v13840_v31  ;;  %v13881_v31 = vld [vmem:[%s15156_s16 + $0x270] sm:$0xff]   ;;  %v13926_v22 = vld [vmem:[%s15156_s16 + $0x358] sm:$0xff]  }
  0x89   : > { %12369 = vmatpush3.bf16.msra.mxu0 %v13841_v32  ;;  %v13882_v32 = vld [vmem:[%s15156_s16 + $0x2f0] sm:$0xff]  }
  0x8a   : > { %12391 = vmatpush3.bf16.msra.mxu1 %v13842_v33  ;;  %12398 = vmatprep.subr.bf16.mxu0 %v13844_v36  ;;  %v13883_v33 = vld [vmem:[%s15156_s16 + $0x230] sm:$0xff]   ;;  %v13886_v36 = vld [vmem:[%s15156_s16 + $0x2e8] sm:$0xff]  }
  0x8b   : > { %12420 = vmatprep.subr.bf16.mxu1 %v13845_v39  ;;  %v13889_v39 = vld [vmem:[%s15156_s16 + $0x260] sm:$0xff]  }
  0x8c   : > { %8805 = vmatmul.mubr.bf16.vlgmr.msra.gmra.mxu0 %v971_v48  ;;  %v13897_v48 = vld [vmem:[%s15156_s16 + $0x250] sm:$0xff]  }
  0x8d   : > { %8845 = vmatmul.mubr.bf16.vlgmr.msra.gmra.mxu1 %v973_v49  ;;  %12399 = vmatpush3.bf16.msra.mxu0 %v13846_v47  ;;  %v13896_v47 = vld [vmem:[%s15156_s16 + $0x298] sm:$0xff]   ;;  %v13898_v49 = vld [vmem:[%s15156_s16 + $0x2d0] sm:$0xff]  }
  0x8e   : > { %12421 = vmatpush3.bf16.msra.mxu1 %v13847_v50  ;;  %12400 = vmatprep.subr.bf16.mxu0 %v13848_v53  ;;  %v13899_v50 = vld [vmem:[%s15156_s16 + $0x210] sm:$0xff]   ;;  %v13902_v53 = vld [vmem:[%s15156_s16 + $0x2c8] sm:$0xff]  }
  0x8f   : > { %12422 = vmatprep.subr.bf16.mxu1 %v13849_v54  ;;  %8884 = vmatprep.mubr.bf16.mxu0 %v976_v21  ;;  %v283_v54 = vld [vmem:[%s15205_s15 + $0x10] sm:$0xff]  ;;  %v13925_v21 = vld [vmem:[%s15156_s16 + $0x3a0] sm:$0xff]  }
  0x90   : > { %8924 = vmatprep.mubr.bf16.mxu1 %v978_v24  ;;  %v13928_v24 = vld [vmem:[%s15156_s16 + $0x318] sm:$0xff]  }
  0x91   : > { %12401 = vmatpush3.bf16.msra.mxu0 %v13850_v55  ;;  %v13903_v55 = vld [vmem:[%s15156_s16 + $0x208] sm:$0xff]  }
  0x92   : > { %12423 = vmatpush3.bf16.msra.mxu1 %v13851_v56  ;;  %12402 = vmatprep.subr.bf16.mxu0 %v13852_v57  ;;  %v382_v56 = vrot.slane %v283_v54, %v15210_v42  ;;  %v375_v57 = vcombine.high %v283_v54, %v283_v54  ;;  %v13948_v54 = vld [vmem:[%s15156_s16 + $0x4f0] sm:$0xff]  }
  0x93   : > { %12424 = vmatprep.subr.bf16.mxu1 %v13853_v58  ;;  %v13904_v58 = vld [vmem:[%s15156_s16 + $0x288] sm:$0xff]  }
  0x95   : > { %12403 = vmatpush3.bf16.msra.mxu0 %v13854_v59  ;;  %v13905_v59 = vld [vmem:[%s15156_s16 + $0x240] sm:$0xff]  }
  0x96   : > { %12425 = vmatpush3.bf16.msra.mxu1 %v13855_v60  ;;  %12404 = vmatprep.subr.bf16.mxu0 %v13856_v61  ;;  %v390_v60 = vcombine.high %v382_v56, %v382_v56  ;;  %v389_v61 = vrot.slane %v375_v57, %v15210_v42  ;;  %v13951_v57 = vld [vmem:[%s15156_s16 + $0x468] sm:$0xff]  }
  0x97   : > { %12426 = vmatprep.subr.bf16.mxu1 %v13857_v62  ;;  %v13906_v62 = vld [vmem:[%s15156_s16 + $0x2c0] sm:$0xff]  }
  0x99   : > { %12405 = vmatpush3.bf16.msra.mxu0 %v13858_v63  ;;  %v13907_v63 = vld [vmem:[%s15156_s16 + $0x200] sm:$0xff]  }
  0x9a   : > { %12427 = vmatpush3.bf16.msra.mxu1 %v13859_v0  ;;  %12406 = vmatprep.subr.bf16.mxu0 %v13860_v1  ;;  %v980_v0 = vpack.c.bf16 %v390_v60, %v390_v60  ;;  %v391_v1 = vcombine.high %v389_v61, %v389_v61  ;;  %v13954_v60 = vld [vmem:[%s15156_s16 + $0x4a8] sm:$0xff]  }
  0x9b   : > { %12428 = vmatprep.subr.bf16.mxu1 %v13861_v2  ;;  %v13908_v2 = vld [vmem:[%s15156_s16 + $0x280] sm:$0xff]  }
  0x9d   : > { %12407 = vmatpush3.bf16.msra.mxu0 %v13862_v3  ;;  %v982_v3 = vpack.c.bf16 %v391_v1, %v391_v1  ;;  %v13959_v1 = vld [vmem:[%s15156_s16 + $0x458] sm:$0xff]  }
  0x9e   : > { %12429 = vmatpush3.bf16.msra.mxu1 %v13863_v4  ;;  %12408 = vmatprep.subr.bf16.mxu0 %v13864_v5  ;;  %v13910_v4 = vld [vmem:[%s15156_s16 + $0x378] sm:$0xff]  }
  0x9f   : > { %12430 = vmatprep.subr.bf16.mxu1 %v13865_v6  ;;  %v13911_v5 = vld [vmem:[%s15156_s16 + $0x3f8] sm:$0xff]  }
  0xa0   : > { %v13912_v6 = vld [vmem:[%s15156_s16 + $0x338] sm:$0xff]  }
  0xa1   : > { %12409 = vmatpush3.bf16.msra.mxu0 %v13866_v7  ;;  %v979_v7 = vpack.c.bf16 %v382_v56, %v382_v56  ;;  %v13950_v56 = vld [vmem:[%s15156_s16 + $0x4b0] sm:$0xff]  }
  0xa2   : > { %12431 = vmatpush3.bf16.msra.mxu1 %v13867_v8  ;;  %12410 = vmatprep.subr.bf16.mxu0 %v13868_v9  ;;  %v981_v8 = vpack.c.bf16 %v389_v61, %v389_v61  ;;  %v13913_v9 = vld [vmem:[%s15156_s16 + $0x3b8] sm:$0xff]   ;;  %v13955_v61 = vld [vmem:[%s15156_s16 + $0x460] sm:$0xff]  }
  0xa3   : > { %12432 = vmatprep.subr.bf16.mxu1 %v13869_v10  ;;  %v13914_v10 = vld [vmem:[%s15156_s16 + $0x370] sm:$0xff]  }
  0xa5   : > { %12411 = vmatpush3.bf16.msra.mxu0 %v13870_v12  ;;  %v13916_v12 = vld [vmem:[%s15156_s16 + $0x330] sm:$0xff]  }
  0xa6   : > { %12433 = vmatpush3.bf16.msra.mxu1 %v13871_v15  ;;  %12412 = vmatprep.subr.bf16.mxu0 %v13872_v16  ;;  %v13919_v15 = vld [vmem:[%s15156_s16 + $0x3e8] sm:$0xff]  }
  0xa7   : > { %12434 = vmatprep.subr.bf16.mxu1 %v13873_v19  ;;  %v13920_v16 = vld [vmem:[%s15156_s16 + $0x328] sm:$0xff]   ;;  %v13923_v19 = vld [vmem:[%s15156_s16 + $0x3e0] sm:$0xff]  }
  0xa9   : > { %12413 = vmatpush3.bf16.msra.mxu0 %v13874_v20  ;;  %v13924_v20 = vld [vmem:[%s15156_s16 + $0x320] sm:$0xff]  }
  0xaa   : > { %12435 = vmatpush3.bf16.msra.mxu1 %v13875_v23  ;;  %12442 = vmatprep.subr.bf16.mxu0 %v13877_v25  ;;  %v13927_v23 = vld [vmem:[%s15156_s16 + $0x3d8] sm:$0xff]  }
  0xab   : > { %12464 = vmatprep.subr.bf16.mxu1 %v13878_v26  ;;  %v13929_v25 = vld [vmem:[%s15156_s16 + $0x398] sm:$0xff]   ;;  %v13930_v26 = vld [vmem:[%s15156_s16 + $0x350] sm:$0xff]  }
  0xac   : > { %8885 = vmatmul.mubr.bf16.vlgmr.msra.gmra.mxu0 %v975_v28  ;;  %v13932_v28 = vld [vmem:[%s15156_s16 + $0x310] sm:$0xff]  }
  0xad   : > { %8925 = vmatmul.mubr.bf16.vlgmr.msra.gmra.mxu1 %v977_v29  ;;  %12443 = vmatpush3.bf16.msra.mxu0 %v13879_v27  ;;  %v13931_v27 = vld [vmem:[%s15156_s16 + $0x3d0] sm:$0xff]  }
  0xae   : > { %12465 = vmatpush3.bf16.msra.mxu1 %v13880_v30  ;;  %12444 = vmatprep.subr.bf16.mxu0 %v13881_v31  ;;  %v13933_v29 = vld [vmem:[%s15156_s16 + $0x390] sm:$0xff]   ;;  %v13934_v30 = vld [vmem:[%s15156_s16 + $0x348] sm:$0xff]  }
  0xaf   : > { %12466 = vmatprep.subr.bf16.mxu1 %v13882_v32  ;;  %8964 = vmatprep.mubr.bf16.mxu0 %v980_v0  ;;  %v13935_v31 = vld [vmem:[%s15156_s16 + $0x3c8] sm:$0xff]   ;;  %v13958_v0 = vld [vmem:[%s15156_s16 + $0x4a0] sm:$0xff]  }
  0xb0   : > { %9004 = vmatprep.mubr.bf16.mxu1 %v982_v3  ;;  %v13936_v32 = vld [vmem:[%s15156_s16 + $0x308] sm:$0xff]   ;;  %v13961_v3 = vld [vmem:[%s15156_s16 + $0x418] sm:$0xff]  }
  0xb1   : > { %12445 = vmatpush3.bf16.msra.mxu0 %v13883_v33  ;;  %v284_v33 = vld [vmem:[%s15205_s15 + $0x18] sm:$0xff] }
  0xb2   : > { %12467 = vmatpush3.bf16.msra.mxu1 %v13884_v34  ;;  %12446 = vmatprep.subr.bf16.mxu0 %v13885_v35  ;;  %v13937_v34 = vld [vmem:[%s15156_s16 + $0x388] sm:$0xff]   ;;  %v399_v35 = vrot.slane %v284_v33, %v15210_v42 }
  0xb3   : > { %12468 = vmatprep.subr.bf16.mxu1 %v13886_v36  ;;  %v392_v36 = vcombine.high %v284_v33, %v284_v33  ;;  %v13982_v33 = vld [vmem:[%s15156_s16 + $0x530] sm:$0xff]  }
  0xb5   : > { %12447 = vmatpush3.bf16.msra.mxu0 %v13887_v37  ;;  %v13938_v37 = vld [vmem:[%s15156_s16 + $0x340] sm:$0xff]  }
  0xb6   : > { %12469 = vmatpush3.bf16.msra.mxu1 %v13888_v38  ;;  %12448 = vmatprep.subr.bf16.mxu0 %v13889_v39  ;;  %v13939_v38 = vld [vmem:[%s15156_s16 + $0x3c0] sm:$0xff]   ;;  %v407_v39 = vcombine.high %v399_v35, %v399_v35 }
  0xb7   : > { %12470 = vmatprep.subr.bf16.mxu1 %v13890_v40  ;;  %v406_v40 = vrot.slane %v392_v36, %v15210_v42  ;;  %v13985_v36 = vld [vmem:[%s15156_s16 + $0x5e8] sm:$0xff]  }
  0xb9   : > { %12449 = vmatpush3.bf16.msra.mxu0 %v13891_v41  ;;  %v13940_v41 = vld [vmem:[%s15156_s16 + $0x300] sm:$0xff]  }
  0xba   : > { %12471 = vmatpush3.bf16.msra.mxu1 %v13892_v43  ;;  %12450 = vmatprep.subr.bf16.mxu0 %v13893_v44  ;;  %v13941_v43 = vld [vmem:[%s15156_s16 + $0x380] sm:$0xff]   ;;  %v984_v44 = vpack.c.bf16 %v407_v39, %v407_v39 }
  0xbb   : > { %12472 = vmatprep.subr.bf16.mxu1 %v13894_v45  ;;  %v408_v45 = vcombine.high %v406_v40, %v406_v40  ;;  %v13988_v39 = vld [vmem:[%s15156_s16 + $0x560] sm:$0xff]  }
  0xbd   : > { %12451 = vmatpush3.bf16.msra.mxu0 %v13895_v46  ;;  %v13943_v46 = vld [vmem:[%s15156_s16 + $0x478] sm:$0xff]  }
  0xbe   : > { %12473 = vmatpush3.bf16.msra.mxu1 %v13896_v47  ;;  %12452 = vmatprep.subr.bf16.mxu0 %v13897_v48  ;;  %v986_v47 = vpack.c.bf16 %v408_v45, %v408_v45  ;;  %v13944_v48 = vld [vmem:[%s15156_s16 + $0x4f8] sm:$0xff]  }
  0xbf   : > { %12474 = vmatprep.subr.bf16.mxu1 %v13898_v49  ;;  %v13945_v49 = vld [vmem:[%s15156_s16 + $0x438] sm:$0xff]  }
  0xc0   : > { %v13993_v45 = vld [vmem:[%s15156_s16 + $0x5d8] sm:$0xff]  }
  0xc1   : > { %12453 = vmatpush3.bf16.msra.mxu0 %v13899_v50  ;;  %v983_v50 = vpack.c.bf16 %v399_v35, %v399_v35  ;;  %v13984_v35 = vld [vmem:[%s15156_s16 + $0x568] sm:$0xff]  }
  0xc2   : > { %12475 = vmatpush3.bf16.msra.mxu1 %v13900_v51  ;;  %12454 = vmatprep.subr.bf16.mxu0 %v13901_v52  ;;  %v985_v51 = vpack.c.bf16 %v406_v40, %v406_v40  ;;  %v13946_v52 = vld [vmem:[%s15156_s16 + $0x4b8] sm:$0xff]   ;;  %v13989_v40 = vld [vmem:[%s15156_s16 + $0x5e0] sm:$0xff]  }
  0xc3   : > { %12476 = vmatprep.subr.bf16.mxu1 %v13902_v53  ;;  %v13947_v53 = vld [vmem:[%s15156_s16 + $0x470] sm:$0xff]  }
  0xc5   : > { %12455 = vmatpush3.bf16.msra.mxu0 %v13903_v55  ;;  %v13949_v55 = vld [vmem:[%s15156_s16 + $0x430] sm:$0xff]  }
  0xc6   : > { %12477 = vmatpush3.bf16.msra.mxu1 %v13904_v58  ;;  %12456 = vmatprep.subr.bf16.mxu0 %v13905_v59  ;;  %v13952_v58 = vld [vmem:[%s15156_s16 + $0x4e8] sm:$0xff]  }
  0xc7   : > { %12478 = vmatprep.subr.bf16.mxu1 %v13906_v62  ;;  %v13953_v59 = vld [vmem:[%s15156_s16 + $0x428] sm:$0xff]   ;;  %v13956_v62 = vld [vmem:[%s15156_s16 + $0x4e0] sm:$0xff]  }
  0xc9   : > { %12457 = vmatpush3.bf16.msra.mxu0 %v13907_v63  ;;  %v13957_v63 = vld [vmem:[%s15156_s16 + $0x420] sm:$0xff]  }
  0xca   : > { %12479 = vmatpush3.bf16.msra.mxu1 %v13908_v2  ;;  %12486 = vmatprep.subr.bf16.mxu0 %v13910_v4  ;;  %v13960_v2 = vld [vmem:[%s15156_s16 + $0x4d8] sm:$0xff]  }
  0xcb   : > { %12508 = vmatprep.subr.bf16.mxu1 %v13911_v5  ;;  %v13962_v4 = vld [vmem:[%s15156_s16 + $0x498] sm:$0xff]   ;;  %v13963_v5 = vld [vmem:[%s15156_s16 + $0x450] sm:$0xff]  }
  0xcc   : > { %8965 = vmatmul.mubr.bf16.vlgmr.msra.gmra.mxu0 %v979_v7  ;;  %v13965_v7 = vld [vmem:[%s15156_s16 + $0x410] sm:$0xff]  }
  0xcd   : > { %9005 = vmatmul.mubr.bf16.vlgmr.msra.gmra.mxu1 %v981_v8  ;;  %12487 = vmatpush3.bf16.msra.mxu0 %v13912_v6  ;;  %v13964_v6 = vld [vmem:[%s15156_s16 + $0x4d0] sm:$0xff]  }
  0xce   : > { %12509 = vmatpush3.bf16.msra.mxu1 %v13913_v9  ;;  %12488 = vmatprep.subr.bf16.mxu0 %v13914_v10  ;;  %v13966_v8 = vld [vmem:[%s15156_s16 + $0x490] sm:$0xff]   ;;  %v13967_v9 = vld [vmem:[%s15156_s16 + $0x448] sm:$0xff]  }
  0xcf   : > { %12510 = vmatprep.subr.bf16.mxu1 %v13915_v11  ;;  %9044 = vmatprep.mubr.bf16.mxu0 %v984_v44  ;;  %v13968_v10 = vld [vmem:[%s15156_s16 + $0x4c8] sm:$0xff]   ;;  %v13992_v44 = vld [vmem:[%s15156_s16 + $0x558] sm:$0xff]  }
  0xd0   : > { %9084 = vmatprep.mubr.bf16.mxu1 %v986_v47  ;;  %v13969_v11 = vld [vmem:[%s15156_s16 + $0x408] sm:$0xff]   ;;  %v13995_v47 = vld [vmem:[%s15156_s16 + $0x598] sm:$0xff]  }
  0xd1   : > { %12489 = vmatpush3.bf16.msra.mxu0 %v13916_v12  ;;  %v285_v12 = vld [vmem:[%s15205_s15 + $0x20] sm:$0xff] }
  0xd2   : > { %12511 = vmatpush3.bf16.msra.mxu1 %v13917_v13  ;;  %12490 = vmatprep.subr.bf16.mxu0 %v13918_v14  ;;  %v13970_v13 = vld [vmem:[%s15156_s16 + $0x488] sm:$0xff]   ;;  %v416_v14 = vrot.slane %v285_v12, %v15210_v42 }
  0xd3   : > { %12512 = vmatprep.subr.bf16.mxu1 %v13919_v15  ;;  %v409_v15 = vcombine.high %v285_v12, %v285_v12  ;;  %v14015_v12 = vld [vmem:[%s15156_s16 + $0x630] sm:$0xff]  }
  0xd5   : > { %12491 = vmatpush3.bf16.msra.mxu0 %v13920_v16  ;;  %v13971_v16 = vld [vmem:[%s15156_s16 + $0x440] sm:$0xff]  }
  0xd6   : > { %12513 = vmatpush3.bf16.msra.mxu1 %v13921_v17  ;;  %12492 = vmatprep.subr.bf16.mxu0 %v13922_v18  ;;  %v13972_v17 = vld [vmem:[%s15156_s16 + $0x4c0] sm:$0xff]   ;;  %v424_v18 = vcombine.high %v416_v14, %v416_v14 }
  0xd7   : > { %12514 = vmatprep.subr.bf16.mxu1 %v13923_v19  ;;  %v423_v19 = vrot.slane %v409_v15, %v15210_v42  ;;  %v14018_v15 = vld [vmem:[%s15156_s16 + $0x6e8] sm:$0xff]  }
  0xd9   : > { %12493 = vmatpush3.bf16.msra.mxu0 %v13924_v20  ;;  %v13973_v20 = vld [vmem:[%s15156_s16 + $0x400] sm:$0xff]  }
  0xda   : > { %12515 = vmatpush3.bf16.msra.mxu1 %v13925_v21  ;;  %12494 = vmatprep.subr.bf16.mxu0 %v13926_v22  ;;  %v13974_v21 = vld [vmem:[%s15156_s16 + $0x480] sm:$0xff]   ;;  %v988_v22 = vpack.c.bf16 %v424_v18, %v424_v18 }
  0xdb   : > { %12516 = vmatprep.subr.bf16.mxu1 %v13927_v23  ;;  %v425_v23 = vcombine.high %v423_v19, %v423_v19  ;;  %v14021_v18 = vld [vmem:[%s15156_s16 + $0x660] sm:$0xff]  }
  0xdd   : > { %12495 = vmatpush3.bf16.msra.mxu0 %v13928_v24  ;;  %v13976_v24 = vld [vmem:[%s15156_s16 + $0x578] sm:$0xff]  }
  0xde   : > { %12517 = vmatpush3.bf16.msra.mxu1 %v13929_v25  ;;  %12496 = vmatprep.subr.bf16.mxu0 %v13930_v26  ;;  %v990_v25 = vpack.c.bf16 %v425_v23, %v425_v23  ;;  %v13977_v26 = vld [vmem:[%s15156_s16 + $0x5f8] sm:$0xff]  }
  0xdf   : > { %12518 = vmatprep.subr.bf16.mxu1 %v13931_v27  ;;  %v13978_v27 = vld [vmem:[%s15156_s16 + $0x538] sm:$0xff]  }
  0xe0   : > { %v14026_v23 = vld [vmem:[%s15156_s16 + $0x6d8] sm:$0xff]  }
  0xe1   : > { %12497 = vmatpush3.bf16.msra.mxu0 %v13932_v28  ;;  %v987_v28 = vpack.c.bf16 %v416_v14, %v416_v14  ;;  %v14017_v14 = vld [vmem:[%s15156_s16 + $0x668] sm:$0xff]  }
  0xe2   : > { %12519 = vmatpush3.bf16.msra.mxu1 %v13933_v29  ;;  %12498 = vmatprep.subr.bf16.mxu0 %v13934_v30  ;;  %v989_v29 = vpack.c.bf16 %v423_v19, %v423_v19  ;;  %v13979_v30 = vld [vmem:[%s15156_s16 + $0x5b8] sm:$0xff]   ;;  %v14022_v19 = vld [vmem:[%s15156_s16 + $0x6e0] sm:$0xff]  }
  0xe3   : > { %12520 = vmatprep.subr.bf16.mxu1 %v13935_v31  ;;  %v13980_v31 = vld [vmem:[%s15156_s16 + $0x570] sm:$0xff]  }
  0xe5   : > { %12499 = vmatpush3.bf16.msra.mxu0 %v13936_v32  ;;  %v13981_v32 = vld [vmem:[%s15156_s16 + $0x5f0] sm:$0xff]  }
  0xe6   : > { %12521 = vmatpush3.bf16.msra.mxu1 %v13937_v34  ;;  %12500 = vmatprep.subr.bf16.mxu0 %v13938_v37  ;;  %v13983_v34 = vld [vmem:[%s15156_s16 + $0x5b0] sm:$0xff]   ;;  %v13986_v37 = vld [vmem:[%s15156_s16 + $0x528] sm:$0xff]  }
  0xe7   : > { %12522 = vmatprep.subr.bf16.mxu1 %v13939_v38  ;;  %v13987_v38 = vld [vmem:[%s15156_s16 + $0x5a8] sm:$0xff]  }
  0xe9   : > { %12501 = vmatpush3.bf16.msra.mxu0 %v13940_v41  ;;  %v13990_v41 = vld [vmem:[%s15156_s16 + $0x520] sm:$0xff]  }
  0xea   : > { %12523 = vmatpush3.bf16.msra.mxu1 %v13941_v43  ;;  %12530 = vmatprep.subr.bf16.mxu0 %v13943_v46  ;;  %v13991_v43 = vld [vmem:[%s15156_s16 + $0x5a0] sm:$0xff]   ;;  %v13994_v46 = vld [vmem:[%s15156_s16 + $0x518] sm:$0xff]  }
  0xeb   : > { %12552 = vmatprep.subr.bf16.mxu1 %v13944_v48  ;;  %v13996_v48 = vld [vmem:[%s15156_s16 + $0x550] sm:$0xff]  }
  0xec   : > { %9045 = vmatmul.mubr.bf16.vlgmr.msra.gmra.mxu0 %v983_v50  ;;  %v13998_v50 = vld [vmem:[%s15156_s16 + $0x510] sm:$0xff]  }
  0xed   : > { %9085 = vmatmul.mubr.bf16.vlgmr.msra.gmra.mxu1 %v985_v51  ;;  %12531 = vmatpush3.bf16.msra.mxu0 %v13945_v49  ;;  %v13997_v49 = vld [vmem:[%s15156_s16 + $0x5d0] sm:$0xff]  }
  0xee   : > { %12553 = vmatpush3.bf16.msra.mxu1 %v13946_v52  ;;  %12532 = vmatprep.subr.bf16.mxu0 %v13947_v53  ;;  %v13999_v51 = vld [vmem:[%s15156_s16 + $0x590] sm:$0xff]   ;;  %v14000_v52 = vld [vmem:[%s15156_s16 + $0x548] sm:$0xff]  }
  0xef   : > { %12554 = vmatprep.subr.bf16.mxu1 %v13948_v54  ;;  %9124 = vmatprep.mubr.bf16.mxu0 %v988_v22  ;;  %v14001_v53 = vld [vmem:[%s15156_s16 + $0x5c8] sm:$0xff]   ;;  %v14025_v22 = vld [vmem:[%s15156_s16 + $0x658] sm:$0xff]  }
  0xf0   : > { %9164 = vmatprep.mubr.bf16.mxu1 %v990_v25  ;;  %v14002_v54 = vld [vmem:[%s15156_s16 + $0x508] sm:$0xff]   ;;  %v14028_v25 = vld [vmem:[%s15156_s16 + $0x698] sm:$0xff]  }
  0xf1   : > { %12533 = vmatpush3.bf16.msra.mxu0 %v13949_v55  ;;  %v286_v55 = vld [vmem:[%s15205_s15 + $0x28] sm:$0xff] }
  0xf2   : > { %12555 = vmatpush3.bf16.msra.mxu1 %v13950_v56  ;;  %12534 = vmatprep.subr.bf16.mxu0 %v13951_v57  ;;  %v14003_v56 = vld [vmem:[%s15156_s16 + $0x588] sm:$0xff]   ;;  %v433_v57 = vrot.slane %v286_v55, %v15210_v42 }
  0xf3   : > { %12556 = vmatprep.subr.bf16.mxu1 %v13952_v58  ;;  %v426_v58 = vcombine.high %v286_v55, %v286_v55  ;;  %v14048_v55 = vld [vmem:[%s15156_s16 + $0x730] sm:$0xff]  }
  0xf5   : > { %12535 = vmatpush3.bf16.msra.mxu0 %v13953_v59  ;;  %v14004_v59 = vld [vmem:[%s15156_s16 + $0x540] sm:$0xff]  }
  0xf6   : > { %12557 = vmatpush3.bf16.msra.mxu1 %v13954_v60  ;;  %12536 = vmatprep.subr.bf16.mxu0 %v13955_v61  ;;  %v14005_v60 = vld [vmem:[%s15156_s16 + $0x5c0] sm:$0xff]   ;;  %v441_v61 = vcombine.high %v433_v57, %v433_v57 }
  0xf7   : > { %12558 = vmatprep.subr.bf16.mxu1 %v13956_v62  ;;  %v440_v62 = vrot.slane %v426_v58, %v15210_v42  ;;  %v14049_v58 = vld [vmem:[%s15156_s16 + $0x7b0] sm:$0xff]  }
  0xf9   : > { %12537 = vmatpush3.bf16.msra.mxu0 %v13957_v63  ;;  %v14006_v63 = vld [vmem:[%s15156_s16 + $0x500] sm:$0xff]  }
  0xfa   : > { %12559 = vmatpush3.bf16.msra.mxu1 %v13958_v0  ;;  %12538 = vmatprep.subr.bf16.mxu0 %v13959_v1  ;;  %v14007_v0 = vld [vmem:[%s15156_s16 + $0x580] sm:$0xff]   ;;  %v992_v1 = vpack.c.bf16 %v441_v61, %v441_v61 }
  0xfb   : > { %12560 = vmatprep.subr.bf16.mxu1 %v13960_v2  ;;  %v442_v2 = vcombine.high %v440_v62, %v440_v62 }
  0xfd   : > { %12539 = vmatpush3.bf16.msra.mxu0 %v13961_v3  ;;  %v14009_v3 = vld [vmem:[%s15156_s16 + $0x678] sm:$0xff]  }
  0xfe   : > { %12561 = vmatpush3.bf16.msra.mxu1 %v13962_v4  ;;  %12540 = vmatprep.subr.bf16.mxu0 %v13963_v5  ;;  %v994_v4 = vpack.c.bf16 %v442_v2, %v442_v2  ;;  %v14010_v5 = vld [vmem:[%s15156_s16 + $0x6f8] sm:$0xff]  }
  0xff   : > { %12562 = vmatprep.subr.bf16.mxu1 %v13964_v6  ;;  %v14011_v6 = vld [vmem:[%s15156_s16 + $0x638] sm:$0xff]  }
 0x101   : > { %12541 = vmatpush3.bf16.msra.mxu0 %v13965_v7  ;;  %v991_v7 = vpack.c.bf16 %v433_v57, %v433_v57 }
 0x102   : > { %12563 = vmatpush3.bf16.msra.mxu1 %v13966_v8  ;;  %12542 = vmatprep.subr.bf16.mxu0 %v13967_v9  ;;  %v993_v8 = vpack.c.bf16 %v440_v62, %v440_v62  ;;  %v14012_v9 = vld [vmem:[%s15156_s16 + $0x6b8] sm:$0xff]   ;;  %v14051_v62 = vld [vmem:[%s15156_s16 + $0x7e8] sm:$0xff]  }
 0x103   : > { %12564 = vmatprep.subr.bf16.mxu1 %v13968_v10  ;;  %v14013_v10 = vld [vmem:[%s15156_s16 + $0x670] sm:$0xff]  }
 0x105   : > { %12543 = vmatpush3.bf16.msra.mxu0 %v13969_v11  ;;  %v14014_v11 = vld [vmem:[%s15156_s16 + $0x6f0] sm:$0xff]  }
 0x106   : > { %12565 = vmatpush3.bf16.msra.mxu1 %v13970_v13  ;;  %12544 = vmatprep.subr.bf16.mxu0 %v13971_v16  ;;  %v14016_v13 = vld [vmem:[%s15156_s16 + $0x6b0] sm:$0xff]   ;;  %v14019_v16 = vld [vmem:[%s15156_s16 + $0x628] sm:$0xff]  }
 0x107   : > { %12566 = vmatprep.subr.bf16.mxu1 %v13972_v17  ;;  %v14020_v17 = vld [vmem:[%s15156_s16 + $0x6a8] sm:$0xff]  }
 0x109   : > { %12545 = vmatpush3.bf16.msra.mxu0 %v13973_v20  ;;  %v14023_v20 = vld [vmem:[%s15156_s16 + $0x620] sm:$0xff]  }
 0x10a   : > { %12567 = vmatpush3.bf16.msra.mxu1 %v13974_v21  ;;  %12574 = vmatprep.subr.bf16.mxu0 %v13976_v24  ;;  %v14024_v21 = vld [vmem:[%s15156_s16 + $0x6a0] sm:$0xff]   ;;  %v14027_v24 = vld [vmem:[%s15156_s16 + $0x618] sm:$0xff]  }
 0x10b   : > { %12596 = vmatprep.subr.bf16.mxu1 %v13977_v26  ;;  %v14029_v26 = vld [vmem:[%s15156_s16 + $0x650] sm:$0xff]  }
 0x10c   : > { %9125 = vmatmul.mubr.bf16.vlgmr.msra.gmra.mxu0 %v987_v28  ;;  %v14031_v28 = vld [vmem:[%s15156_s16 + $0x610] sm:$0xff]  }
 0x10d   : > { %9165 = vmatmul.mubr.bf16.vlgmr.msra.gmra.mxu1 %v989_v29  ;;  %12575 = vmatpush3.bf16.msra.mxu0 %v13978_v27  ;;  %v14030_v27 = vld [vmem:[%s15156_s16 + $0x6d0] sm:$0xff]  }
 0x10e   : > { %12597 = vmatpush3.bf16.msra.mxu1 %v13979_v30  ;;  %12576 = vmatprep.subr.bf16.mxu0 %v13980_v31  ;;  %v14032_v29 = vld [vmem:[%s15156_s16 + $0x690] sm:$0xff]   ;;  %v14033_v30 = vld [vmem:[%s15156_s16 + $0x648] sm:$0xff]  }
 0x10f   : > { %12598 = vmatprep.subr.bf16.mxu1 %v13981_v32  ;;  %9204 = vmatprep.mubr.bf16.mxu0 %v992_v1  ;;  %v14034_v31 = vld [vmem:[%s15156_s16 + $0x6c8] sm:$0xff]  }
 0x110   : > { %9244 = vmatprep.mubr.bf16.mxu1 %v994_v4  ;;  %v14035_v32 = vld [vmem:[%s15156_s16 + $0x608] sm:$0xff]  }
 0x111   : > { %12577 = vmatpush3.bf16.msra.mxu0 %v13982_v33  ;;  %v14036_v33 = vld [vmem:[%s15156_s16 + $0x688] sm:$0xff]  }
 0x112   : > { %12599 = vmatpush3.bf16.msra.mxu1 %v13983_v34  ;;  %12578 = vmatprep.subr.bf16.mxu0 %v13984_v35  ;;  %v287_v34 = vld [vmem:[%s15205_s15 + $0x30] sm:$0xff]  ;;  %v14037_v35 = vld [vmem:[%s15156_s16 + $0x640] sm:$0xff]  }
 0x113   : > { %12600 = vmatprep.subr.bf16.mxu1 %v13985_v36  ;;  %v450_v36 = vrot.slane %v287_v34, %v15210_v42  ;;  %v14052_v1 = vld [vmem:[%s15156_s16 + $0x728] sm:$0xff]  }
 0x114   : > { %v14053_v4 = vld [vmem:[%s15156_s16 + $0x7a8] sm:$0xff]  }
 0x115   : > { %12579 = vmatpush3.bf16.msra.mxu0 %v13986_v37  ;;  %v443_v37 = vcombine.high %v287_v34, %v287_v34 }
 0x116   : > { %12601 = vmatpush3.bf16.msra.mxu1 %v13987_v38  ;;  %12580 = vmatprep.subr.bf16.mxu0 %v13988_v39  ;;  %v14038_v38 = vld [vmem:[%s15156_s16 + $0x6c0] sm:$0xff]  }
 0x117   : > { %12602 = vmatprep.subr.bf16.mxu1 %v13989_v40  ;;  %v14039_v39 = vld [vmem:[%s15156_s16 + $0x600] sm:$0xff]   ;;  %v458_v40 = vcombine.high %v450_v36, %v450_v36 }
 0x119   : > { %12581 = vmatpush3.bf16.msra.mxu0 %v13990_v41  ;;  %v457_v41 = vrot.slane %v443_v37, %v15210_v42 }
 0x11a   : > { %12603 = vmatpush3.bf16.msra.mxu1 %v13991_v43  ;;  %12582 = vmatprep.subr.bf16.mxu0 %v13992_v44  ;;  %v14040_v43 = vld [vmem:[%s15156_s16 + $0x680] sm:$0xff]   ;;  %v996_v44 = vpack.c.bf16 %v458_v40, %v458_v40 }
 0x11b   : > { %12604 = vmatprep.subr.bf16.mxu1 %v13993_v45  ;;  %v459_v45 = vcombine.high %v457_v41, %v457_v41 }
 0x11d   : > { %12583 = vmatpush3.bf16.msra.mxu0 %v13994_v46  ;;  %v14042_v46 = vld [vmem:[%s15156_s16 + $0x778] sm:$0xff]  }
 0x11e   : > { %12605 = vmatpush3.bf16.msra.mxu1 %v13995_v47  ;;  %12584 = vmatprep.subr.bf16.mxu0 %v13996_v48  ;;  %v14043_v47 = vld [vmem:[%s15156_s16 + $0x7f8] sm:$0xff]   ;;  %v998_v48 = vpack.c.bf16 %v459_v45, %v459_v45  ;;  %v14081_v45 = vld [vmem:[%s15156_s16 + $0x830] sm:$0xff]  }
 0x11f   : > { %12606 = vmatprep.subr.bf16.mxu1 %v13997_v49  ;;  %v14044_v49 = vld [vmem:[%s15156_s16 + $0x738] sm:$0xff]  }
 0x121   : > { %12585 = vmatpush3.bf16.msra.mxu0 %v13998_v50  ;;  %v995_v50 = vpack.c.bf16 %v450_v36, %v450_v36  ;;  %v14076_v36 = vld [vmem:[%s15156_s16 + $0x8f8] sm:$0xff]  }
 0x122   : > { %12607 = vmatpush3.bf16.msra.mxu1 %v13999_v51  ;;  %12586 = vmatprep.subr.bf16.mxu0 %v14000_v52  ;;  %v997_v51 = vpack.c.bf16 %v457_v41, %v457_v41  ;;  %v14045_v52 = vld [vmem:[%s15156_s16 + $0x7b8] sm:$0xff]  }
 0x123   : > { %12608 = vmatprep.subr.bf16.mxu1 %v14001_v53  ;;  %v14046_v53 = vld [vmem:[%s15156_s16 + $0x770] sm:$0xff]   ;;  %v14078_v41 = vld [vmem:[%s15156_s16 + $0x8b8] sm:$0xff]  }
 0x125   : > { %12587 = vmatpush3.bf16.msra.mxu0 %v14002_v54  ;;  %v14047_v54 = vld [vmem:[%s15156_s16 + $0x7f0] sm:$0xff]  }
 0x126   : > { %12609 = vmatpush3.bf16.msra.mxu1 %v14003_v56  ;;  %12588 = vmatprep.subr.bf16.mxu0 %v14004_v59  ;;  %v14050_v59 = vld [vmem:[%s15156_s16 + $0x768] sm:$0xff]  }
 0x127   : > { %12610 = vmatprep.subr.bf16.mxu1 %v14005_v60 }
 0x129   : > { %12589 = vmatpush3.bf16.msra.mxu0 %v14006_v63 }
 0x12a   : > { %12611 = vmatpush3.bf16.msra.mxu1 %v14007_v0  ;;  %12618 = vmatprep.subr.bf16.mxu0 %v14009_v3 }
 0x12b   : > { %12640 = vmatprep.subr.bf16.mxu1 %v14010_v5 }
 0x12c   : > { %9205 = vmatmul.mubr.bf16.vlgmr.msra.gmra.mxu0 %v991_v7 }
 0x12d   : > { %9245 = vmatmul.mubr.bf16.vlgmr.msra.gmra.mxu1 %v993_v8  ;;  %12619 = vmatpush3.bf16.msra.mxu0 %v14011_v6  ;;  %v14054_v6 = vld [vmem:[%s15156_s16 + $0x760] sm:$0xff]  }
 0x12e   : > { %12641 = vmatpush3.bf16.msra.mxu1 %v14012_v9  ;;  %12620 = vmatprep.subr.bf16.mxu0 %v14013_v10  ;;  %v14055_v9 = vld [vmem:[%s15156_s16 + $0x7e0] sm:$0xff]  }
 0x12f   : > { %12642 = vmatprep.subr.bf16.mxu1 %v14014_v11  ;;  %9284 = vmatprep.mubr.bf16.mxu0 %v996_v44  ;;  %v14056_v10 = vld [vmem:[%s15156_s16 + $0x720] sm:$0xff]   ;;  %v14080_v44 = vld [vmem:[%s15156_s16 + $0x8f0] sm:$0xff]  }
 0x130   : > { %9324 = vmatprep.mubr.bf16.mxu1 %v998_v48  ;;  %v14057_v11 = vld [vmem:[%s15156_s16 + $0x7a0] sm:$0xff]   ;;  %v14082_v48 = vld [vmem:[%s15156_s16 + $0x8b0] sm:$0xff]  }
 0x131   : > { %12621 = vmatpush3.bf16.msra.mxu0 %v14015_v12  ;;  %v14058_v12 = vld [vmem:[%s15156_s16 + $0x758] sm:$0xff]  }
 0x132   : > { %12643 = vmatpush3.bf16.msra.mxu1 %v14016_v13  ;;  %12622 = vmatprep.subr.bf16.mxu0 %v14017_v14  ;;  %v14059_v13 = vld [vmem:[%s15156_s16 + $0x7d8] sm:$0xff]  }
 0x133   : > { %12644 = vmatprep.subr.bf16.mxu1 %v14018_v15  ;;  %v14060_v14 = vld [vmem:[%s15156_s16 + $0x718] sm:$0xff]  }
 0x134   : > { %v14061_v15 = vld [vmem:[%s15156_s16 + $0x798] sm:$0xff]  }
 0x135   : > { %12623 = vmatpush3.bf16.msra.mxu0 %v14019_v16  ;;  %v14062_v16 = vld [vmem:[%s15156_s16 + $0x750] sm:$0xff]  }
 0x136   : > { %12645 = vmatpush3.bf16.msra.mxu1 %v14020_v17  ;;  %12624 = vmatprep.subr.bf16.mxu0 %v14021_v18  ;;  %v14063_v17 = vld [vmem:[%s15156_s16 + $0x7d0] sm:$0xff]  }
 0x137   : > { %12646 = vmatprep.subr.bf16.mxu1 %v14022_v19  ;;  %v14064_v18 = vld [vmem:[%s15156_s16 + $0x710] sm:$0xff]  }
 0x138   : > { %v14065_v19 = vld [vmem:[%s15156_s16 + $0x790] sm:$0xff]  }
 0x139   : > { %12625 = vmatpush3.bf16.msra.mxu0 %v14023_v20  ;;  %v14066_v20 = vld [vmem:[%s15156_s16 + $0x748] sm:$0xff]  }
 0x13a   : > { %12647 = vmatpush3.bf16.msra.mxu1 %v14024_v21  ;;  %12626 = vmatprep.subr.bf16.mxu0 %v14025_v22  ;;  %v14067_v21 = vld [vmem:[%s15156_s16 + $0x7c8] sm:$0xff]  }
 0x13b   : > { %12648 = vmatprep.subr.bf16.mxu1 %v14026_v23  ;;  %v14068_v22 = vld [vmem:[%s15156_s16 + $0x708] sm:$0xff]  }
 0x13c   : > { %v14069_v23 = vld [vmem:[%s15156_s16 + $0x788] sm:$0xff]  }
 0x13d   : > { %12627 = vmatpush3.bf16.msra.mxu0 %v14027_v24  ;;  %v288_v24 = vld [vmem:[%s15205_s15 + $0x38] sm:$0xff] }
 0x13e   : > { %12649 = vmatpush3.bf16.msra.mxu1 %v14028_v25  ;;  %12628 = vmatprep.subr.bf16.mxu0 %v14029_v26  ;;  %v14070_v25 = vld [vmem:[%s15156_s16 + $0x740] sm:$0xff]   ;;  %v467_v26 = vrot.slane %v288_v24, %v15210_v42 }
 0x13f   : > { %12650 = vmatprep.subr.bf16.mxu1 %v14030_v27  ;;  %v460_v27 = vcombine.high %v288_v24, %v288_v24 }
 0x141   : > { %12629 = vmatpush3.bf16.msra.mxu0 %v14031_v28  ;;  %v14071_v28 = vld [vmem:[%s15156_s16 + $0x7c0] sm:$0xff]  }
 0x142   : > { %12651 = vmatpush3.bf16.msra.mxu1 %v14032_v29  ;;  %12630 = vmatprep.subr.bf16.mxu0 %v14033_v30  ;;  %v14072_v29 = vld [vmem:[%s15156_s16 + $0x700] sm:$0xff]   ;;  %v475_v30 = vcombine.high %v467_v26, %v467_v26 }
 0x143   : > { %12652 = vmatprep.subr.bf16.mxu1 %v14034_v31  ;;  %v474_v31 = vrot.slane %v460_v27, %v15210_v42  ;;  %v14109_v27 = vld [vmem:[%s15156_s16 + $0x9f8] sm:$0xff]  }
 0x145   : > { %12631 = vmatpush3.bf16.msra.mxu0 %v14035_v32  ;;  %v14073_v32 = vld [vmem:[%s15156_s16 + $0x780] sm:$0xff]   ;;  %v476_v34 = vcombine.high %v474_v31, %v474_v31  ;;  %v1001_v40 = vpack.c.bf16 %v474_v31, %v474_v31 }
 0x146   : > { %12653 = vmatpush3.bf16.msra.mxu1 %v14036_v33  ;;  %12632 = vmatprep.subr.bf16.mxu0 %v14037_v35  ;;  %v1000_v33 = vpack.c.bf16 %v475_v30, %v475_v30  ;;  %v14075_v35 = vld [vmem:[%s15156_s16 + $0x878] sm:$0xff]  }
 0x147   : > { %12654 = vmatprep.subr.bf16.mxu1 %v14038_v38  ;;  %v1002_v37 = vpack.c.bf16 %v476_v34, %v476_v34  ;;  %v14077_v38 = vld [vmem:[%s15156_s16 + $0x838] sm:$0xff]   ;;  %v14113_v34 = vld [vmem:[%s15156_s16 + $0x9f0] sm:$0xff]  }
 0x149   : > { %12633 = vmatpush3.bf16.msra.mxu0 %v14039_v39  ;;  %v999_v39 = vpack.c.bf16 %v467_v26, %v467_v26  ;;  %v14108_v26 = vld [vmem:[%s15156_s16 + $0x978] sm:$0xff]  }
 0x14a   : > { %12655 = vmatpush3.bf16.msra.mxu1 %v14040_v43  ;;  %12662 = vmatprep.subr.bf16.mxu0 %v14042_v46  ;;  %v14079_v43 = vld [vmem:[%s15156_s16 + $0x870] sm:$0xff]  }
 0x14b   : > { %12684 = vmatprep.subr.bf16.mxu1 %v14043_v47 }
 0x14c   : > { %v12370_v56 = vpop.f32.mrf.mxu0  ;;  %9285 = vmatmul.mubr.bf16.vlgmr.msra.gmra.mxu0 %v995_v50 }
 0x14d   : > { %v12392_v57 = vpop.f32.mrf.mxu1  ;;  %9325 = vmatmul.mubr.bf16.vlgmr.msra.gmra.mxu1 %v997_v51  ;;  %12663 = vmatpush3.bf16.msra.mxu0 %v14044_v49  ;;  %v14083_v49 = vld [vmem:[%s15156_s16 + $0x868] sm:$0xff]  }
 0x14e   : > { %12685 = vmatpush3.bf16.msra.mxu1 %v14045_v52  ;;  %v12371_v60 = vpop.f32.mrf.mxu0  ;;  %12664 = vmatprep.subr.bf16.mxu0 %v14046_v53  ;;  %v14084_v52 = vld [vmem:[%s15156_s16 + $0x8e8] sm:$0xff]  }
 0x14f   : > { %v12393_v61 = vpop.f32.mrf.mxu1  ;;  %12686 = vmatprep.subr.bf16.mxu1 %v14047_v54  ;;  %v12372_v63 = vadd.f32 %v12371_v60, %v12370_v56  ;;  %9364 = vmatprep.mubr.bf16.mxu0 %v1000_v33  ;;  %v14087_v60 = vld [vmem:[%s15156_s16 + $0x860] sm:$0xff]   ;;  %v14112_v33 = vld [vmem:[%s15156_s16 + $0x970] sm:$0xff]  }
 0x150   : > { %v12394_v0 = vadd.f32 %v12393_v61, %v12392_v57  ;;  %v12373_v2 = vpop.f32.mrf.mxu0  ;;  %9404 = vmatprep.mubr.bf16.mxu1 %v1002_v37 }
 0x151   : > { %v12395_v3 = vpop.f32.mrf.mxu1  ;;  %12665 = vmatpush3.bf16.msra.mxu0 %v14048_v55  ;;  %v14085_v55 = vld [vmem:[%s15156_s16 + $0x828] sm:$0xff]   ;;  %v14090_v2 = vld [vmem:[%s15156_s16 + $0x8a0] sm:$0xff]  }
 0x152   : > { %v15434_v5 = vadd.f32 %v12394_v0, %v12372_v63  ;;  %12687 = vmatpush3.bf16.msra.mxu1 %v14049_v58  ;;  %v12374_v7 = vpop.f32.mrf.mxu0  ;;  %12666 = vmatprep.subr.bf16.mxu0 %v14050_v59  ;;  %v14086_v58 = vld [vmem:[%s15156_s16 + $0x8a8] sm:$0xff]   ;;  %v14088_v63 = vld [vmem:[%s15156_s16 + $0x8e0] sm:$0xff]   ;;  %v14091_v3 = vld [vmem:[%s15156_s16 + $0x858] sm:$0xff]  }
 0x153   : > { %v12396_v8 = vpop.f32.mrf.mxu1  ;;  %12688 = vmatprep.subr.bf16.mxu1 %v14051_v62  ;;  %v14095_v7 = vld [vmem:[%s15156_s16 + $0x850] sm:$0xff]  }
 0x154   : > { %v14096_v8 = vld [vmem:[%s15156_s16 + $0x8d0] sm:$0xff]  }
 0x155   : > { %12667 = vmatpush3.bf16.msra.mxu0 %v14052_v1  ;;  %v14089_v1 = vld [vmem:[%s15156_s16 + $0x820] sm:$0xff]  }
 0x156   : > { %12689 = vmatpush3.bf16.msra.mxu1 %v14053_v4  ;;  %12668 = vmatprep.subr.bf16.mxu0 %v14054_v6  ;;  %v14092_v4 = vld [vmem:[%s15156_s16 + $0x8d8] sm:$0xff]  }
 0x157   : > { %12690 = vmatprep.subr.bf16.mxu1 %v14055_v9  ;;  %v14094_v6 = vld [vmem:[%s15156_s16 + $0x898] sm:$0xff]   ;;  %v14097_v9 = vld [vmem:[%s15156_s16 + $0x810] sm:$0xff]  }
 0x159   : > { %12669 = vmatpush3.bf16.msra.mxu0 %v14056_v10  ;;  %v14098_v10 = vld [vmem:[%s15156_s16 + $0x890] sm:$0xff]  }
 0x15a   : > { %12691 = vmatpush3.bf16.msra.mxu1 %v14057_v11  ;;  %12670 = vmatprep.subr.bf16.mxu0 %v14058_v12  ;;  %v14099_v11 = vld [vmem:[%s15156_s16 + $0x848] sm:$0xff]  }
 0x15b   : > { %12692 = vmatprep.subr.bf16.mxu1 %v14059_v13  ;;  %v14100_v12 = vld [vmem:[%s15156_s16 + $0x8c8] sm:$0xff]  }
 0x15c   : > { %v14101_v13 = vld [vmem:[%s15156_s16 + $0x808] sm:$0xff]  }
 0x15d   : > { %12671 = vmatpush3.bf16.msra.mxu0 %v14060_v14  ;;  %v14102_v14 = vld [vmem:[%s15156_s16 + $0x888] sm:$0xff]  }
 0x15e   : > { %12693 = vmatpush3.bf16.msra.mxu1 %v14061_v15  ;;  %12672 = vmatprep.subr.bf16.mxu0 %v14062_v16  ;;  %v289_v15 = vld [vmem:[%s15205_s15 + $0x40] sm:$0xff] }
 0x15f   : > { %12694 = vmatprep.subr.bf16.mxu1 %v14063_v17  ;;  %v14103_v16 = vld [vmem:[%s15156_s16 + $0x840] sm:$0xff]   ;;  %v484_v17 = vrot.slane %v289_v15, %v15210_v42 }
 0x161   : > { %12673 = vmatpush3.bf16.msra.mxu0 %v14064_v18  ;;  %v477_v18 = vcombine.high %v289_v15, %v289_v15  ;;  %v1003_v30 = vpack.c.bf16 %v484_v17, %v484_v17  ;;  %v14141_v15 = vld [vmem:[%s15156_s16 + $0xa78] sm:$0xff]  }
 0x162   : > { %12695 = vmatpush3.bf16.msra.mxu1 %v14065_v19  ;;  %12674 = vmatprep.subr.bf16.mxu0 %v14066_v20  ;;  %v14104_v19 = vld [vmem:[%s15156_s16 + $0x8c0] sm:$0xff]  }
 0x163   : > { %12696 = vmatprep.subr.bf16.mxu1 %v14067_v21  ;;  %v14105_v20 = vld [vmem:[%s15156_s16 + $0x800] sm:$0xff]   ;;  %v492_v21 = vcombine.high %v484_v17, %v484_v17 }
 0x165   : > { %12675 = vmatpush3.bf16.msra.mxu0 %v14068_v22  ;;  %v491_v22 = vrot.slane %v477_v18, %v15210_v42  ;;  %v1004_v24 = vpack.c.bf16 %v492_v21, %v492_v21  ;;  %v14142_v18 = vld [vmem:[%s15156_s16 + $0xaf8] sm:$0xff]  }
 0x166   : > { %12697 = vmatpush3.bf16.msra.mxu1 %v14069_v23  ;;  %12676 = vmatprep.subr.bf16.mxu0 %v14070_v25  ;;  %v14106_v23 = vld [vmem:[%s15156_s16 + $0x880] sm:$0xff]  }
 0x167   : > { %12698 = vmatprep.subr.bf16.mxu1 %v14071_v28  ;;  %v493_v25 = vcombine.high %v491_v22, %v491_v22  ;;  %v1005_v31 = vpack.c.bf16 %v491_v22, %v491_v22 }
 0x169   : > { %12677 = vmatpush3.bf16.msra.mxu0 %v14072_v29  ;;  %v1006_v28 = vpack.c.bf16 %v493_v25, %v493_v25  ;;  %v14110_v29 = vld [vmem:[%s15156_s16 + $0x938] sm:$0xff]   ;;  %v14146_v25 = vld [vmem:[%s15156_s16 + $0xaf0] sm:$0xff]  }
 0x16a   : > { %12699 = vmatpush3.bf16.msra.mxu1 %v14073_v32  ;;  %12706 = vmatprep.subr.bf16.mxu0 %v14075_v35  ;;  %v14111_v32 = vld [vmem:[%s15156_s16 + $0x9b8] sm:$0xff]   ;;  %v14114_v35 = vld [vmem:[%s15156_s16 + $0x930] sm:$0xff]  }
 0x16b   : > { %12728 = vmatprep.subr.bf16.mxu1 %v14076_v36 }
 0x16c   : > { %v12414_v46 = vpop.f32.mrf.mxu0  ;;  %9365 = vmatmul.mubr.bf16.vlgmr.msra.gmra.mxu0 %v999_v39  ;;  %v14116_v39 = vld [vmem:[%s15156_s16 + $0x968] sm:$0xff]  }
 0x16d   : > { %v12436_v47 = vpop.f32.mrf.mxu1  ;;  %9405 = vmatmul.mubr.bf16.vlgmr.msra.gmra.mxu1 %v1001_v40  ;;  %12707 = vmatpush3.bf16.msra.mxu0 %v14077_v38  ;;  %v14115_v38 = vld [vmem:[%s15156_s16 + $0x9b0] sm:$0xff]  }
 0x16e   : > { %12729 = vmatpush3.bf16.msra.mxu1 %v14078_v41  ;;  %v12415_v50 = vpop.f32.mrf.mxu0  ;;  %12708 = vmatprep.subr.bf16.mxu0 %v14079_v43  ;;  %v14117_v43 = vld [vmem:[%s15156_s16 + $0x9e8] sm:$0xff]  }
 0x16f   : > { %v12437_v51 = vpop.f32.mrf.mxu1  ;;  %12730 = vmatprep.subr.bf16.mxu1 %v14080_v44  ;;  %v12416_v53 = vadd.f32 %v12415_v50, %v12414_v46  ;;  %9444 = vmatprep.mubr.bf16.mxu0 %v1004_v24  ;;  %v14118_v46 = vld [vmem:[%s15156_s16 + $0x928] sm:$0xff]   ;;  %v14145_v24 = vld [vmem:[%s15156_s16 + $0xa70] sm:$0xff]  }
 0x170   : > { %v12438_v54 = vadd.f32 %v12437_v51, %v12436_v47  ;;  %v12417_v56 = vpop.f32.mrf.mxu0  ;;  %9484 = vmatprep.mubr.bf16.mxu1 %v1006_v28  ;;  %v14120_v51 = vld [vmem:[%s15156_s16 + $0x960] sm:$0xff]  }
 0x171   : > { %v12439_v57 = vpop.f32.mrf.mxu1  ;;  %v8887_v59 = vadd.f32 %v12416_v53, %v15434_v5  ;;  %12709 = vmatpush3.bf16.msra.mxu0 %v14081_v45  ;;  %v14093_v5 = vld [vmem:[%s15156_s16 + $0x818] sm:$0xff]   ;;  %v14122_v56 = vld [vmem:[%s15156_s16 + $0x920] sm:$0xff]  }
 0x172   : > { %12731 = vmatpush3.bf16.msra.mxu1 %v14082_v48  ;;  %v12418_v61 = vpop.f32.mrf.mxu0  ;;  %12710 = vmatprep.subr.bf16.mxu0 %v14083_v49  ;;  %v14119_v49 = vld [vmem:[%s15156_s16 + $0x9a8] sm:$0xff]   ;;  %v14123_v57 = vld [vmem:[%s15156_s16 + $0x9a0] sm:$0xff]  }
 0x173   : > { %v12440_v62 = vpop.f32.mrf.mxu1  ;;  %12732 = vmatprep.subr.bf16.mxu1 %v14084_v52  ;;  %v15474_v0 = vadd.f32 %v12438_v54, %v8887_v59  ;;  %v14121_v54 = vld [vmem:[%s15156_s16 + $0x9e0] sm:$0xff]   ;;  %v14125_v59 = vld [vmem:[%s15156_s16 + $0x9d8] sm:$0xff]  }
 0x174   : > { %v14127_v61 = vld [vmem:[%s15156_s16 + $0x998] sm:$0xff]   ;;  %v14128_v62 = vld [vmem:[%s15156_s16 + $0x950] sm:$0xff]  }
 0x175   : > { %12711 = vmatpush3.bf16.msra.mxu0 %v14085_v55 }
 0x176   : > { %12733 = vmatpush3.bf16.msra.mxu1 %v14086_v58  ;;  %12712 = vmatprep.subr.bf16.mxu0 %v14087_v60  ;;  %v14124_v58 = vld [vmem:[%s15156_s16 + $0x958] sm:$0xff]  }
 0x177   : > { %12734 = vmatprep.subr.bf16.mxu1 %v14088_v63  ;;  %v14126_v60 = vld [vmem:[%s15156_s16 + $0x918] sm:$0xff]   ;;  %v14129_v63 = vld [vmem:[%s15156_s16 + $0x9d0] sm:$0xff]  }
 0x179   : > { %12713 = vmatpush3.bf16.msra.mxu0 %v14089_v1  ;;  %v14131_v1 = vld [vmem:[%s15156_s16 + $0x990] sm:$0xff]  }
 0x17a   : > { %12735 = vmatpush3.bf16.msra.mxu1 %v14090_v2  ;;  %12714 = vmatprep.subr.bf16.mxu0 %v14091_v3  ;;  %v14132_v2 = vld [vmem:[%s15156_s16 + $0x948] sm:$0xff]  }
 0x17b   : > { %12736 = vmatprep.subr.bf16.mxu1 %v14092_v4  ;;  %v14133_v3 = vld [vmem:[%s15156_s16 + $0x9c8] sm:$0xff]  }
 0x17c   : > { %v14134_v4 = vld [vmem:[%s15156_s16 + $0x908] sm:$0xff]  }
 0x17d   : > { %12715 = vmatpush3.bf16.msra.mxu0 %v14093_v5  ;;  %v14135_v5 = vld [vmem:[%s15156_s16 + $0x988] sm:$0xff]  }
 0x17e   : > { %12737 = vmatpush3.bf16.msra.mxu1 %v14094_v6  ;;  %12716 = vmatprep.subr.bf16.mxu0 %v14095_v7  ;;  %v14136_v6 = vld [vmem:[%s15156_s16 + $0x940] sm:$0xff]  }
 0x17f   : > { %12738 = vmatprep.subr.bf16.mxu1 %v14096_v8  ;;  %v290_v7 = vld [vmem:[%s15205_s15 + $0x48] sm:$0xff] }
 0x180   : > { %v14137_v8 = vld [vmem:[%s15156_s16 + $0x9c0] sm:$0xff]  }
 0x181   : > { %12717 = vmatpush3.bf16.msra.mxu0 %v14097_v9  ;;  %v501_v9 = vrot.slane %v290_v7, %v15210_v42 }
 0x182   : > { %12739 = vmatpush3.bf16.msra.mxu1 %v14098_v10  ;;  %12718 = vmatprep.subr.bf16.mxu0 %v14099_v11  ;;  %v494_v10 = vcombine.high %v290_v7, %v290_v7  ;;  %v14138_v11 = vld [vmem:[%s15156_s16 + $0x900] sm:$0xff]  }
 0x183   : > { %12740 = vmatprep.subr.bf16.mxu1 %v14100_v12  ;;  %v14139_v12 = vld [vmem:[%s15156_s16 + $0x980] sm:$0xff]   ;;  %v1007_v21 = vpack.c.bf16 %v501_v9, %v501_v9 }
 0x185   : > { %12719 = vmatpush3.bf16.msra.mxu0 %v14101_v13  ;;  %v509_v13 = vcombine.high %v501_v9, %v501_v9  ;;  %v14175_v9 = vld [vmem:[%s15156_s16 + $0xbf8] sm:$0xff]  }
 0x186   : > { %12741 = vmatpush3.bf16.msra.mxu1 %v14102_v14  ;;  %12720 = vmatprep.subr.bf16.mxu0 %v14103_v16  ;;  %v508_v14 = vrot.slane %v494_v10, %v15210_v42  ;;  %v14176_v10 = vld [vmem:[%s15156_s16 + $0xb38] sm:$0xff]  }
 0x187   : > { %12742 = vmatprep.subr.bf16.mxu1 %v14104_v19  ;;  %v1008_v16 = vpack.c.bf16 %v509_v13, %v509_v13  ;;  %v14143_v19 = vld [vmem:[%s15156_s16 + $0xa38] sm:$0xff]  }
 0x188   : > { %v510_v17 = vcombine.high %v508_v14, %v508_v14  ;;  %v1009_v22 = vpack.c.bf16 %v508_v14, %v508_v14  ;;  %v14177_v14 = vld [vmem:[%s15156_s16 + $0xbb8] sm:$0xff]  }
 0x189   : > { %12721 = vmatpush3.bf16.msra.mxu0 %v14105_v20 }
 0x18a   : > { %12743 = vmatpush3.bf16.msra.mxu1 %v14106_v23  ;;  %12750 = vmatprep.subr.bf16.mxu0 %v14108_v26  ;;  %v1010_v20 = vpack.c.bf16 %v510_v17, %v510_v17  ;;  %v14144_v23 = vld [vmem:[%s15156_s16 + $0xab8] sm:$0xff]   ;;  %v14147_v26 = vld [vmem:[%s15156_s16 + $0xa30] sm:$0xff]  }
 0x18b   : > { %12772 = vmatprep.subr.bf16.mxu1 %v14109_v27  ;;  %v14180_v17 = vld [vmem:[%s15156_s16 + $0xb30] sm:$0xff]  }
 0x18c   : > { %v12458_v36 = vpop.f32.mrf.mxu0  ;;  %9445 = vmatmul.mubr.bf16.vlgmr.msra.gmra.mxu0 %v1003_v30  ;;  %v14149_v30 = vld [vmem:[%s15156_s16 + $0xa68] sm:$0xff]  }
 0x18d   : > { %v12480_v37 = vpop.f32.mrf.mxu1  ;;  %9485 = vmatmul.mubr.bf16.vlgmr.msra.gmra.mxu1 %v1005_v31  ;;  %12751 = vmatpush3.bf16.msra.mxu0 %v14110_v29  ;;  %v14148_v29 = vld [vmem:[%s15156_s16 + $0xab0] sm:$0xff]  }
 0x18e   : > { %12773 = vmatpush3.bf16.msra.mxu1 %v14111_v32  ;;  %v12459_v40 = vpop.f32.mrf.mxu0  ;;  %12752 = vmatprep.subr.bf16.mxu0 %v14112_v33  ;;  %v14150_v33 = vld [vmem:[%s15156_s16 + $0xae8] sm:$0xff]  }
 0x18f   : > { %v12481_v41 = vpop.f32.mrf.mxu1  ;;  %12774 = vmatprep.subr.bf16.mxu1 %v14113_v34  ;;  %v12460_v44 = vadd.f32 %v12459_v40, %v12458_v36  ;;  %9524 = vmatprep.mubr.bf16.mxu0 %v1008_v16  ;;  %v14151_v36 = vld [vmem:[%s15156_s16 + $0xa28] sm:$0xff]   ;;  %v14179_v16 = vld [vmem:[%s15156_s16 + $0xbf0] sm:$0xff]  }
 0x190   : > { %v12482_v45 = vadd.f32 %v12481_v41, %v12480_v37  ;;  %v12461_v47 = vpop.f32.mrf.mxu0  ;;  %9564 = vmatprep.mubr.bf16.mxu1 %v1010_v20  ;;  %v14153_v41 = vld [vmem:[%s15156_s16 + $0xa60] sm:$0xff]   ;;  %v14181_v20 = vld [vmem:[%s15156_s16 + $0xbb0] sm:$0xff]  }
 0x191   : > { %v12483_v48 = vpop.f32.mrf.mxu1  ;;  %v8967_v50 = vadd.f32 %v12460_v44, %v15474_v0  ;;  %12753 = vmatpush3.bf16.msra.mxu0 %v14114_v35  ;;  %v14130_v0 = vld [vmem:[%s15156_s16 + $0x910] sm:$0xff]   ;;  %v14155_v47 = vld [vmem:[%s15156_s16 + $0xa20] sm:$0xff]  }
 0x192   : > { %12775 = vmatpush3.bf16.msra.mxu1 %v14115_v38  ;;  %v12462_v52 = vpop.f32.mrf.mxu0  ;;  %12754 = vmatprep.subr.bf16.mxu0 %v14116_v39  ;;  %v14152_v39 = vld [vmem:[%s15156_s16 + $0xaa8] sm:$0xff]   ;;  %v14156_v48 = vld [vmem:[%s15156_s16 + $0xaa0] sm:$0xff]  }
 0x193   : > { %v12484_v53 = vpop.f32.mrf.mxu1  ;;  %12776 = vmatprep.subr.bf16.mxu1 %v14117_v43  ;;  %v15512_v55 = vadd.f32 %v12482_v45, %v8967_v50  ;;  %v14154_v45 = vld [vmem:[%s15156_s16 + $0xae0] sm:$0xff]   ;;  %v14158_v50 = vld [vmem:[%s15156_s16 + $0xad8] sm:$0xff]  }
 0x194   : > { %v14160_v52 = vld [vmem:[%s15156_s16 + $0xa98] sm:$0xff]   ;;  %v14161_v53 = vld [vmem:[%s15156_s16 + $0xa50] sm:$0xff]  }
 0x195   : > { %12755 = vmatpush3.bf16.msra.mxu0 %v14118_v46 }
 0x196   : > { %12777 = vmatpush3.bf16.msra.mxu1 %v14119_v49  ;;  %12756 = vmatprep.subr.bf16.mxu0 %v14120_v51  ;;  %v14157_v49 = vld [vmem:[%s15156_s16 + $0xa58] sm:$0xff]  }
 0x197   : > { %12778 = vmatprep.subr.bf16.mxu1 %v14121_v54  ;;  %v14159_v51 = vld [vmem:[%s15156_s16 + $0xa18] sm:$0xff]   ;;  %v14162_v54 = vld [vmem:[%s15156_s16 + $0xad0] sm:$0xff]  }
 0x199   : > { %12757 = vmatpush3.bf16.msra.mxu0 %v14122_v56  ;;  %v14164_v56 = vld [vmem:[%s15156_s16 + $0xa90] sm:$0xff]  }
 0x19a   : > { %12779 = vmatpush3.bf16.msra.mxu1 %v14123_v57  ;;  %12758 = vmatprep.subr.bf16.mxu0 %v14124_v58  ;;  %v14165_v57 = vld [vmem:[%s15156_s16 + $0xa48] sm:$0xff]  }
 0x19b   : > { %12780 = vmatprep.subr.bf16.mxu1 %v14125_v59  ;;  %v14166_v58 = vld [vmem:[%s15156_s16 + $0xac8] sm:$0xff]  }
 0x19c   : > { %v14167_v59 = vld [vmem:[%s15156_s16 + $0xa08] sm:$0xff]  }
 0x19d   : > { %12759 = vmatpush3.bf16.msra.mxu0 %v14126_v60  ;;  %v14168_v60 = vld [vmem:[%s15156_s16 + $0xa88] sm:$0xff]  }
 0x19e   : > { %12781 = vmatpush3.bf16.msra.mxu1 %v14127_v61  ;;  %12760 = vmatprep.subr.bf16.mxu0 %v14128_v62  ;;  %v14169_v61 = vld [vmem:[%s15156_s16 + $0xa40] sm:$0xff]   ;;  %v291_v62 = vld [vmem:[%s15205_s15 + $0x50] sm:$0xff] }
 0x19f   : > { %12782 = vmatprep.subr.bf16.mxu1 %v14129_v63  ;;  %v14170_v63 = vld [vmem:[%s15156_s16 + $0xac0] sm:$0xff]  }
 0x1a1   : > { %12761 = vmatpush3.bf16.msra.mxu0 %v14130_v0  ;;  %v518_v0 = vrot.slane %v291_v62, %v15210_v42 }
 0x1a2   : > { %12783 = vmatpush3.bf16.msra.mxu1 %v14131_v1  ;;  %12762 = vmatprep.subr.bf16.mxu0 %v14132_v2  ;;  %v511_v1 = vcombine.high %v291_v62, %v291_v62  ;;  %v14171_v2 = vld [vmem:[%s15156_s16 + $0xa00] sm:$0xff]  }
 0x1a3   : > { %12784 = vmatprep.subr.bf16.mxu1 %v14133_v3  ;;  %v14172_v3 = vld [vmem:[%s15156_s16 + $0xa80] sm:$0xff]  }
 0x1a5   : > { %12763 = vmatpush3.bf16.msra.mxu0 %v14134_v4  ;;  %v526_v4 = vcombine.high %v518_v0, %v518_v0 }
 0x1a6   : > { %12785 = vmatpush3.bf16.msra.mxu1 %v14135_v5  ;;  %12764 = vmatprep.subr.bf16.mxu0 %v14136_v6  ;;  %v525_v5 = vrot.slane %v511_v1, %v15210_v42  ;;  %v14174_v6 = vld [vmem:[%s15156_s16 + $0xb78] sm:$0xff]  }
 0x1a7   : > { %12786 = vmatprep.subr.bf16.mxu1 %v14137_v8  ;;  %v1012_v7 = vpack.c.bf16 %v526_v4, %v526_v4  ;;  %v14209_v1 = vld [vmem:[%s15156_s16 + $0xc38] sm:$0xff]  }
 0x1a8   : > { %v527_v8 = vcombine.high %v525_v5, %v525_v5  ;;  %v1013_v13 = vpack.c.bf16 %v525_v5, %v525_v5  ;;  %v14210_v5 = vld [vmem:[%s15156_s16 + $0xcb8] sm:$0xff]  }
 0x1a9   : > { %12765 = vmatpush3.bf16.msra.mxu0 %v14138_v11 }
 0x1aa   : > { %12787 = vmatpush3.bf16.msra.mxu1 %v14139_v12  ;;  %12794 = vmatprep.subr.bf16.mxu0 %v14141_v15  ;;  %v1014_v11 = vpack.c.bf16 %v527_v8, %v527_v8  ;;  %v1011_v12 = vpack.c.bf16 %v518_v0, %v518_v0  ;;  %v14178_v15 = vld [vmem:[%s15156_s16 + $0xb70] sm:$0xff]   ;;  %v14208_v0 = vld [vmem:[%s15156_s16 + $0xcf8] sm:$0xff]  }
 0x1ab   : > { %12816 = vmatprep.subr.bf16.mxu1 %v14142_v18  ;;  %v14213_v8 = vld [vmem:[%s15156_s16 + $0xc30] sm:$0xff]  }
 0x1ac   : > { %v12502_v27 = vpop.f32.mrf.mxu0  ;;  %9525 = vmatmul.mubr.bf16.vlgmr.msra.gmra.mxu0 %v1007_v21  ;;  %v14182_v21 = vld [vmem:[%s15156_s16 + $0xb68] sm:$0xff]  }
 0x1ad   : > { %v12524_v28 = vpop.f32.mrf.mxu1  ;;  %9565 = vmatmul.mubr.bf16.vlgmr.msra.gmra.mxu1 %v1009_v22  ;;  %12795 = vmatpush3.bf16.msra.mxu0 %v14143_v19 }
 0x1ae   : > { %12817 = vmatpush3.bf16.msra.mxu1 %v14144_v23  ;;  %v12503_v31 = vpop.f32.mrf.mxu0  ;;  %12796 = vmatprep.subr.bf16.mxu0 %v14145_v24  ;;  %v14183_v24 = vld [vmem:[%s15156_s16 + $0xbe8] sm:$0xff]  }
 0x1af   : > { %v12525_v32 = vpop.f32.mrf.mxu1  ;;  %12818 = vmatprep.subr.bf16.mxu1 %v14146_v25  ;;  %v12504_v34 = vadd.f32 %v12503_v31, %v12502_v27  ;;  %9604 = vmatprep.mubr.bf16.mxu0 %v1012_v7  ;;  %v14184_v27 = vld [vmem:[%s15156_s16 + $0xb28] sm:$0xff]   ;;  %v14212_v7 = vld [vmem:[%s15156_s16 + $0xcf0] sm:$0xff]  }
 0x1b0   : > { %v12526_v35 = vadd.f32 %v12525_v32, %v12524_v28  ;;  %v12505_v37 = vpop.f32.mrf.mxu0  ;;  %9644 = vmatprep.mubr.bf16.mxu1 %v1014_v11  ;;  %v14186_v32 = vld [vmem:[%s15156_s16 + $0xb60] sm:$0xff]   ;;  %v14214_v11 = vld [vmem:[%s15156_s16 + $0xcb0] sm:$0xff]  }
 0x1b1   : > { %v12527_v38 = vpop.f32.mrf.mxu1  ;;  %v9047_v40 = vadd.f32 %v12504_v34, %v15512_v55  ;;  %12797 = vmatpush3.bf16.msra.mxu0 %v14147_v26  ;;  %v14163_v55 = vld [vmem:[%s15156_s16 + $0xa10] sm:$0xff]   ;;  %v14188_v37 = vld [vmem:[%s15156_s16 + $0xb20] sm:$0xff]  }
 0x1b2   : > { %12819 = vmatpush3.bf16.msra.mxu1 %v14148_v29  ;;  %v12506_v43 = vpop.f32.mrf.mxu0  ;;  %12798 = vmatprep.subr.bf16.mxu0 %v14149_v30  ;;  %v14185_v30 = vld [vmem:[%s15156_s16 + $0xba8] sm:$0xff]   ;;  %v14189_v38 = vld [vmem:[%s15156_s16 + $0xba0] sm:$0xff]  }
 0x1b3   : > { %v12528_v44 = vpop.f32.mrf.mxu1  ;;  %12820 = vmatprep.subr.bf16.mxu1 %v14150_v33  ;;  %v15550_v46 = vadd.f32 %v12526_v35, %v9047_v40  ;;  %v14187_v35 = vld [vmem:[%s15156_s16 + $0xbe0] sm:$0xff]   ;;  %v14191_v40 = vld [vmem:[%s15156_s16 + $0xbd8] sm:$0xff]  }
 0x1b4   : > { %v14193_v43 = vld [vmem:[%s15156_s16 + $0xb98] sm:$0xff]   ;;  %v14194_v44 = vld [vmem:[%s15156_s16 + $0xb50] sm:$0xff]  }
 0x1b5   : > { %12799 = vmatpush3.bf16.msra.mxu0 %v14151_v36 }
 0x1b6   : > { %12821 = vmatpush3.bf16.msra.mxu1 %v14152_v39  ;;  %12800 = vmatprep.subr.bf16.mxu0 %v14153_v41  ;;  %v14190_v39 = vld [vmem:[%s15156_s16 + $0xb58] sm:$0xff]  }
 0x1b7   : > { %12822 = vmatprep.subr.bf16.mxu1 %v14154_v45  ;;  %v14192_v41 = vld [vmem:[%s15156_s16 + $0xb18] sm:$0xff]   ;;  %v14195_v45 = vld [vmem:[%s15156_s16 + $0xbd0] sm:$0xff]  }
 0x1b9   : > { %12801 = vmatpush3.bf16.msra.mxu0 %v14155_v47  ;;  %v14197_v47 = vld [vmem:[%s15156_s16 + $0xb90] sm:$0xff]  }
 0x1ba   : > { %12823 = vmatpush3.bf16.msra.mxu1 %v14156_v48  ;;  %12802 = vmatprep.subr.bf16.mxu0 %v14157_v49  ;;  %v14198_v48 = vld [vmem:[%s15156_s16 + $0xb48] sm:$0xff]  }
 0x1bb   : > { %12824 = vmatprep.subr.bf16.mxu1 %v14158_v50  ;;  %v14199_v49 = vld [vmem:[%s15156_s16 + $0xbc8] sm:$0xff]  }
 0x1bc   : > { %v14200_v50 = vld [vmem:[%s15156_s16 + $0xb08] sm:$0xff]  }
 0x1bd   : > { %12803 = vmatpush3.bf16.msra.mxu0 %v14159_v51  ;;  %v14201_v51 = vld [vmem:[%s15156_s16 + $0xb88] sm:$0xff]  }
 0x1be   : > { %12825 = vmatpush3.bf16.msra.mxu1 %v14160_v52  ;;  %12804 = vmatprep.subr.bf16.mxu0 %v14161_v53  ;;  %v14202_v52 = vld [vmem:[%s15156_s16 + $0xb40] sm:$0xff]   ;;  %v292_v53 = vld [vmem:[%s15205_s15 + $0x58] sm:$0xff] }
 0x1bf   : > { %12826 = vmatprep.subr.bf16.mxu1 %v14162_v54  ;;  %v14203_v54 = vld [vmem:[%s15156_s16 + $0xbc0] sm:$0xff]  }
 0x1c1   : > { %12805 = vmatpush3.bf16.msra.mxu0 %v14163_v55  ;;  %v535_v55 = vrot.slane %v292_v53, %v15210_v42 }
 0x1c2   : > { %12827 = vmatpush3.bf16.msra.mxu1 %v14164_v56  ;;  %12806 = vmatprep.subr.bf16.mxu0 %v14165_v57  ;;  %v528_v56 = vcombine.high %v292_v53, %v292_v53  ;;  %v14204_v57 = vld [vmem:[%s15156_s16 + $0xb00] sm:$0xff]   ;;  %v14241_v53 = vld [vmem:[%s15156_s16 + $0xdf8] sm:$0xff]  }
 0x1c3   : > { %12828 = vmatprep.subr.bf16.mxu1 %v14166_v58  ;;  %v14205_v58 = vld [vmem:[%s15156_s16 + $0xb80] sm:$0xff]  }
 0x1c5   : > { %12807 = vmatpush3.bf16.msra.mxu0 %v14167_v59  ;;  %v543_v59 = vcombine.high %v535_v55, %v535_v55 }
 0x1c6   : > { %12829 = vmatpush3.bf16.msra.mxu1 %v14168_v60  ;;  %12808 = vmatprep.subr.bf16.mxu0 %v14169_v61  ;;  %v542_v60 = vrot.slane %v528_v56, %v15210_v42  ;;  %v14207_v61 = vld [vmem:[%s15156_s16 + $0xc78] sm:$0xff]  }
 0x1c7   : > { %12830 = vmatprep.subr.bf16.mxu1 %v14170_v63  ;;  %v1016_v62 = vpack.c.bf16 %v543_v59, %v543_v59  ;;  %v14242_v56 = vld [vmem:[%s15156_s16 + $0xd38] sm:$0xff]  }
 0x1c8   : > { %v544_v63 = vcombine.high %v542_v60, %v542_v60  ;;  %v1017_v4 = vpack.c.bf16 %v542_v60, %v542_v60  ;;  %v14243_v59 = vld [vmem:[%s15156_s16 + $0xdb8] sm:$0xff]  }
 0x1c9   : > { %12809 = vmatpush3.bf16.msra.mxu0 %v14171_v2 }
 0x1ca   : > { %12831 = vmatpush3.bf16.msra.mxu1 %v14172_v3  ;;  %12838 = vmatprep.subr.bf16.mxu0 %v14174_v6  ;;  %v1018_v2 = vpack.c.bf16 %v544_v63, %v544_v63  ;;  %v1015_v3 = vpack.c.bf16 %v535_v55, %v535_v55  ;;  %v14211_v6 = vld [vmem:[%s15156_s16 + $0xc70] sm:$0xff]  }
 0x1cb   : > { %12860 = vmatprep.subr.bf16.mxu1 %v14175_v9  ;;  %v14246_v63 = vld [vmem:[%s15156_s16 + $0xd30] sm:$0xff]  }
 0x1cc   : > { %v12546_v18 = vpop.f32.mrf.mxu0  ;;  %9605 = vmatmul.mubr.bf16.vlgmr.msra.gmra.mxu0 %v1011_v12  ;;  %v14215_v12 = vld [vmem:[%s15156_s16 + $0xc68] sm:$0xff]  }
 0x1cd   : > { %v12568_v19 = vpop.f32.mrf.mxu1  ;;  %9645 = vmatmul.mubr.bf16.vlgmr.msra.gmra.mxu1 %v1013_v13  ;;  %12839 = vmatpush3.bf16.msra.mxu0 %v14176_v10 }
 0x1ce   : > { %12861 = vmatpush3.bf16.msra.mxu1 %v14177_v14  ;;  %v12547_v22 = vpop.f32.mrf.mxu0  ;;  %12840 = vmatprep.subr.bf16.mxu0 %v14178_v15  ;;  %v14216_v15 = vld [vmem:[%s15156_s16 + $0xce8] sm:$0xff]  }
 0x1cf   : > { %v12569_v23 = vpop.f32.mrf.mxu1  ;;  %12862 = vmatprep.subr.bf16.mxu1 %v14179_v16  ;;  %v12548_v25 = vadd.f32 %v12547_v22, %v12546_v18  ;;  %9684 = vmatprep.mubr.bf16.mxu0 %v1016_v62  ;;  %v14217_v18 = vld [vmem:[%s15156_s16 + $0xc28] sm:$0xff]   ;;  %v14245_v62 = vld [vmem:[%s15156_s16 + $0xdf0] sm:$0xff]  }
 0x1d0   : > { %v12570_v26 = vadd.f32 %v12569_v23, %v12568_v19  ;;  %v12549_v28 = vpop.f32.mrf.mxu0  ;;  %9724 = vmatprep.mubr.bf16.mxu1 %v1018_v2  ;;  %v14219_v23 = vld [vmem:[%s15156_s16 + $0xc60] sm:$0xff]   ;;  %v14247_v2 = vld [vmem:[%s15156_s16 + $0xdb0] sm:$0xff]  }
 0x1d1   : > { %v12571_v29 = vpop.f32.mrf.mxu1  ;;  %v9127_v31 = vadd.f32 %v12548_v25, %v15550_v46  ;;  %12841 = vmatpush3.bf16.msra.mxu0 %v14180_v17  ;;  %v14196_v46 = vld [vmem:[%s15156_s16 + $0xb10] sm:$0xff]   ;;  %v14221_v28 = vld [vmem:[%s15156_s16 + $0xc20] sm:$0xff]  }
 0x1d2   : > { %12863 = vmatpush3.bf16.msra.mxu1 %v14181_v20  ;;  %v12550_v33 = vpop.f32.mrf.mxu0  ;;  %12842 = vmatprep.subr.bf16.mxu0 %v14182_v21  ;;  %v14218_v21 = vld [vmem:[%s15156_s16 + $0xca8] sm:$0xff]   ;;  %v14222_v29 = vld [vmem:[%s15156_s16 + $0xca0] sm:$0xff]  }
 0x1d3   : > { %v12572_v34 = vpop.f32.mrf.mxu1  ;;  %12864 = vmatprep.subr.bf16.mxu1 %v14183_v24  ;;  %v15588_v36 = vadd.f32 %v12570_v26, %v9127_v31  ;;  %v14220_v26 = vld [vmem:[%s15156_s16 + $0xce0] sm:$0xff]   ;;  %v14224_v31 = vld [vmem:[%s15156_s16 + $0xcd8] sm:$0xff]  }
 0x1d4   : > { %v14226_v33 = vld [vmem:[%s15156_s16 + $0xc98] sm:$0xff]   ;;  %v14227_v34 = vld [vmem:[%s15156_s16 + $0xc50] sm:$0xff]  }
 0x1d5   : > { %12843 = vmatpush3.bf16.msra.mxu0 %v14184_v27 }
 0x1d6   : > { %12865 = vmatpush3.bf16.msra.mxu1 %v14185_v30  ;;  %12844 = vmatprep.subr.bf16.mxu0 %v14186_v32  ;;  %v14223_v30 = vld [vmem:[%s15156_s16 + $0xc58] sm:$0xff]  }
 0x1d7   : > { %12866 = vmatprep.subr.bf16.mxu1 %v14187_v35  ;;  %v14225_v32 = vld [vmem:[%s15156_s16 + $0xc18] sm:$0xff]   ;;  %v14228_v35 = vld [vmem:[%s15156_s16 + $0xcd0] sm:$0xff]  }
 0x1d9   : > { %12845 = vmatpush3.bf16.msra.mxu0 %v14188_v37  ;;  %v14230_v37 = vld [vmem:[%s15156_s16 + $0xc90] sm:$0xff]  }
 0x1da   : > { %12867 = vmatpush3.bf16.msra.mxu1 %v14189_v38  ;;  %12846 = vmatprep.subr.bf16.mxu0 %v14190_v39  ;;  %v14231_v38 = vld [vmem:[%s15156_s16 + $0xc48] sm:$0xff]  }
 0x1db   : > { %12868 = vmatprep.subr.bf16.mxu1 %v14191_v40  ;;  %v14232_v39 = vld [vmem:[%s15156_s16 + $0xcc8] sm:$0xff]  }
 0x1dc   : > { %v14233_v40 = vld [vmem:[%s15156_s16 + $0xc08] sm:$0xff]  }
 0x1dd   : > { %12847 = vmatpush3.bf16.msra.mxu0 %v14192_v41  ;;  %v14234_v41 = vld [vmem:[%s15156_s16 + $0xc88] sm:$0xff]  }
 0x1de   : > { %12869 = vmatpush3.bf16.msra.mxu1 %v14193_v43  ;;  %12848 = vmatprep.subr.bf16.mxu0 %v14194_v44  ;;  %v14235_v43 = vld [vmem:[%s15156_s16 + $0xc40] sm:$0xff]  }
 0x1df   : > { %12870 = vmatprep.subr.bf16.mxu1 %v14195_v45  ;;  %v14236_v44 = vld [vmem:[%s15156_s16 + $0xcc0] sm:$0xff]  }
 0x1e0   : > { %v293_v45 = vld [vmem:[%s15205_s15 + $0x60] sm:$0xff] }
 0x1e1   : > { %12849 = vmatpush3.bf16.msra.mxu0 %v14196_v46  ;;  %v14237_v46 = vld [vmem:[%s15156_s16 + $0xc00] sm:$0xff]  }
 0x1e2   : > { %12871 = vmatpush3.bf16.msra.mxu1 %v14197_v47  ;;  %12850 = vmatprep.subr.bf16.mxu0 %v14198_v48  ;;  %v552_v47 = vrot.slane %v293_v45, %v15210_v42  ;;  %v545_v48 = vcombine.high %v293_v45, %v293_v45 }
 0x1e3   : > { %12872 = vmatprep.subr.bf16.mxu1 %v14199_v49  ;;  %v14238_v49 = vld [vmem:[%s15156_s16 + $0xc80] sm:$0xff]  }
 0x1e5   : > { %12851 = vmatpush3.bf16.msra.mxu0 %v14200_v50  ;;  %v560_v50 = vcombine.high %v552_v47, %v552_v47 }
 0x1e6   : > { %12873 = vmatpush3.bf16.msra.mxu1 %v14201_v51  ;;  %12852 = vmatprep.subr.bf16.mxu0 %v14202_v52  ;;  %v559_v51 = vrot.slane %v545_v48, %v15210_v42  ;;  %v14240_v52 = vld [vmem:[%s15156_s16 + $0xd78] sm:$0xff]  }
 0x1e7   : > { %12874 = vmatprep.subr.bf16.mxu1 %v14203_v54  ;;  %v1020_v54 = vpack.c.bf16 %v560_v50, %v560_v50  ;;  %v14276_v50 = vld [vmem:[%s15156_s16 + $0xeb8] sm:$0xff]  }
 0x1e8   : > { %v561_v55 = vcombine.high %v559_v51, %v559_v51 }
 0x1e9   : > { %12853 = vmatpush3.bf16.msra.mxu0 %v14204_v57  ;;  %v1019_v57 = vpack.c.bf16 %v552_v47, %v552_v47  ;;  %v14275_v47 = vld [vmem:[%s15156_s16 + $0xe38] sm:$0xff]  }
 0x1ea   : > { %12875 = vmatpush3.bf16.msra.mxu1 %v14205_v58  ;;  %12882 = vmatprep.subr.bf16.mxu0 %v14207_v61  ;;  %v1021_v58 = vpack.c.bf16 %v559_v51, %v559_v51  ;;  %v1022_v60 = vpack.c.bf16 %v561_v55, %v561_v55  ;;  %v14244_v61 = vld [vmem:[%s15156_s16 + $0xd70] sm:$0xff]  }
 0x1eb   : > { %12904 = vmatprep.subr.bf16.mxu1 %v14208_v0 }
 0x1ec   : > { %v12590_v9 = vpop.f32.mrf.mxu0  ;;  %9685 = vmatmul.mubr.bf16.vlgmr.msra.gmra.mxu0 %v1015_v3  ;;  %v14248_v3 = vld [vmem:[%s15156_s16 + $0xd68] sm:$0xff]  }
 0x1ed   : > { %v12612_v10 = vpop.f32.mrf.mxu1  ;;  %9725 = vmatmul.mubr.bf16.vlgmr.msra.gmra.mxu1 %v1017_v4  ;;  %12883 = vmatpush3.bf16.msra.mxu0 %v14209_v1 }
 0x1ee   : > { %12905 = vmatpush3.bf16.msra.mxu1 %v14210_v5  ;;  %v12591_v13 = vpop.f32.mrf.mxu0  ;;  %12884 = vmatprep.subr.bf16.mxu0 %v14211_v6  ;;  %v14249_v6 = vld [vmem:[%s15156_s16 + $0xde8] sm:$0xff]  }
 0x1ef   : > { %v12613_v14 = vpop.f32.mrf.mxu1  ;;  %12906 = vmatprep.subr.bf16.mxu1 %v14212_v7  ;;  %v12592_v16 = vadd.f32 %v12591_v13, %v12590_v9  ;;  %9764 = vmatprep.mubr.bf16.mxu0 %v1020_v54  ;;  %v14250_v9 = vld [vmem:[%s15156_s16 + $0xd28] sm:$0xff]   ;;  %v14279_v54 = vld [vmem:[%s15156_s16 + $0xe30] sm:$0xff]  }
 0x1f0   : > { %v12614_v17 = vadd.f32 %v12613_v14, %v12612_v10  ;;  %v12593_v19 = vpop.f32.mrf.mxu0  ;;  %9804 = vmatprep.mubr.bf16.mxu1 %v1022_v60  ;;  %v14252_v14 = vld [vmem:[%s15156_s16 + $0xd60] sm:$0xff]  }
 0x1f1   : > { %v12615_v20 = vpop.f32.mrf.mxu1  ;;  %v9207_v22 = vadd.f32 %v12592_v16, %v15588_v36  ;;  %12885 = vmatpush3.bf16.msra.mxu0 %v14213_v8  ;;  %v14229_v36 = vld [vmem:[%s15156_s16 + $0xc10] sm:$0xff]   ;;  %v14254_v19 = vld [vmem:[%s15156_s16 + $0xd20] sm:$0xff]  }
 0x1f2   : > { %12907 = vmatpush3.bf16.msra.mxu1 %v14214_v11  ;;  %v12594_v24 = vpop.f32.mrf.mxu0  ;;  %12886 = vmatprep.subr.bf16.mxu0 %v14215_v12  ;;  %v14251_v12 = vld [vmem:[%s15156_s16 + $0xda8] sm:$0xff]   ;;  %v14255_v20 = vld [vmem:[%s15156_s16 + $0xda0] sm:$0xff]  }
 0x1f3   : > { %v12616_v25 = vpop.f32.mrf.mxu1  ;;  %12908 = vmatprep.subr.bf16.mxu1 %v14216_v15  ;;  %v15626_v27 = vadd.f32 %v12614_v17, %v9207_v22  ;;  %v14253_v17 = vld [vmem:[%s15156_s16 + $0xde0] sm:$0xff]   ;;  %v14257_v22 = vld [vmem:[%s15156_s16 + $0xdd8] sm:$0xff]  }
 0x1f4   : > { %v14259_v24 = vld [vmem:[%s15156_s16 + $0xd98] sm:$0xff]   ;;  %v14260_v25 = vld [vmem:[%s15156_s16 + $0xd50] sm:$0xff]  }
 0x1f5   : > { %12887 = vmatpush3.bf16.msra.mxu0 %v14217_v18 }
 0x1f6   : > { %12909 = vmatpush3.bf16.msra.mxu1 %v14218_v21  ;;  %12888 = vmatprep.subr.bf16.mxu0 %v14219_v23  ;;  %v14256_v21 = vld [vmem:[%s15156_s16 + $0xd58] sm:$0xff]  }
 0x1f7   : > { %12910 = vmatprep.subr.bf16.mxu1 %v14220_v26  ;;  %v14258_v23 = vld [vmem:[%s15156_s16 + $0xd18] sm:$0xff]   ;;  %v14261_v26 = vld [vmem:[%s15156_s16 + $0xdd0] sm:$0xff]  }
 0x1f9   : > { %12889 = vmatpush3.bf16.msra.mxu0 %v14221_v28  ;;  %v14263_v28 = vld [vmem:[%s15156_s16 + $0xd90] sm:$0xff]  }
 0x1fa   : > { %12911 = vmatpush3.bf16.msra.mxu1 %v14222_v29  ;;  %12890 = vmatprep.subr.bf16.mxu0 %v14223_v30  ;;  %v14264_v29 = vld [vmem:[%s15156_s16 + $0xd48] sm:$0xff]  }
 0x1fb   : > { %12912 = vmatprep.subr.bf16.mxu1 %v14224_v31  ;;  %v14265_v30 = vld [vmem:[%s15156_s16 + $0xdc8] sm:$0xff]  }
 0x1fc   : > { %v14266_v31 = vld [vmem:[%s15156_s16 + $0xd08] sm:$0xff]  }
 0x1fd   : > { %12891 = vmatpush3.bf16.msra.mxu0 %v14225_v32  ;;  %v14267_v32 = vld [vmem:[%s15156_s16 + $0xd88] sm:$0xff]  }
 0x1fe   : > { %12913 = vmatpush3.bf16.msra.mxu1 %v14226_v33  ;;  %12892 = vmatprep.subr.bf16.mxu0 %v14227_v34  ;;  %v14268_v33 = vld [vmem:[%s15156_s16 + $0xd40] sm:$0xff]  }
 0x1ff   : > { %12914 = vmatprep.subr.bf16.mxu1 %v14228_v35  ;;  %v14269_v34 = vld [vmem:[%s15156_s16 + $0xdc0] sm:$0xff]  }
 0x200   : > { %v294_v35 = vld [vmem:[%s15205_s15 + $0x68] sm:$0xff] }
 0x201   : > { %12893 = vmatpush3.bf16.msra.mxu0 %v14229_v36  ;;  %v14270_v36 = vld [vmem:[%s15156_s16 + $0xd00] sm:$0xff]  }
 0x202   : > { %12915 = vmatpush3.bf16.msra.mxu1 %v14230_v37  ;;  %12894 = vmatprep.subr.bf16.mxu0 %v14231_v38  ;;  %v569_v37 = vrot.slane %v294_v35, %v15210_v42  ;;  %v562_v38 = vcombine.high %v294_v35, %v294_v35 }
 0x203   : > { %12916 = vmatprep.subr.bf16.mxu1 %v14232_v39  ;;  %v14271_v39 = vld [vmem:[%s15156_s16 + $0xd80] sm:$0xff]  }
 0x204   : > { %v1023_v48 = vpack.c.bf16 %v569_v37, %v569_v37 }
 0x205   : > { %12895 = vmatpush3.bf16.msra.mxu0 %v14233_v40  ;;  %v577_v40 = vcombine.high %v569_v37, %v569_v37  ;;  %v14308_v37 = vld [vmem:[%s15156_s16 + $0xf38] sm:$0xff]  }
 0x206   : > { %12917 = vmatpush3.bf16.msra.mxu1 %v14234_v41  ;;  %12896 = vmatprep.subr.bf16.mxu0 %v14235_v43  ;;  %v576_v41 = vrot.slane %v562_v38, %v15210_v42  ;;  %v14273_v43 = vld [vmem:[%s15156_s16 + $0xe78] sm:$0xff]  }
 0x207   : > { %12918 = vmatprep.subr.bf16.mxu1 %v14236_v44  ;;  %v14274_v44 = vld [vmem:[%s15156_s16 + $0xef8] sm:$0xff]   ;;  %v1024_v45 = vpack.c.bf16 %v577_v40, %v577_v40 }
 0x208   : > { %v14309_v40 = vld [vmem:[%s15156_s16 + $0xfb8] sm:$0xff]  }
 0x209   : > { %12897 = vmatpush3.bf16.msra.mxu0 %v14237_v46  ;;  %v578_v46 = vcombine.high %v576_v41, %v576_v41 }
 0x20a   : > { %12919 = vmatpush3.bf16.msra.mxu1 %v14238_v49  ;;  %12926 = vmatprep.subr.bf16.mxu0 %v14240_v52  ;;  %v1025_v49 = vpack.c.bf16 %v576_v41, %v576_v41  ;;  %v14277_v52 = vld [vmem:[%s15156_s16 + $0xe70] sm:$0xff]  }
 0x20b   : > { %12948 = vmatprep.subr.bf16.mxu1 %v14241_v53  ;;  %v1026_v51 = vpack.c.bf16 %v578_v46, %v578_v46  ;;  %v14278_v53 = vld [vmem:[%s15156_s16 + $0xef0] sm:$0xff]  }
 0x20c   : > { %v12634_v0 = vpop.f32.mrf.mxu0  ;;  %9765 = vmatmul.mubr.bf16.vlgmr.msra.gmra.mxu0 %v1019_v57  ;;  %v14280_v57 = vld [vmem:[%s15156_s16 + $0xeb0] sm:$0xff]  }
 0x20d   : > { %v12656_v1 = vpop.f32.mrf.mxu1  ;;  %9805 = vmatmul.mubr.bf16.vlgmr.msra.gmra.mxu1 %v1021_v58  ;;  %12927 = vmatpush3.bf16.msra.mxu0 %v14242_v56  ;;  %v14281_v58 = vld [vmem:[%s15156_s16 + $0xe68] sm:$0xff]  }
 0x20e   : > { %12949 = vmatpush3.bf16.msra.mxu1 %v14243_v59  ;;  %v12635_v4 = vpop.f32.mrf.mxu0  ;;  %12928 = vmatprep.subr.bf16.mxu0 %v14244_v61  ;;  %v14282_v61 = vld [vmem:[%s15156_s16 + $0xee8] sm:$0xff]  }
 0x20f   : > { %v12657_v5 = vpop.f32.mrf.mxu1  ;;  %12950 = vmatprep.subr.bf16.mxu1 %v14245_v62  ;;  %v12636_v7 = vadd.f32 %v12635_v4, %v12634_v0  ;;  %9844 = vmatprep.mubr.bf16.mxu0 %v1024_v45  ;;  %v14283_v0 = vld [vmem:[%s15156_s16 + $0xe28] sm:$0xff]   ;;  %v14312_v45 = vld [vmem:[%s15156_s16 + $0xf30] sm:$0xff]  }
 0x210   : > { %v12658_v8 = vadd.f32 %v12657_v5, %v12656_v1  ;;  %v12637_v10 = vpop.f32.mrf.mxu0  ;;  %9884 = vmatprep.mubr.bf16.mxu1 %v1026_v51  ;;  %v14285_v5 = vld [vmem:[%s15156_s16 + $0xe60] sm:$0xff]  }
 0x211   : > { %v12659_v11 = vpop.f32.mrf.mxu1  ;;  %v9287_v13 = vadd.f32 %v12636_v7, %v15626_v27  ;;  %12929 = vmatpush3.bf16.msra.mxu0 %v14246_v63  ;;  %v14262_v27 = vld [vmem:[%s15156_s16 + $0xd10] sm:$0xff]   ;;  %v14287_v10 = vld [vmem:[%s15156_s16 + $0xe20] sm:$0xff]  }
 0x212   : > { %12951 = vmatpush3.bf16.msra.mxu1 %v14247_v2  ;;  %v12638_v15 = vpop.f32.mrf.mxu0  ;;  %12930 = vmatprep.subr.bf16.mxu0 %v14248_v3  ;;  %v14284_v3 = vld [vmem:[%s15156_s16 + $0xea8] sm:$0xff]   ;;  %v14288_v11 = vld [vmem:[%s15156_s16 + $0xea0] sm:$0xff]  }
 0x213   : > { %v12660_v16 = vpop.f32.mrf.mxu1  ;;  %12952 = vmatprep.subr.bf16.mxu1 %v14249_v6  ;;  %v15664_v18 = vadd.f32 %v12658_v8, %v9287_v13  ;;  %v14286_v8 = vld [vmem:[%s15156_s16 + $0xee0] sm:$0xff]   ;;  %v14290_v13 = vld [vmem:[%s15156_s16 + $0xed8] sm:$0xff]  }
 0x214   : > { %v14292_v15 = vld [vmem:[%s15156_s16 + $0xe98] sm:$0xff]   ;;  %v14293_v16 = vld [vmem:[%s15156_s16 + $0xe50] sm:$0xff]  }
 0x215   : > { %12931 = vmatpush3.bf16.msra.mxu0 %v14250_v9 }
 0x216   : > { %12953 = vmatpush3.bf16.msra.mxu1 %v14251_v12  ;;  %12932 = vmatprep.subr.bf16.mxu0 %v14252_v14  ;;  %v14289_v12 = vld [vmem:[%s15156_s16 + $0xe58] sm:$0xff]  }
 0x217   : > { %12954 = vmatprep.subr.bf16.mxu1 %v14253_v17  ;;  %v14291_v14 = vld [vmem:[%s15156_s16 + $0xe18] sm:$0xff]   ;;  %v14294_v17 = vld [vmem:[%s15156_s16 + $0xed0] sm:$0xff]  }
 0x219   : > { %12933 = vmatpush3.bf16.msra.mxu0 %v14254_v19  ;;  %v14296_v19 = vld [vmem:[%s15156_s16 + $0xe90] sm:$0xff]  }
 0x21a   : > { %12955 = vmatpush3.bf16.msra.mxu1 %v14255_v20  ;;  %12934 = vmatprep.subr.bf16.mxu0 %v14256_v21  ;;  %v14297_v20 = vld [vmem:[%s15156_s16 + $0xe48] sm:$0xff]  }
 0x21b   : > { %12956 = vmatprep.subr.bf16.mxu1 %v14257_v22  ;;  %v14298_v21 = vld [vmem:[%s15156_s16 + $0xec8] sm:$0xff]  }
 0x21c   : > { %v14299_v22 = vld [vmem:[%s15156_s16 + $0xe08] sm:$0xff]  }
 0x21d   : > { %12935 = vmatpush3.bf16.msra.mxu0 %v14258_v23  ;;  %v14300_v23 = vld [vmem:[%s15156_s16 + $0xe88] sm:$0xff]  }
 0x21e   : > { %12957 = vmatpush3.bf16.msra.mxu1 %v14259_v24  ;;  %12936 = vmatprep.subr.bf16.mxu0 %v14260_v25  ;;  %v14301_v24 = vld [vmem:[%s15156_s16 + $0xe40] sm:$0xff]  }
 0x21f   : > { %12958 = vmatprep.subr.bf16.mxu1 %v14261_v26  ;;  %v14302_v25 = vld [vmem:[%s15156_s16 + $0xec0] sm:$0xff]   ;;  %v295_v26 = vld [vmem:[%s15205_s15 + $0x70] sm:$0xff] }
 0x221   : > { %12937 = vmatpush3.bf16.msra.mxu0 %v14262_v27  ;;  %v14303_v27 = vld [vmem:[%s15156_s16 + $0xe00] sm:$0xff]  }
 0x222   : > { %12959 = vmatpush3.bf16.msra.mxu1 %v14263_v28  ;;  %12938 = vmatprep.subr.bf16.mxu0 %v14264_v29  ;;  %v586_v28 = vrot.slane %v295_v26, %v15210_v42  ;;  %v579_v29 = vcombine.high %v295_v26, %v295_v26  ;;  %v14341_v26 = vld [vmem:[%s15156_s16 + $0x1038] sm:$0xff]  }
 0x223   : > { %12960 = vmatprep.subr.bf16.mxu1 %v14265_v30  ;;  %v14304_v30 = vld [vmem:[%s15156_s16 + $0xe80] sm:$0xff]  }
 0x224   : > { %v1027_v38 = vpack.c.bf16 %v586_v28, %v586_v28 }
 0x225   : > { %12939 = vmatpush3.bf16.msra.mxu0 %v14266_v31  ;;  %v594_v31 = vcombine.high %v586_v28, %v586_v28 }
 0x226   : > { %12961 = vmatpush3.bf16.msra.mxu1 %v14267_v32  ;;  %12940 = vmatprep.subr.bf16.mxu0 %v14268_v33  ;;  %v593_v32 = vrot.slane %v579_v29, %v15210_v42  ;;  %v14306_v33 = vld [vmem:[%s15156_s16 + $0xf78] sm:$0xff]  }
 0x227   : > { %12962 = vmatprep.subr.bf16.mxu1 %v14269_v34  ;;  %v14307_v34 = vld [vmem:[%s15156_s16 + $0xff8] sm:$0xff]   ;;  %v1028_v35 = vpack.c.bf16 %v594_v31, %v594_v31 }
 0x229   : > { %12941 = vmatpush3.bf16.msra.mxu0 %v14270_v36  ;;  %v595_v36 = vcombine.high %v593_v32, %v593_v32 }
 0x22a   : > { %12963 = vmatpush3.bf16.msra.mxu1 %v14271_v39  ;;  %12970 = vmatprep.subr.bf16.mxu0 %v14273_v43  ;;  %v1029_v39 = vpack.c.bf16 %v593_v32, %v593_v32  ;;  %v14310_v43 = vld [vmem:[%s15156_s16 + $0xf70] sm:$0xff]  }
 0x22b   : > { %12992 = vmatprep.subr.bf16.mxu1 %v14274_v44  ;;  %v1030_v41 = vpack.c.bf16 %v595_v36, %v595_v36  ;;  %v14311_v44 = vld [vmem:[%s15156_s16 + $0xff0] sm:$0xff]  }
 0x22c   : > { %v12678_v55 = vpop.f32.mrf.mxu0  ;;  %9845 = vmatmul.mubr.bf16.vlgmr.msra.gmra.mxu0 %v1023_v48  ;;  %v14313_v48 = vld [vmem:[%s15156_s16 + $0xfb0] sm:$0xff]  }
 0x22d   : > { %v12700_v56 = vpop.f32.mrf.mxu1  ;;  %9885 = vmatmul.mubr.bf16.vlgmr.msra.gmra.mxu1 %v1025_v49  ;;  %12971 = vmatpush3.bf16.msra.mxu0 %v14275_v47  ;;  %v14314_v49 = vld [vmem:[%s15156_s16 + $0xf68] sm:$0xff]   ;;  %v14343_v32 = vld [vmem:[%s15156_s16 + $0x1070] sm:$0xff]  }
 0x22e   : > { %12993 = vmatpush3.bf16.msra.mxu1 %v14276_v50  ;;  %v12679_v59 = vpop.f32.mrf.mxu0  ;;  %12972 = vmatprep.subr.bf16.mxu0 %v14277_v52  ;;  %v14315_v52 = vld [vmem:[%s15156_s16 + $0xfe8] sm:$0xff]  }
 0x22f   : > { %v12701_v60 = vpop.f32.mrf.mxu1  ;;  %12994 = vmatprep.subr.bf16.mxu1 %v14278_v53  ;;  %v12680_v62 = vadd.f32 %v12679_v59, %v12678_v55  ;;  %9924 = vmatprep.mubr.bf16.mxu0 %v1028_v35  ;;  %v14316_v55 = vld [vmem:[%s15156_s16 + $0xf28] sm:$0xff]   ;;  %v14345_v35 = vld [vmem:[%s15156_s16 + $0x1030] sm:$0xff]  }
 0x230   : > { %v12702_v63 = vadd.f32 %v12701_v60, %v12700_v56  ;;  %v12681_v1 = vpop.f32.mrf.mxu0  ;;  %9964 = vmatprep.mubr.bf16.mxu1 %v1030_v41  ;;  %v14318_v60 = vld [vmem:[%s15156_s16 + $0xf60] sm:$0xff]  }
 0x231   : > { %v12703_v2 = vpop.f32.mrf.mxu1  ;;  %v9367_v4 = vadd.f32 %v12680_v62, %v15664_v18  ;;  %12973 = vmatpush3.bf16.msra.mxu0 %v14279_v54  ;;  %v14295_v18 = vld [vmem:[%s15156_s16 + $0xe10] sm:$0xff]   ;;  %v14320_v1 = vld [vmem:[%s15156_s16 + $0xf20] sm:$0xff]  }
 0x232   : > { %12995 = vmatpush3.bf16.msra.mxu1 %v14280_v57  ;;  %v12682_v6 = vpop.f32.mrf.mxu0  ;;  %12974 = vmatprep.subr.bf16.mxu0 %v14281_v58  ;;  %v14317_v58 = vld [vmem:[%s15156_s16 + $0xfa8] sm:$0xff]   ;;  %v14321_v2 = vld [vmem:[%s15156_s16 + $0xfa0] sm:$0xff]  }
 0x233   : > { %v12704_v7 = vpop.f32.mrf.mxu1  ;;  %12996 = vmatprep.subr.bf16.mxu1 %v14282_v61  ;;  %v15702_v9 = vadd.f32 %v12702_v63, %v9367_v4  ;;  %v14319_v63 = vld [vmem:[%s15156_s16 + $0xfe0] sm:$0xff]   ;;  %v14323_v4 = vld [vmem:[%s15156_s16 + $0xfd8] sm:$0xff]  }
 0x234   : > { %v14325_v6 = vld [vmem:[%s15156_s16 + $0xf98] sm:$0xff]   ;;  %v14326_v7 = vld [vmem:[%s15156_s16 + $0xf50] sm:$0xff]  }
 0x235   : > { %12975 = vmatpush3.bf16.msra.mxu0 %v14283_v0 }
 0x236   : > { %12997 = vmatpush3.bf16.msra.mxu1 %v14284_v3  ;;  %12976 = vmatprep.subr.bf16.mxu0 %v14285_v5  ;;  %v14322_v3 = vld [vmem:[%s15156_s16 + $0xf58] sm:$0xff]  }
 0x237   : > { %12998 = vmatprep.subr.bf16.mxu1 %v14286_v8  ;;  %v14324_v5 = vld [vmem:[%s15156_s16 + $0xf18] sm:$0xff]   ;;  %v14327_v8 = vld [vmem:[%s15156_s16 + $0xfd0] sm:$0xff]  }
 0x239   : > { %12977 = vmatpush3.bf16.msra.mxu0 %v14287_v10  ;;  %v14329_v10 = vld [vmem:[%s15156_s16 + $0xf90] sm:$0xff]  }
 0x23a   : > { %12999 = vmatpush3.bf16.msra.mxu1 %v14288_v11  ;;  %12978 = vmatprep.subr.bf16.mxu0 %v14289_v12  ;;  %v14330_v11 = vld [vmem:[%s15156_s16 + $0xf48] sm:$0xff]  }
 0x23b   : > { %13000 = vmatprep.subr.bf16.mxu1 %v14290_v13  ;;  %v14331_v12 = vld [vmem:[%s15156_s16 + $0xfc8] sm:$0xff]  }
 0x23c   : > { %v14332_v13 = vld [vmem:[%s15156_s16 + $0xf08] sm:$0xff]  }
 0x23d   : > { %12979 = vmatpush3.bf16.msra.mxu0 %v14291_v14  ;;  %v14333_v14 = vld [vmem:[%s15156_s16 + $0xf88] sm:$0xff]  }
 0x23e   : > { %13001 = vmatpush3.bf16.msra.mxu1 %v14292_v15  ;;  %12980 = vmatprep.subr.bf16.mxu0 %v14293_v16  ;;  %v14334_v15 = vld [vmem:[%s15156_s16 + $0xf40] sm:$0xff]  }
 0x23f   : > { %13002 = vmatprep.subr.bf16.mxu1 %v14294_v17  ;;  %v14335_v16 = vld [vmem:[%s15156_s16 + $0xfc0] sm:$0xff]  }
 0x240   : > { %v14336_v17 = vld [vmem:[%s15156_s16 + $0xf00] sm:$0xff]  }
 0x241   : > { %12981 = vmatpush3.bf16.msra.mxu0 %v14295_v18  ;;  %v296_v18 = vld [vmem:[%s15205_s15 + $0x78] sm:$0xff] }
 0x242   : > { %13003 = vmatpush3.bf16.msra.mxu1 %v14296_v19  ;;  %12982 = vmatprep.subr.bf16.mxu0 %v14297_v20  ;;  %v14337_v19 = vld [vmem:[%s15156_s16 + $0xf80] sm:$0xff]   ;;  %v603_v20 = vrot.slane %v296_v18, %v15210_v42 }
 0x243   : > { %13004 = vmatprep.subr.bf16.mxu1 %v14298_v21  ;;  %v596_v21 = vcombine.high %v296_v18, %v296_v18 }
 0x244   : > { %v1031_v29 = vpack.c.bf16 %v603_v20, %v603_v20 }
 0x245   : > { %12983 = vmatpush3.bf16.msra.mxu0 %v14299_v22  ;;  %v14339_v22 = vld [vmem:[%s15156_s16 + $0x1078] sm:$0xff]  }
 0x246   : > { %13005 = vmatpush3.bf16.msra.mxu1 %v14300_v23  ;;  %12984 = vmatprep.subr.bf16.mxu0 %v14301_v24  ;;  %v611_v23 = vcombine.high %v603_v20, %v603_v20  ;;  %v610_v24 = vrot.slane %v596_v21, %v15210_v42  ;;  %v14375_v21 = vld [vmem:[%s15156_s16 + $0x11b8] sm:$0xff]  }
 0x247   : > { %13006 = vmatprep.subr.bf16.mxu1 %v14302_v25  ;;  %v14340_v25 = vld [vmem:[%s15156_s16 + $0x10f8] sm:$0xff]  }
 0x248   : > { %v612_v28 = vcombine.high %v610_v24, %v610_v24  ;;  %v1033_v31 = vpack.c.bf16 %v610_v24, %v610_v24 }
 0x249   : > { %12985 = vmatpush3.bf16.msra.mxu0 %v14303_v27  ;;  %v1032_v27 = vpack.c.bf16 %v611_v23, %v611_v23  ;;  %v14376_v23 = vld [vmem:[%s15156_s16 + $0x1170] sm:$0xff]  }
 0x24a   : > { %13007 = vmatpush3.bf16.msra.mxu1 %v14304_v30  ;;  %13014 = vmatprep.subr.bf16.mxu0 %v14306_v33  ;;  %v14342_v30 = vld [vmem:[%s15156_s16 + $0x10b8] sm:$0xff]   ;;  %v1034_v33 = vpack.c.bf16 %v612_v28, %v612_v28 }
 0x24b   : > { %13036 = vmatprep.subr.bf16.mxu1 %v14307_v34  ;;  %v14344_v34 = vld [vmem:[%s15156_s16 + $0x10f0] sm:$0xff]  }
 0x24c   : > { %v12722_v46 = vpop.f32.mrf.mxu0  ;;  %9925 = vmatmul.mubr.bf16.vlgmr.msra.gmra.mxu0 %v1027_v38  ;;  %v14346_v38 = vld [vmem:[%s15156_s16 + $0x10b0] sm:$0xff]  }
 0x24d   : > { %v12744_v47 = vpop.f32.mrf.mxu1  ;;  %9965 = vmatmul.mubr.bf16.vlgmr.msra.gmra.mxu1 %v1029_v39  ;;  %13015 = vmatpush3.bf16.msra.mxu0 %v14308_v37  ;;  %v14347_v39 = vld [vmem:[%s15156_s16 + $0x1068] sm:$0xff]  }
 0x24e   : > { %13037 = vmatpush3.bf16.msra.mxu1 %v14309_v40  ;;  %v12723_v50 = vpop.f32.mrf.mxu0  ;;  %13016 = vmatprep.subr.bf16.mxu0 %v14310_v43  ;;  %v14348_v43 = vld [vmem:[%s15156_s16 + $0x10e8] sm:$0xff]  }
 0x24f   : > { %v12745_v51 = vpop.f32.mrf.mxu1  ;;  %13038 = vmatprep.subr.bf16.mxu1 %v14311_v44  ;;  %v12724_v53 = vadd.f32 %v12723_v50, %v12722_v46  ;;  %10004 = vmatprep.mubr.bf16.mxu0 %v1032_v27  ;;  %v14349_v46 = vld [vmem:[%s15156_s16 + $0x1028] sm:$0xff]  }
 0x250   : > { %v12746_v54 = vadd.f32 %v12745_v51, %v12744_v47  ;;  %v12725_v56 = vpop.f32.mrf.mxu0  ;;  %10044 = vmatprep.mubr.bf16.mxu1 %v1034_v33  ;;  %v14351_v51 = vld [vmem:[%s15156_s16 + $0x1060] sm:$0xff]   ;;  %v14381_v33 = vld [vmem:[%s15156_s16 + $0x11e8] sm:$0xff]  }
 0x251   : > { %v12747_v57 = vpop.f32.mrf.mxu1  ;;  %v9447_v59 = vadd.f32 %v12724_v53, %v15702_v9  ;;  %13017 = vmatpush3.bf16.msra.mxu0 %v14312_v45  ;;  %v14328_v9 = vld [vmem:[%s15156_s16 + $0xf10] sm:$0xff]   ;;  %v14353_v56 = vld [vmem:[%s15156_s16 + $0x1020] sm:$0xff]  }
 0x252   : > { %13039 = vmatpush3.bf16.msra.mxu1 %v14313_v48  ;;  %v12726_v61 = vpop.f32.mrf.mxu0  ;;  %13018 = vmatprep.subr.bf16.mxu0 %v14314_v49  ;;  %v14350_v49 = vld [vmem:[%s15156_s16 + $0x10a8] sm:$0xff]   ;;  %v14354_v57 = vld [vmem:[%s15156_s16 + $0x10a0] sm:$0xff]  }
 0x253   : > { %v12748_v62 = vpop.f32.mrf.mxu1  ;;  %13040 = vmatprep.subr.bf16.mxu1 %v14315_v52  ;;  %v15740_v0 = vadd.f32 %v12746_v54, %v9447_v59  ;;  %v14352_v54 = vld [vmem:[%s15156_s16 + $0x10e0] sm:$0xff]   ;;  %v14356_v59 = vld [vmem:[%s15156_s16 + $0x10d8] sm:$0xff]  }
 0x254   : > { %v14358_v61 = vld [vmem:[%s15156_s16 + $0x1098] sm:$0xff]   ;;  %v14359_v62 = vld [vmem:[%s15156_s16 + $0x1050] sm:$0xff]  }
 0x255   : > { %13019 = vmatpush3.bf16.msra.mxu0 %v14316_v55 }
 0x256   : > { %13041 = vmatpush3.bf16.msra.mxu1 %v14317_v58  ;;  %13020 = vmatprep.subr.bf16.mxu0 %v14318_v60  ;;  %v14355_v58 = vld [vmem:[%s15156_s16 + $0x1058] sm:$0xff]  }
 0x257   : > { %13042 = vmatprep.subr.bf16.mxu1 %v14319_v63  ;;  %v14357_v60 = vld [vmem:[%s15156_s16 + $0x1018] sm:$0xff]   ;;  %v14360_v63 = vld [vmem:[%s15156_s16 + $0x10d0] sm:$0xff]  }
 0x259   : > { %13021 = vmatpush3.bf16.msra.mxu0 %v14320_v1  ;;  %v14362_v1 = vld [vmem:[%s15156_s16 + $0x1090] sm:$0xff]  }
 0x25a   : > { %13043 = vmatpush3.bf16.msra.mxu1 %v14321_v2  ;;  %13022 = vmatprep.subr.bf16.mxu0 %v14322_v3  ;;  %v14363_v2 = vld [vmem:[%s15156_s16 + $0x1048] sm:$0xff]  }
 0x25b   : > { %13044 = vmatprep.subr.bf16.mxu1 %v14323_v4  ;;  %v14364_v3 = vld [vmem:[%s15156_s16 + $0x10c8] sm:$0xff]  }
 0x25c   : > { %v14365_v4 = vld [vmem:[%s15156_s16 + $0x1008] sm:$0xff]  }
 0x25d   : > { %13023 = vmatpush3.bf16.msra.mxu0 %v14324_v5  ;;  %v14366_v5 = vld [vmem:[%s15156_s16 + $0x1088] sm:$0xff]  }
 0x25e   : > { %13045 = vmatpush3.bf16.msra.mxu1 %v14325_v6  ;;  %13024 = vmatprep.subr.bf16.mxu0 %v14326_v7  ;;  %v14367_v6 = vld [vmem:[%s15156_s16 + $0x1040] sm:$0xff]  }
 0x25f   : > { %13046 = vmatprep.subr.bf16.mxu1 %v14327_v8  ;;  %v14368_v7 = vld [vmem:[%s15156_s16 + $0x10c0] sm:$0xff]  }
 0x260   : > { %v14369_v8 = vld [vmem:[%s15156_s16 + $0x1000] sm:$0xff]  }
 0x261   : > { %13025 = vmatpush3.bf16.msra.mxu0 %v14328_v9  ;;  %v297_v9 = vld [vmem:[%s15205_s15 + $0x80] sm:$0xff] }
 0x262   : > { %13047 = vmatpush3.bf16.msra.mxu1 %v14329_v10  ;;  %13026 = vmatprep.subr.bf16.mxu0 %v14330_v11  ;;  %v14370_v10 = vld [vmem:[%s15156_s16 + $0x1080] sm:$0xff]   ;;  %v620_v11 = vrot.slane %v297_v9, %v15210_v42 }
 0x263   : > { %13048 = vmatprep.subr.bf16.mxu1 %v14331_v12  ;;  %v613_v12 = vcombine.high %v297_v9, %v297_v9 }
 0x264   : > { %v1035_v20 = vpack.c.bf16 %v620_v11, %v620_v11 }
 0x265   : > { %13027 = vmatpush3.bf16.msra.mxu0 %v14332_v13  ;;  %v14372_v13 = vld [vmem:[%s15156_s16 + $0x1178] sm:$0xff]  }
 0x266   : > { %13049 = vmatpush3.bf16.msra.mxu1 %v14333_v14  ;;  %13028 = vmatprep.subr.bf16.mxu0 %v14334_v15  ;;  %v628_v14 = vcombine.high %v620_v11, %v620_v11  ;;  %v627_v15 = vrot.slane %v613_v12, %v15210_v42  ;;  %v14408_v12 = vld [vmem:[%s15156_s16 + $0x12b8] sm:$0xff]  }
 0x267   : > { %13050 = vmatprep.subr.bf16.mxu1 %v14335_v16  ;;  %v14373_v16 = vld [vmem:[%s15156_s16 + $0x11f8] sm:$0xff]  }
 0x268   : > { %v1036_v18 = vpack.c.bf16 %v628_v14, %v628_v14  ;;  %v14409_v14 = vld [vmem:[%s15156_s16 + $0x1270] sm:$0xff]  }
 0x269   : > { %13029 = vmatpush3.bf16.msra.mxu0 %v14336_v17  ;;  %v14374_v17 = vld [vmem:[%s15156_s16 + $0x1138] sm:$0xff]  }
 0x26a   : > { %13051 = vmatpush3.bf16.msra.mxu1 %v14337_v19  ;;  %13058 = vmatprep.subr.bf16.mxu0 %v14339_v22  ;;  %v629_v19 = vcombine.high %v627_v15, %v627_v15  ;;  %v1037_v22 = vpack.c.bf16 %v627_v15, %v627_v15 }
 0x26b   : > { %13080 = vmatprep.subr.bf16.mxu1 %v14340_v25  ;;  %v14377_v25 = vld [vmem:[%s15156_s16 + $0x11f0] sm:$0xff]  }
 0x26c   : > { %v12766_v36 = vpop.f32.mrf.mxu0  ;;  %10005 = vmatmul.mubr.bf16.vlgmr.msra.gmra.mxu0 %v1031_v29  ;;  %v1038_v24 = vpack.c.bf16 %v629_v19, %v629_v19  ;;  %v14379_v29 = vld [vmem:[%s15156_s16 + $0x11b0] sm:$0xff]  }
 0x26d   : > { %v12788_v37 = vpop.f32.mrf.mxu1  ;;  %10045 = vmatmul.mubr.bf16.vlgmr.msra.gmra.mxu1 %v1033_v31  ;;  %13059 = vmatpush3.bf16.msra.mxu0 %v14341_v26  ;;  %v14378_v26 = vld [vmem:[%s15156_s16 + $0x1130] sm:$0xff]  }
 0x26e   : > { %13081 = vmatpush3.bf16.msra.mxu1 %v14342_v30  ;;  %v12767_v40 = vpop.f32.mrf.mxu0  ;;  %13060 = vmatprep.subr.bf16.mxu0 %v14343_v32  ;;  %v14380_v30 = vld [vmem:[%s15156_s16 + $0x1168] sm:$0xff]  }
 0x26f   : > { %v12789_v41 = vpop.f32.mrf.mxu1  ;;  %v12768_v44 = vadd.f32 %v12767_v40, %v12766_v36  ;;  %13082 = vmatprep.subr.bf16.mxu1 %v14344_v34  ;;  %10084 = vmatprep.mubr.bf16.mxu0 %v1036_v18  ;;  %v14382_v36 = vld [vmem:[%s15156_s16 + $0x1128] sm:$0xff]  }
 0x270   : > { %v12790_v45 = vadd.f32 %v12789_v41, %v12788_v37  ;;  %v12769_v47 = vpop.f32.mrf.mxu0  ;;  %10124 = vmatprep.mubr.bf16.mxu1 %v1038_v24  ;;  %v14384_v41 = vld [vmem:[%s15156_s16 + $0x1160] sm:$0xff]   ;;  %v14414_v24 = vld [vmem:[%s15156_s16 + $0x12e8] sm:$0xff]  }
 0x271   : > { %v12791_v48 = vpop.f32.mrf.mxu1  ;;  %v9527_v50 = vadd.f32 %v12768_v44, %v15740_v0  ;;  %13061 = vmatpush3.bf16.msra.mxu0 %v14345_v35  ;;  %v14361_v0 = vld [vmem:[%s15156_s16 + $0x1010] sm:$0xff]   ;;  %v14386_v47 = vld [vmem:[%s15156_s16 + $0x1120] sm:$0xff]  }
 0x272   : > { %13083 = vmatpush3.bf16.msra.mxu1 %v14346_v38  ;;  %v12770_v52 = vpop.f32.mrf.mxu0  ;;  %13062 = vmatprep.subr.bf16.mxu0 %v14347_v39  ;;  %v14383_v39 = vld [vmem:[%s15156_s16 + $0x11a8] sm:$0xff]   ;;  %v14387_v48 = vld [vmem:[%s15156_s16 + $0x11a0] sm:$0xff]  }
 0x273   : > { %v12792_v53 = vpop.f32.mrf.mxu1  ;;  %v15778_v55 = vadd.f32 %v12790_v45, %v9527_v50  ;;  %13084 = vmatprep.subr.bf16.mxu1 %v14348_v43  ;;  %v14385_v45 = vld [vmem:[%s15156_s16 + $0x11e0] sm:$0xff]   ;;  %v14389_v50 = vld [vmem:[%s15156_s16 + $0x11d8] sm:$0xff]  }
 0x274   : > { %v14391_v52 = vld [vmem:[%s15156_s16 + $0x1198] sm:$0xff]   ;;  %v14392_v53 = vld [vmem:[%s15156_s16 + $0x1150] sm:$0xff]  }
 0x275   : > { %13063 = vmatpush3.bf16.msra.mxu0 %v14349_v46 }
 0x276   : > { %13085 = vmatpush3.bf16.msra.mxu1 %v14350_v49  ;;  %13064 = vmatprep.subr.bf16.mxu0 %v14351_v51  ;;  %v14388_v49 = vld [vmem:[%s15156_s16 + $0x1158] sm:$0xff]  }
 0x277   : > { %13086 = vmatprep.subr.bf16.mxu1 %v14352_v54  ;;  %v14390_v51 = vld [vmem:[%s15156_s16 + $0x1118] sm:$0xff]   ;;  %v14393_v54 = vld [vmem:[%s15156_s16 + $0x11d0] sm:$0xff]  }
 0x279   : > { %13065 = vmatpush3.bf16.msra.mxu0 %v14353_v56  ;;  %v14395_v56 = vld [vmem:[%s15156_s16 + $0x1190] sm:$0xff]  }
 0x27a   : > { %13087 = vmatpush3.bf16.msra.mxu1 %v14354_v57  ;;  %13066 = vmatprep.subr.bf16.mxu0 %v14355_v58  ;;  %v14396_v57 = vld [vmem:[%s15156_s16 + $0x1148] sm:$0xff]  }
 0x27b   : > { %13088 = vmatprep.subr.bf16.mxu1 %v14356_v59  ;;  %v14397_v58 = vld [vmem:[%s15156_s16 + $0x11c8] sm:$0xff]  }
 0x27c   : > { %v14398_v59 = vld [vmem:[%s15156_s16 + $0x1108] sm:$0xff]  }
 0x27d   : > { %13067 = vmatpush3.bf16.msra.mxu0 %v14357_v60  ;;  %v14399_v60 = vld [vmem:[%s15156_s16 + $0x1188] sm:$0xff]  }
 0x27e   : > { %13089 = vmatpush3.bf16.msra.mxu1 %v14358_v61  ;;  %13068 = vmatprep.subr.bf16.mxu0 %v14359_v62  ;;  %v14400_v61 = vld [vmem:[%s15156_s16 + $0x1140] sm:$0xff]  }
 0x27f   : > { %13090 = vmatprep.subr.bf16.mxu1 %v14360_v63  ;;  %v14401_v62 = vld [vmem:[%s15156_s16 + $0x11c0] sm:$0xff]  }
 0x280   : > { %v14402_v63 = vld [vmem:[%s15156_s16 + $0x1100] sm:$0xff]  }
 0x281   : > { %13069 = vmatpush3.bf16.msra.mxu0 %v14361_v0  ;;  %v298_v0 = vld [vmem:[%s15205_s15 + $0x88] sm:$0xff] }
 0x282   : > { %13091 = vmatpush3.bf16.msra.mxu1 %v14362_v1  ;;  %13070 = vmatprep.subr.bf16.mxu0 %v14363_v2  ;;  %v14403_v1 = vld [vmem:[%s15156_s16 + $0x1180] sm:$0xff]   ;;  %v637_v2 = vrot.slane %v298_v0, %v15210_v42 }
 0x283   : > { %13092 = vmatprep.subr.bf16.mxu1 %v14364_v3  ;;  %v630_v3 = vcombine.high %v298_v0, %v298_v0  ;;  %v14440_v0 = vld [vmem:[%s15156_s16 + $0x1338] sm:$0xff]  }
 0x284   : > { %v1039_v11 = vpack.c.bf16 %v637_v2, %v637_v2 }
 0x285   : > { %13071 = vmatpush3.bf16.msra.mxu0 %v14365_v4  ;;  %v14405_v4 = vld [vmem:[%s15156_s16 + $0x1278] sm:$0xff]  }
 0x286   : > { %13093 = vmatpush3.bf16.msra.mxu1 %v14366_v5  ;;  %13072 = vmatprep.subr.bf16.mxu0 %v14367_v6  ;;  %v645_v5 = vcombine.high %v637_v2, %v637_v2  ;;  %v644_v6 = vrot.slane %v630_v3, %v15210_v42  ;;  %v14441_v3 = vld [vmem:[%s15156_s16 + $0x13b8] sm:$0xff]  }
 0x287   : > { %13094 = vmatprep.subr.bf16.mxu1 %v14368_v7  ;;  %v14406_v7 = vld [vmem:[%s15156_s16 + $0x12f8] sm:$0xff]  }
 0x288   : > { %v1040_v9 = vpack.c.bf16 %v645_v5, %v645_v5  ;;  %v14442_v5 = vld [vmem:[%s15156_s16 + $0x1370] sm:$0xff]  }
 0x289   : > { %13073 = vmatpush3.bf16.msra.mxu0 %v14369_v8  ;;  %v14407_v8 = vld [vmem:[%s15156_s16 + $0x1238] sm:$0xff]  }
 0x28a   : > { %13095 = vmatpush3.bf16.msra.mxu1 %v14370_v10  ;;  %13102 = vmatprep.subr.bf16.mxu0 %v14372_v13  ;;  %v646_v10 = vcombine.high %v644_v6, %v644_v6  ;;  %v1041_v13 = vpack.c.bf16 %v644_v6, %v644_v6 }
 0x28b   : > { %13124 = vmatprep.subr.bf16.mxu1 %v14373_v16  ;;  %v14410_v16 = vld [vmem:[%s15156_s16 + $0x12f0] sm:$0xff]  }
 0x28c   : > { %v12810_v27 = vpop.f32.mrf.mxu0  ;;  %10085 = vmatmul.mubr.bf16.vlgmr.msra.gmra.mxu0 %v1035_v20  ;;  %v1042_v15 = vpack.c.bf16 %v646_v10, %v646_v10  ;;  %v14412_v20 = vld [vmem:[%s15156_s16 + $0x12b0] sm:$0xff]  }
 0x28d   : > { %v12832_v28 = vpop.f32.mrf.mxu1  ;;  %10125 = vmatmul.mubr.bf16.vlgmr.msra.gmra.mxu1 %v1037_v22  ;;  %13103 = vmatpush3.bf16.msra.mxu0 %v14374_v17  ;;  %v14411_v17 = vld [vmem:[%s15156_s16 + $0x1230] sm:$0xff]  }
 0x28e   : > { %13125 = vmatpush3.bf16.msra.mxu1 %v14375_v21  ;;  %v12811_v31 = vpop.f32.mrf.mxu0  ;;  %13104 = vmatprep.subr.bf16.mxu0 %v14376_v23  ;;  %v14413_v21 = vld [vmem:[%s15156_s16 + $0x1268] sm:$0xff]   ;;  %v14444_v10 = vld [vmem:[%s15156_s16 + $0x1330] sm:$0xff]  }
 0x28f   : > { %v12833_v32 = vpop.f32.mrf.mxu1  ;;  %v12812_v34 = vadd.f32 %v12811_v31, %v12810_v27  ;;  %13126 = vmatprep.subr.bf16.mxu1 %v14377_v25  ;;  %10164 = vmatprep.mubr.bf16.mxu0 %v1040_v9  ;;  %v14415_v27 = vld [vmem:[%s15156_s16 + $0x1228] sm:$0xff]  }
 0x290   : > { %v12834_v35 = vadd.f32 %v12833_v32, %v12832_v28  ;;  %v12813_v37 = vpop.f32.mrf.mxu0  ;;  %10204 = vmatprep.mubr.bf16.mxu1 %v1042_v15  ;;  %v14417_v32 = vld [vmem:[%s15156_s16 + $0x1260] sm:$0xff]  }
 0x291   : > { %v12835_v38 = vpop.f32.mrf.mxu1  ;;  %v9607_v40 = vadd.f32 %v12812_v34, %v15778_v55  ;;  %13105 = vmatpush3.bf16.msra.mxu0 %v14378_v26  ;;  %v14394_v55 = vld [vmem:[%s15156_s16 + $0x1110] sm:$0xff]   ;;  %v14419_v37 = vld [vmem:[%s15156_s16 + $0x1220] sm:$0xff]  }
 0x292   : > { %13127 = vmatpush3.bf16.msra.mxu1 %v14379_v29  ;;  %v12814_v43 = vpop.f32.mrf.mxu0  ;;  %13106 = vmatprep.subr.bf16.mxu0 %v14380_v30  ;;  %v14416_v30 = vld [vmem:[%s15156_s16 + $0x12a8] sm:$0xff]   ;;  %v14420_v38 = vld [vmem:[%s15156_s16 + $0x12a0] sm:$0xff]  }
 0x293   : > { %v12836_v44 = vpop.f32.mrf.mxu1  ;;  %v15816_v46 = vadd.f32 %v12834_v35, %v9607_v40  ;;  %13128 = vmatprep.subr.bf16.mxu1 %v14381_v33  ;;  %v14418_v35 = vld [vmem:[%s15156_s16 + $0x12e0] sm:$0xff]   ;;  %v14422_v40 = vld [vmem:[%s15156_s16 + $0x12d8] sm:$0xff]  }
 0x294   : > { %v14424_v43 = vld [vmem:[%s15156_s16 + $0x1298] sm:$0xff]   ;;  %v14425_v44 = vld [vmem:[%s15156_s16 + $0x1250] sm:$0xff]  }
 0x295   : > { %13107 = vmatpush3.bf16.msra.mxu0 %v14382_v36 }
 0x296   : > { %13129 = vmatpush3.bf16.msra.mxu1 %v14383_v39  ;;  %13108 = vmatprep.subr.bf16.mxu0 %v14384_v41  ;;  %v14421_v39 = vld [vmem:[%s15156_s16 + $0x1258] sm:$0xff]  }
 0x297   : > { %13130 = vmatprep.subr.bf16.mxu1 %v14385_v45  ;;  %v14423_v41 = vld [vmem:[%s15156_s16 + $0x1218] sm:$0xff]   ;;  %v14426_v45 = vld [vmem:[%s15156_s16 + $0x12d0] sm:$0xff]  }
 0x299   : > { %13109 = vmatpush3.bf16.msra.mxu0 %v14386_v47  ;;  %v14428_v47 = vld [vmem:[%s15156_s16 + $0x1290] sm:$0xff]  }
 0x29a   : > { %13131 = vmatpush3.bf16.msra.mxu1 %v14387_v48  ;;  %13110 = vmatprep.subr.bf16.mxu0 %v14388_v49  ;;  %v14429_v48 = vld [vmem:[%s15156_s16 + $0x1248] sm:$0xff]  }
 0x29b   : > { %13132 = vmatprep.subr.bf16.mxu1 %v14389_v50  ;;  %v14430_v49 = vld [vmem:[%s15156_s16 + $0x12c8] sm:$0xff]  }
 0x29c   : > { %v14431_v50 = vld [vmem:[%s15156_s16 + $0x1208] sm:$0xff]  }
 0x29d   : > { %13111 = vmatpush3.bf16.msra.mxu0 %v14390_v51  ;;  %v14432_v51 = vld [vmem:[%s15156_s16 + $0x1288] sm:$0xff]  }
 0x29e   : > { %13133 = vmatpush3.bf16.msra.mxu1 %v14391_v52  ;;  %13112 = vmatprep.subr.bf16.mxu0 %v14392_v53  ;;  %v14433_v52 = vld [vmem:[%s15156_s16 + $0x1240] sm:$0xff]  }
 0x29f   : > { %13134 = vmatprep.subr.bf16.mxu1 %v14393_v54  ;;  %v14434_v53 = vld [vmem:[%s15156_s16 + $0x12c0] sm:$0xff]  }
 0x2a0   : > { %v14435_v54 = vld [vmem:[%s15156_s16 + $0x1200] sm:$0xff]  }
 0x2a1   : > { %13113 = vmatpush3.bf16.msra.mxu0 %v14394_v55  ;;  %v299_v55 = vld [vmem:[%s15205_s15 + $0x90] sm:$0xff] }
 0x2a2   : > { %13135 = vmatpush3.bf16.msra.mxu1 %v14395_v56  ;;  %13114 = vmatprep.subr.bf16.mxu0 %v14396_v57  ;;  %v14436_v56 = vld [vmem:[%s15156_s16 + $0x1280] sm:$0xff]   ;;  %v654_v57 = vrot.slane %v299_v55, %v15210_v42 }
 0x2a3   : > { %13136 = vmatprep.subr.bf16.mxu1 %v14397_v58  ;;  %v647_v58 = vcombine.high %v299_v55, %v299_v55  ;;  %v14473_v55 = vld [vmem:[%s15156_s16 + $0x1438] sm:$0xff]  }
 0x2a5   : > { %13115 = vmatpush3.bf16.msra.mxu0 %v14398_v59  ;;  %v14438_v59 = vld [vmem:[%s15156_s16 + $0x1378] sm:$0xff]  }
 0x2a6   : > { %13137 = vmatpush3.bf16.msra.mxu1 %v14399_v60  ;;  %13116 = vmatprep.subr.bf16.mxu0 %v14400_v61  ;;  %v662_v60 = vcombine.high %v654_v57, %v654_v57  ;;  %v661_v61 = vrot.slane %v647_v58, %v15210_v42  ;;  %v14474_v58 = vld [vmem:[%s15156_s16 + $0x14b8] sm:$0xff]  }
 0x2a7   : > { %13138 = vmatprep.subr.bf16.mxu1 %v14401_v62  ;;  %v14439_v62 = vld [vmem:[%s15156_s16 + $0x13f8] sm:$0xff]  }
 0x2a8   : > { %v663_v2 = vcombine.high %v661_v61, %v661_v61 }
 0x2a9   : > { %13117 = vmatpush3.bf16.msra.mxu0 %v14402_v63  ;;  %v1043_v63 = vpack.c.bf16 %v654_v57, %v654_v57 }
 0x2aa   : > { %13139 = vmatpush3.bf16.msra.mxu1 %v14403_v1  ;;  %13146 = vmatprep.subr.bf16.mxu0 %v14405_v4  ;;  %v1044_v1 = vpack.c.bf16 %v662_v60, %v662_v60  ;;  %v1045_v4 = vpack.c.bf16 %v661_v61, %v661_v61  ;;  %v1046_v6 = vpack.c.bf16 %v663_v2, %v663_v2  ;;  %v14475_v60 = vld [vmem:[%s15156_s16 + $0x1470] sm:$0xff]  }
 0x2ab   : > { %13168 = vmatprep.subr.bf16.mxu1 %v14406_v7  ;;  %v14443_v7 = vld [vmem:[%s15156_s16 + $0x13f0] sm:$0xff]  }
 0x2ac   : > { %v12854_v18 = vpop.f32.mrf.mxu0  ;;  %10165 = vmatmul.mubr.bf16.vlgmr.msra.gmra.mxu0 %v1039_v11  ;;  %v14445_v11 = vld [vmem:[%s15156_s16 + $0x13b0] sm:$0xff]  }
 0x2ad   : > { %v12876_v19 = vpop.f32.mrf.mxu1  ;;  %10205 = vmatmul.mubr.bf16.vlgmr.msra.gmra.mxu1 %v1041_v13  ;;  %13147 = vmatpush3.bf16.msra.mxu0 %v14407_v8  ;;  %v14478_v2 = vld [vmem:[%s15156_s16 + $0x14b0] sm:$0xff]  }
 0x2ae   : > { %13169 = vmatpush3.bf16.msra.mxu1 %v14408_v12  ;;  %v12855_v22 = vpop.f32.mrf.mxu0  ;;  %13148 = vmatprep.subr.bf16.mxu0 %v14409_v14  ;;  %v14446_v14 = vld [vmem:[%s15156_s16 + $0x1368] sm:$0xff]  }
 0x2af   : > { %v12877_v23 = vpop.f32.mrf.mxu1  ;;  %v12856_v25 = vadd.f32 %v12855_v22, %v12854_v18  ;;  %13170 = vmatprep.subr.bf16.mxu1 %v14410_v16  ;;  %10244 = vmatprep.mubr.bf16.mxu0 %v1044_v1  ;;  %v14449_v22 = vld [vmem:[%s15156_s16 + $0x13a8] sm:$0xff]   ;;  %v14477_v1 = vld [vmem:[%s15156_s16 + $0x1430] sm:$0xff]  }
 0x2b0   : > { %v12878_v26 = vadd.f32 %v12877_v23, %v12876_v19  ;;  %v12857_v28 = vpop.f32.mrf.mxu0  ;;  %10284 = vmatprep.mubr.bf16.mxu1 %v1046_v6 }
 0x2b1   : > { %v12879_v29 = vpop.f32.mrf.mxu1  ;;  %v9687_v31 = vadd.f32 %v12856_v25, %v15816_v46  ;;  %13149 = vmatpush3.bf16.msra.mxu0 %v14411_v17  ;;  %v14427_v46 = vld [vmem:[%s15156_s16 + $0x1210] sm:$0xff]   ;;  %v14447_v17 = vld [vmem:[%s15156_s16 + $0x13e8] sm:$0xff]   ;;  %v14450_v25 = vld [vmem:[%s15156_s16 + $0x1360] sm:$0xff]  }
 0x2b2   : > { %13171 = vmatpush3.bf16.msra.mxu1 %v14412_v20  ;;  %v12858_v33 = vpop.f32.mrf.mxu0  ;;  %13150 = vmatprep.subr.bf16.mxu0 %v14413_v21  ;;  %v14448_v20 = vld [vmem:[%s15156_s16 + $0x1328] sm:$0xff]   ;;  %v14452_v28 = vld [vmem:[%s15156_s16 + $0x1320] sm:$0xff]  }
 0x2b3   : > { %v12880_v34 = vpop.f32.mrf.mxu1  ;;  %v15854_v36 = vadd.f32 %v12878_v26, %v9687_v31  ;;  %13172 = vmatprep.subr.bf16.mxu1 %v14414_v24  ;;  %v14453_v29 = vld [vmem:[%s15156_s16 + $0x13a0] sm:$0xff]   ;;  %v14455_v31 = vld [vmem:[%s15156_s16 + $0x13d8] sm:$0xff]  }
 0x2b4   : > { %v14457_v33 = vld [vmem:[%s15156_s16 + $0x1398] sm:$0xff]   ;;  %v14458_v34 = vld [vmem:[%s15156_s16 + $0x1350] sm:$0xff]  }
 0x2b5   : > { %13151 = vmatpush3.bf16.msra.mxu0 %v14415_v27  ;;  %v14451_v27 = vld [vmem:[%s15156_s16 + $0x13e0] sm:$0xff]  }
 0x2b6   : > { %13173 = vmatpush3.bf16.msra.mxu1 %v14416_v30  ;;  %13152 = vmatprep.subr.bf16.mxu0 %v14417_v32  ;;  %v14454_v30 = vld [vmem:[%s15156_s16 + $0x1358] sm:$0xff]  }
 0x2b7   : > { %13174 = vmatprep.subr.bf16.mxu1 %v14418_v35  ;;  %v14456_v32 = vld [vmem:[%s15156_s16 + $0x1318] sm:$0xff]   ;;  %v14459_v35 = vld [vmem:[%s15156_s16 + $0x13d0] sm:$0xff]  }
 0x2b9   : > { %13153 = vmatpush3.bf16.msra.mxu0 %v14419_v37  ;;  %v14461_v37 = vld [vmem:[%s15156_s16 + $0x1390] sm:$0xff]  }
 0x2ba   : > { %13175 = vmatpush3.bf16.msra.mxu1 %v14420_v38  ;;  %13154 = vmatprep.subr.bf16.mxu0 %v14421_v39  ;;  %v14462_v38 = vld [vmem:[%s15156_s16 + $0x1348] sm:$0xff]  }
 0x2bb   : > { %13176 = vmatprep.subr.bf16.mxu1 %v14422_v40  ;;  %v14463_v39 = vld [vmem:[%s15156_s16 + $0x13c8] sm:$0xff]  }
 0x2bc   : > { %v14464_v40 = vld [vmem:[%s15156_s16 + $0x1308] sm:$0xff]  }
 0x2bd   : > { %13155 = vmatpush3.bf16.msra.mxu0 %v14423_v41  ;;  %v14465_v41 = vld [vmem:[%s15156_s16 + $0x1388] sm:$0xff]  }
 0x2be   : > { %13177 = vmatpush3.bf16.msra.mxu1 %v14424_v43  ;;  %13156 = vmatprep.subr.bf16.mxu0 %v14425_v44  ;;  %v14466_v43 = vld [vmem:[%s15156_s16 + $0x1340] sm:$0xff]  }
 0x2bf   : > { %13178 = vmatprep.subr.bf16.mxu1 %v14426_v45  ;;  %v14467_v44 = vld [vmem:[%s15156_s16 + $0x13c0] sm:$0xff]  }
 0x2c0   : > { %v14468_v45 = vld [vmem:[%s15156_s16 + $0x1300] sm:$0xff]  }
 0x2c1   : > { %13157 = vmatpush3.bf16.msra.mxu0 %v14427_v46  ;;  %v300_v46 = vld [vmem:[%s15205_s15 + $0x98] sm:$0xff] }
 0x2c2   : > { %13179 = vmatpush3.bf16.msra.mxu1 %v14428_v47  ;;  %13158 = vmatprep.subr.bf16.mxu0 %v14429_v48  ;;  %v14469_v47 = vld [vmem:[%s15156_s16 + $0x1380] sm:$0xff]   ;;  %v671_v48 = vrot.slane %v300_v46, %v15210_v42 }
 0x2c3   : > { %13180 = vmatprep.subr.bf16.mxu1 %v14430_v49  ;;  %v664_v49 = vcombine.high %v300_v46, %v300_v46  ;;  %v14506_v46 = vld [vmem:[%s15156_s16 + $0x1538] sm:$0xff]  }
 0x2c5   : > { %13159 = vmatpush3.bf16.msra.mxu0 %v14431_v50  ;;  %v14471_v50 = vld [vmem:[%s15156_s16 + $0x1478] sm:$0xff]  }
 0x2c6   : > { %13181 = vmatpush3.bf16.msra.mxu1 %v14432_v51  ;;  %13160 = vmatprep.subr.bf16.mxu0 %v14433_v52  ;;  %v679_v51 = vcombine.high %v671_v48, %v671_v48  ;;  %v678_v52 = vrot.slane %v664_v49, %v15210_v42  ;;  %v14507_v49 = vld [vmem:[%s15156_s16 + $0x15b8] sm:$0xff]  }
 0x2c7   : > { %13182 = vmatprep.subr.bf16.mxu1 %v14434_v53  ;;  %v14472_v53 = vld [vmem:[%s15156_s16 + $0x14f8] sm:$0xff]  }
 0x2c8   : > { %v680_v57 = vcombine.high %v678_v52, %v678_v52 }
 0x2c9   : > { %13161 = vmatpush3.bf16.msra.mxu0 %v14435_v54  ;;  %v1047_v54 = vpack.c.bf16 %v671_v48, %v671_v48 }
 0x2ca   : > { %13183 = vmatpush3.bf16.msra.mxu1 %v14436_v56  ;;  %13190 = vmatprep.subr.bf16.mxu0 %v14438_v59  ;;  %v1048_v56 = vpack.c.bf16 %v679_v51, %v679_v51  ;;  %v1049_v59 = vpack.c.bf16 %v678_v52, %v678_v52  ;;  %v1050_v61 = vpack.c.bf16 %v680_v57, %v680_v57  ;;  %v14508_v51 = vld [vmem:[%s15156_s16 + $0x1570] sm:$0xff]  }
 0x2cb   : > { %13212 = vmatprep.subr.bf16.mxu1 %v14439_v62  ;;  %v14476_v62 = vld [vmem:[%s15156_s16 + $0x14f0] sm:$0xff]  }
 0x2cc   : > { %v12898_v8 = vpop.f32.mrf.mxu0  ;;  %10245 = vmatmul.mubr.bf16.vlgmr.msra.gmra.mxu0 %v1043_v63  ;;  %v14511_v57 = vld [vmem:[%s15156_s16 + $0x15b0] sm:$0xff]  }
 0x2cd   : > { %v12920_v9 = vpop.f32.mrf.mxu1  ;;  %13191 = vmatpush3.bf16.msra.mxu0 %v14440_v0  ;;  %10285 = vmatmul.mubr.bf16.vlgmr.msra.gmra.mxu1 %v1045_v4 }
 0x2ce   : > { %v12899_v12 = vpop.f32.mrf.mxu0  ;;  %13192 = vmatprep.subr.bf16.mxu0 %v14442_v5  ;;  %13213 = vmatpush3.bf16.msra.mxu1 %v14441_v3  ;;  %v14479_v5 = vld [vmem:[%s15156_s16 + $0x1468] sm:$0xff]  }
 0x2cf   : > { %v12921_v13 = vpop.f32.mrf.mxu1  ;;  %v12900_v15 = vadd.f32 %v12899_v12, %v12898_v8  ;;  %13214 = vmatprep.subr.bf16.mxu1 %v14443_v7  ;;  %10324 = vmatprep.mubr.bf16.mxu0 %v1048_v56  ;;  %v14480_v8 = vld [vmem:[%s15156_s16 + $0x14e8] sm:$0xff]   ;;  %v14510_v56 = vld [vmem:[%s15156_s16 + $0x1530] sm:$0xff]  }
 0x2d0   : > { %v12922_v16 = vadd.f32 %v12921_v13, %v12920_v9  ;;  %v12901_v18 = vpop.f32.mrf.mxu0  ;;  %10364 = vmatprep.mubr.bf16.mxu1 %v1050_v61  ;;  %v14482_v13 = vld [vmem:[%s15156_s16 + $0x14a8] sm:$0xff]  }
 0x2d1   : > { %v12923_v19 = vpop.f32.mrf.mxu1  ;;  %v9767_v21 = vadd.f32 %v12900_v15, %v15854_v36  ;;  %13193 = vmatpush3.bf16.msra.mxu0 %v14444_v10  ;;  %v14460_v36 = vld [vmem:[%s15156_s16 + $0x1310] sm:$0xff]   ;;  %v14484_v18 = vld [vmem:[%s15156_s16 + $0x14e0] sm:$0xff]  }
 0x2d2   : > { %v12902_v23 = vpop.f32.mrf.mxu0  ;;  %13194 = vmatprep.subr.bf16.mxu0 %v14446_v14  ;;  %13215 = vmatpush3.bf16.msra.mxu1 %v14445_v11  ;;  %v14481_v11 = vld [vmem:[%s15156_s16 + $0x1428] sm:$0xff]   ;;  %v14485_v19 = vld [vmem:[%s15156_s16 + $0x1420] sm:$0xff]  }
 0x2d3   : > { %v12924_v24 = vpop.f32.mrf.mxu1  ;;  %v15891_v26 = vadd.f32 %v12922_v16, %v9767_v21  ;;  %13216 = vmatprep.subr.bf16.mxu1 %v14447_v17  ;;  %v14483_v16 = vld [vmem:[%s15156_s16 + $0x1460] sm:$0xff]   ;;  %v14487_v21 = vld [vmem:[%s15156_s16 + $0x1458] sm:$0xff]  }
 0x2d4   : > { %v14489_v23 = vld [vmem:[%s15156_s16 + $0x1418] sm:$0xff]  }
 0x2d5   : > { %13195 = vmatpush3.bf16.msra.mxu0 %v14448_v20  ;;  %v14486_v20 = vld [vmem:[%s15156_s16 + $0x14a0] sm:$0xff]   ;;  %v14490_v24 = vld [vmem:[%s15156_s16 + $0x1498] sm:$0xff]  }
 0x2d6   : > { %13196 = vmatprep.subr.bf16.mxu0 %v14450_v25  ;;  %13217 = vmatpush3.bf16.msra.mxu1 %v14449_v22  ;;  %v14488_v22 = vld [vmem:[%s15156_s16 + $0x14d8] sm:$0xff]   ;;  %v14491_v25 = vld [vmem:[%s15156_s16 + $0x1450] sm:$0xff]  }
 0x2d7   : > { %13218 = vmatprep.subr.bf16.mxu1 %v14451_v27  ;;  %v14493_v27 = vld [vmem:[%s15156_s16 + $0x1410] sm:$0xff]  }
 0x2d9   : > { %13197 = vmatpush3.bf16.msra.mxu0 %v14452_v28  ;;  %v14494_v28 = vld [vmem:[%s15156_s16 + $0x1490] sm:$0xff]  }
 0x2da   : > { %13198 = vmatprep.subr.bf16.mxu0 %v14454_v30  ;;  %13219 = vmatpush3.bf16.msra.mxu1 %v14453_v29  ;;  %v14495_v29 = vld [vmem:[%s15156_s16 + $0x1448] sm:$0xff]  }
 0x2db   : > { %13220 = vmatprep.subr.bf16.mxu1 %v14455_v31  ;;  %v14496_v30 = vld [vmem:[%s15156_s16 + $0x14c8] sm:$0xff]  }
 0x2dc   : > { %v14497_v31 = vld [vmem:[%s15156_s16 + $0x1408] sm:$0xff]  }
 0x2dd   : > { %13199 = vmatpush3.bf16.msra.mxu0 %v14456_v32  ;;  %v14498_v32 = vld [vmem:[%s15156_s16 + $0x1488] sm:$0xff]  }
 0x2de   : > { %13200 = vmatprep.subr.bf16.mxu0 %v14458_v34  ;;  %13221 = vmatpush3.bf16.msra.mxu1 %v14457_v33  ;;  %v14499_v33 = vld [vmem:[%s15156_s16 + $0x1440] sm:$0xff]  }
 0x2df   : > { %13222 = vmatprep.subr.bf16.mxu1 %v14459_v35  ;;  %v14500_v34 = vld [vmem:[%s15156_s16 + $0x14c0] sm:$0xff]  }
 0x2e0   : > { %v14501_v35 = vld [vmem:[%s15156_s16 + $0x1400] sm:$0xff]  }
 0x2e1   : > { %13201 = vmatpush3.bf16.msra.mxu0 %v14460_v36  ;;  %v301_v36 = vld [vmem:[%s15205_s15 + $0xa0] sm:$0xff] }
 0x2e2   : > { %13202 = vmatprep.subr.bf16.mxu0 %v14462_v38  ;;  %13223 = vmatpush3.bf16.msra.mxu1 %v14461_v37  ;;  %v14502_v37 = vld [vmem:[%s15156_s16 + $0x1480] sm:$0xff]   ;;  %v688_v38 = vrot.slane %v301_v36, %v15210_v42 }
 0x2e3   : > { %13224 = vmatprep.subr.bf16.mxu1 %v14463_v39  ;;  %v681_v39 = vcombine.high %v301_v36, %v301_v36  ;;  %v14539_v36 = vld [vmem:[%s15156_s16 + $0x1638] sm:$0xff]  }
 0x2e5   : > { %13203 = vmatpush3.bf16.msra.mxu0 %v14464_v40  ;;  %v14504_v40 = vld [vmem:[%s15156_s16 + $0x1578] sm:$0xff]  }
 0x2e6   : > { %13204 = vmatprep.subr.bf16.mxu0 %v14466_v43  ;;  %13225 = vmatpush3.bf16.msra.mxu1 %v14465_v41  ;;  %v696_v41 = vcombine.high %v688_v38, %v688_v38  ;;  %v695_v43 = vrot.slane %v681_v39, %v15210_v42  ;;  %v14540_v39 = vld [vmem:[%s15156_s16 + $0x16b8] sm:$0xff]  }
 0x2e7   : > { %13226 = vmatprep.subr.bf16.mxu1 %v14467_v44  ;;  %v14505_v44 = vld [vmem:[%s15156_s16 + $0x15f8] sm:$0xff]  }
 0x2e8   : > { %v697_v48 = vcombine.high %v695_v43, %v695_v43 }
 0x2e9   : > { %13205 = vmatpush3.bf16.msra.mxu0 %v14468_v45  ;;  %v1051_v45 = vpack.c.bf16 %v688_v38, %v688_v38 }
 0x2ea   : > { %13234 = vmatprep.subr.bf16.mxu0 %v14471_v50  ;;  %13227 = vmatpush3.bf16.msra.mxu1 %v14469_v47  ;;  %v1052_v47 = vpack.c.bf16 %v696_v41, %v696_v41  ;;  %v1053_v50 = vpack.c.bf16 %v695_v43, %v695_v43  ;;  %v1054_v52 = vpack.c.bf16 %v697_v48, %v697_v48  ;;  %v14541_v41 = vld [vmem:[%s15156_s16 + $0x1670] sm:$0xff]  }
 0x2eb   : > { %13256 = vmatprep.subr.bf16.mxu1 %v14472_v53  ;;  %v14509_v53 = vld [vmem:[%s15156_s16 + $0x15f0] sm:$0xff]  }
 0x2ec   : > { %v12942_v63 = vpop.f32.mrf.mxu0  ;;  %10325 = vmatmul.mubr.bf16.vlgmr.msra.gmra.mxu0 %v1047_v54 }
 0x2ed   : > { %v12964_v0 = vpop.f32.mrf.mxu1  ;;  %13235 = vmatpush3.bf16.msra.mxu0 %v14473_v55  ;;  %10365 = vmatmul.mubr.bf16.vlgmr.msra.gmra.mxu1 %v1049_v59 }
 0x2ee   : > { %v12943_v3 = vpop.f32.mrf.mxu0  ;;  %13236 = vmatprep.subr.bf16.mxu0 %v14475_v60  ;;  %13257 = vmatpush3.bf16.msra.mxu1 %v14474_v58  ;;  %v14512_v60 = vld [vmem:[%s15156_s16 + $0x1568] sm:$0xff]  }
 0x2ef   : > { %v12965_v4 = vpop.f32.mrf.mxu1  ;;  %v12944_v6 = vadd.f32 %v12943_v3, %v12942_v63  ;;  %13258 = vmatprep.subr.bf16.mxu1 %v14476_v62  ;;  %10404 = vmatprep.mubr.bf16.mxu0 %v1052_v47  ;;  %v14513_v63 = vld [vmem:[%s15156_s16 + $0x15e8] sm:$0xff]   ;;  %v14543_v47 = vld [vmem:[%s15156_s16 + $0x1630] sm:$0xff]  }
 0x2f0   : > { %v12966_v7 = vadd.f32 %v12965_v4, %v12964_v0  ;;  %v12945_v9 = vpop.f32.mrf.mxu0  ;;  %10444 = vmatprep.mubr.bf16.mxu1 %v1054_v52  ;;  %v14515_v4 = vld [vmem:[%s15156_s16 + $0x15a8] sm:$0xff]  }
 0x2f1   : > { %v12967_v10 = vpop.f32.mrf.mxu1  ;;  %v9847_v12 = vadd.f32 %v12944_v6, %v15891_v26  ;;  %13237 = vmatpush3.bf16.msra.mxu0 %v14477_v1  ;;  %v14492_v26 = vld [vmem:[%s15156_s16 + $0x14d0] sm:$0xff]   ;;  %v14517_v9 = vld [vmem:[%s15156_s16 + $0x15e0] sm:$0xff]   ;;  %v14545_v52 = vld [vmem:[%s15156_s16 + $0x1668] sm:$0xff]  }
 0x2f2   : > { %v12946_v14 = vpop.f32.mrf.mxu0  ;;  %13238 = vmatprep.subr.bf16.mxu0 %v14479_v5  ;;  %13259 = vmatpush3.bf16.msra.mxu1 %v14478_v2  ;;  %v14514_v2 = vld [vmem:[%s15156_s16 + $0x1528] sm:$0xff]   ;;  %v14518_v10 = vld [vmem:[%s15156_s16 + $0x1520] sm:$0xff]  }
 0x2f3   : > { %v12968_v15 = vpop.f32.mrf.mxu1  ;;  %v15929_v17 = vadd.f32 %v12966_v7, %v9847_v12  ;;  %13260 = vmatprep.subr.bf16.mxu1 %v14480_v8  ;;  %v14516_v7 = vld [vmem:[%s15156_s16 + $0x1560] sm:$0xff]   ;;  %v14520_v12 = vld [vmem:[%s15156_s16 + $0x1558] sm:$0xff]  }
 0x2f4   : > { %v14522_v14 = vld [vmem:[%s15156_s16 + $0x1518] sm:$0xff]  }
 0x2f5   : > { %13239 = vmatpush3.bf16.msra.mxu0 %v14481_v11  ;;  %v14519_v11 = vld [vmem:[%s15156_s16 + $0x15a0] sm:$0xff]   ;;  %v14523_v15 = vld [vmem:[%s15156_s16 + $0x1598] sm:$0xff]  }
 0x2f6   : > { %13240 = vmatprep.subr.bf16.mxu0 %v14483_v16  ;;  %13261 = vmatpush3.bf16.msra.mxu1 %v14482_v13  ;;  %v14521_v13 = vld [vmem:[%s15156_s16 + $0x15d8] sm:$0xff]   ;;  %v14524_v16 = vld [vmem:[%s15156_s16 + $0x1550] sm:$0xff]  }
 0x2f7   : > { %13262 = vmatprep.subr.bf16.mxu1 %v14484_v18  ;;  %v14526_v18 = vld [vmem:[%s15156_s16 + $0x1510] sm:$0xff]  }
 0x2f9   : > { %13241 = vmatpush3.bf16.msra.mxu0 %v14485_v19  ;;  %v14527_v19 = vld [vmem:[%s15156_s16 + $0x1590] sm:$0xff]  }
 0x2fa   : > { %13242 = vmatprep.subr.bf16.mxu0 %v14487_v21  ;;  %13263 = vmatpush3.bf16.msra.mxu1 %v14486_v20  ;;  %v14528_v20 = vld [vmem:[%s15156_s16 + $0x1548] sm:$0xff]  }
 0x2fb   : > { %13264 = vmatprep.subr.bf16.mxu1 %v14488_v22  ;;  %v14529_v21 = vld [vmem:[%s15156_s16 + $0x15c8] sm:$0xff]  }
 0x2fc   : > { %v14530_v22 = vld [vmem:[%s15156_s16 + $0x1508] sm:$0xff]  }
 0x2fd   : > { %13243 = vmatpush3.bf16.msra.mxu0 %v14489_v23  ;;  %v14531_v23 = vld [vmem:[%s15156_s16 + $0x1588] sm:$0xff]  }
 0x2fe   : > { %13244 = vmatprep.subr.bf16.mxu0 %v14491_v25  ;;  %13265 = vmatpush3.bf16.msra.mxu1 %v14490_v24  ;;  %v14532_v24 = vld [vmem:[%s15156_s16 + $0x1540] sm:$0xff]  }
 0x2ff   : > { %13266 = vmatprep.subr.bf16.mxu1 %v14492_v26  ;;  %v14533_v25 = vld [vmem:[%s15156_s16 + $0x15c0] sm:$0xff]  }
 0x300   : > { %v14534_v26 = vld [vmem:[%s15156_s16 + $0x1500] sm:$0xff]  }
 0x301   : > { %13245 = vmatpush3.bf16.msra.mxu0 %v14493_v27  ;;  %v302_v27 = vld [vmem:[%s15205_s15 + $0xa8] sm:$0xff] }
 0x302   : > { %13246 = vmatprep.subr.bf16.mxu0 %v14495_v29  ;;  %13267 = vmatpush3.bf16.msra.mxu1 %v14494_v28  ;;  %v705_v28 = vrot.slane %v302_v27, %v15210_v42  ;;  %v698_v29 = vcombine.high %v302_v27, %v302_v27  ;;  %v14572_v27 = vld [vmem:[%s15156_s16 + $0x1738] sm:$0xff]  }
 0x303   : > { %13268 = vmatprep.subr.bf16.mxu1 %v14496_v30  ;;  %v14537_v30 = vld [vmem:[%s15156_s16 + $0x1678] sm:$0xff]  }
 0x305   : > { %13247 = vmatpush3.bf16.msra.mxu0 %v14497_v31  ;;  %v14535_v31 = vld [vmem:[%s15156_s16 + $0x1580] sm:$0xff]  }
 0x306   : > { %13248 = vmatprep.subr.bf16.mxu0 %v14499_v33  ;;  %13269 = vmatpush3.bf16.msra.mxu1 %v14498_v32  ;;  %v713_v32 = vcombine.high %v705_v28, %v705_v28  ;;  %v712_v33 = vrot.slane %v698_v29, %v15210_v42 }
 0x307   : > { %13270 = vmatprep.subr.bf16.mxu1 %v14500_v34  ;;  %v14538_v34 = vld [vmem:[%s15156_s16 + $0x16f8] sm:$0xff]  }
 0x308   : > { %v714_v38 = vcombine.high %v712_v33, %v712_v33 }
 0x309   : > { %13249 = vmatpush3.bf16.msra.mxu0 %v14501_v35  ;;  %v1055_v35 = vpack.c.bf16 %v705_v28, %v705_v28 }
 0x30a   : > { %13278 = vmatprep.subr.bf16.mxu0 %v14504_v40  ;;  %13271 = vmatpush3.bf16.msra.mxu1 %v14502_v37  ;;  %v1056_v37 = vpack.c.bf16 %v713_v32, %v713_v32  ;;  %v1057_v40 = vpack.c.bf16 %v712_v33, %v712_v33  ;;  %v1058_v43 = vpack.c.bf16 %v714_v38, %v714_v38  ;;  %v14574_v32 = vld [vmem:[%s15156_s16 + $0x1770] sm:$0xff]  }
 0x30b   : > { %13300 = vmatprep.subr.bf16.mxu1 %v14505_v44 }
 0x30c   : > { %v12986_v54 = vpop.f32.mrf.mxu0  ;;  %10405 = vmatmul.mubr.bf16.vlgmr.msra.gmra.mxu0 %v1051_v45  ;;  %v14542_v45 = vld [vmem:[%s15156_s16 + $0x16f0] sm:$0xff]  }
 0x30d   : > { %v13008_v55 = vpop.f32.mrf.mxu1  ;;  %13279 = vmatpush3.bf16.msra.mxu0 %v14506_v46  ;;  %10445 = vmatmul.mubr.bf16.vlgmr.msra.gmra.mxu1 %v1053_v50 }
 0x30e   : > { %v12987_v58 = vpop.f32.mrf.mxu0  ;;  %13280 = vmatprep.subr.bf16.mxu0 %v14508_v51  ;;  %13301 = vmatpush3.bf16.msra.mxu1 %v14507_v49  ;;  %v14544_v49 = vld [vmem:[%s15156_s16 + $0x16b0] sm:$0xff]  }
 0x30f   : > { %v13009_v59 = vpop.f32.mrf.mxu1  ;;  %v12988_v61 = vadd.f32 %v12987_v58, %v12986_v54  ;;  %13302 = vmatprep.subr.bf16.mxu1 %v14509_v53  ;;  %10484 = vmatprep.mubr.bf16.mxu0 %v1056_v37  ;;  %v14547_v58 = vld [vmem:[%s15156_s16 + $0x1628] sm:$0xff]   ;;  %v14576_v37 = vld [vmem:[%s15156_s16 + $0x1730] sm:$0xff]  }
 0x310   : > { %v13010_v62 = vadd.f32 %v13009_v59, %v13008_v55  ;;  %v12989_v0 = vpop.f32.mrf.mxu0  ;;  %10524 = vmatprep.mubr.bf16.mxu1 %v1058_v43  ;;  %v14546_v55 = vld [vmem:[%s15156_s16 + $0x16e8] sm:$0xff]  }
 0x311   : > { %v13011_v1 = vpop.f32.mrf.mxu1  ;;  %v9927_v3 = vadd.f32 %v12988_v61, %v15929_v17  ;;  %13281 = vmatpush3.bf16.msra.mxu0 %v14510_v56  ;;  %v14525_v17 = vld [vmem:[%s15156_s16 + $0x15d0] sm:$0xff]   ;;  %v14550_v0 = vld [vmem:[%s15156_s16 + $0x16e0] sm:$0xff]   ;;  %v14578_v43 = vld [vmem:[%s15156_s16 + $0x1768] sm:$0xff]  }
 0x312   : > { %v12990_v5 = vpop.f32.mrf.mxu0  ;;  %13282 = vmatprep.subr.bf16.mxu0 %v14512_v60  ;;  %13303 = vmatpush3.bf16.msra.mxu1 %v14511_v57  ;;  %v14548_v60 = vld [vmem:[%s15156_s16 + $0x16a8] sm:$0xff]   ;;  %v14551_v1 = vld [vmem:[%s15156_s16 + $0x1620] sm:$0xff]  }
 0x313   : > { %v13012_v6 = vpop.f32.mrf.mxu1  ;;  %v15967_v8 = vadd.f32 %v13010_v62, %v9927_v3  ;;  %13304 = vmatprep.subr.bf16.mxu1 %v14513_v63  ;;  %v14549_v63 = vld [vmem:[%s15156_s16 + $0x1660] sm:$0xff]   ;;  %v14553_v3 = vld [vmem:[%s15156_s16 + $0x1658] sm:$0xff]  }
 0x314   : > { %v14555_v5 = vld [vmem:[%s15156_s16 + $0x1618] sm:$0xff]  }
 0x315   : > { %13283 = vmatpush3.bf16.msra.mxu0 %v14514_v2  ;;  %v14552_v2 = vld [vmem:[%s15156_s16 + $0x16a0] sm:$0xff]   ;;  %v14556_v6 = vld [vmem:[%s15156_s16 + $0x1698] sm:$0xff]  }
 0x316   : > { %13284 = vmatprep.subr.bf16.mxu0 %v14516_v7  ;;  %13305 = vmatpush3.bf16.msra.mxu1 %v14515_v4  ;;  %v14554_v4 = vld [vmem:[%s15156_s16 + $0x16d8] sm:$0xff]   ;;  %v14557_v7 = vld [vmem:[%s15156_s16 + $0x1650] sm:$0xff]  }
 0x317   : > { %13306 = vmatprep.subr.bf16.mxu1 %v14517_v9  ;;  %v14559_v9 = vld [vmem:[%s15156_s16 + $0x1610] sm:$0xff]  }
 0x319   : > { %13285 = vmatpush3.bf16.msra.mxu0 %v14518_v10  ;;  %v14560_v10 = vld [vmem:[%s15156_s16 + $0x1690] sm:$0xff]  }
 0x31a   : > { %13286 = vmatprep.subr.bf16.mxu0 %v14520_v12  ;;  %13307 = vmatpush3.bf16.msra.mxu1 %v14519_v11  ;;  %v14561_v11 = vld [vmem:[%s15156_s16 + $0x1648] sm:$0xff]  }
 0x31b   : > { %13308 = vmatprep.subr.bf16.mxu1 %v14521_v13  ;;  %v14562_v12 = vld [vmem:[%s15156_s16 + $0x16c8] sm:$0xff]  }
 0x31c   : > { %v14563_v13 = vld [vmem:[%s15156_s16 + $0x1608] sm:$0xff]  }
 0x31d   : > { %13287 = vmatpush3.bf16.msra.mxu0 %v14522_v14  ;;  %v14564_v14 = vld [vmem:[%s15156_s16 + $0x1688] sm:$0xff]  }
 0x31e   : > { %13288 = vmatprep.subr.bf16.mxu0 %v14524_v16  ;;  %13309 = vmatpush3.bf16.msra.mxu1 %v14523_v15  ;;  %v14565_v15 = vld [vmem:[%s15156_s16 + $0x1640] sm:$0xff]  }
 0x31f   : > { %13310 = vmatprep.subr.bf16.mxu1 %v14525_v17  ;;  %v14566_v16 = vld [vmem:[%s15156_s16 + $0x16c0] sm:$0xff]  }
 0x320   : > { %v14567_v17 = vld [vmem:[%s15156_s16 + $0x1600] sm:$0xff]  }
 0x321   : > { %13289 = vmatpush3.bf16.msra.mxu0 %v14526_v18  ;;  %v303_v18 = vld [vmem:[%s15205_s15 + $0xb0] sm:$0xff] }
 0x322   : > { %13290 = vmatprep.subr.bf16.mxu0 %v14528_v20  ;;  %13311 = vmatpush3.bf16.msra.mxu1 %v14527_v19  ;;  %v14568_v19 = vld [vmem:[%s15156_s16 + $0x1680] sm:$0xff]   ;;  %v722_v20 = vrot.slane %v303_v18, %v15210_v42 }
 0x323   : > { %13312 = vmatprep.subr.bf16.mxu1 %v14529_v21  ;;  %v715_v21 = vcombine.high %v303_v18, %v303_v18  ;;  %v14605_v18 = vld [vmem:[%s15156_s16 + $0x1838] sm:$0xff]  }
 0x325   : > { %13291 = vmatpush3.bf16.msra.mxu0 %v14530_v22  ;;  %v14570_v22 = vld [vmem:[%s15156_s16 + $0x1778] sm:$0xff]  }
 0x326   : > { %13292 = vmatprep.subr.bf16.mxu0 %v14532_v24  ;;  %13313 = vmatpush3.bf16.msra.mxu1 %v14531_v23  ;;  %v730_v23 = vcombine.high %v722_v20, %v722_v20  ;;  %v729_v24 = vrot.slane %v715_v21, %v15210_v42  ;;  %v14606_v21 = vld [vmem:[%s15156_s16 + $0x18b8] sm:$0xff]  }
 0x327   : > { %13314 = vmatprep.subr.bf16.mxu1 %v14533_v25  ;;  %v14571_v25 = vld [vmem:[%s15156_s16 + $0x17f8] sm:$0xff]  }
 0x328   : > { %v1060_v28 = vpack.c.bf16 %v730_v23, %v730_v23  ;;  %v731_v29 = vcombine.high %v729_v24, %v729_v24  ;;  %v14607_v23 = vld [vmem:[%s15156_s16 + $0x1870] sm:$0xff]  }
 0x329   : > { %13293 = vmatpush3.bf16.msra.mxu0 %v14534_v26  ;;  %v1059_v26 = vpack.c.bf16 %v722_v20, %v722_v20 }
 0x32a   : > { %13322 = vmatprep.subr.bf16.mxu0 %v14537_v30  ;;  %13315 = vmatpush3.bf16.msra.mxu1 %v14535_v31  ;;  %v14573_v30 = vld [vmem:[%s15156_s16 + $0x17b8] sm:$0xff]   ;;  %v1061_v31 = vpack.c.bf16 %v729_v24, %v729_v24  ;;  %v1062_v33 = vpack.c.bf16 %v731_v29, %v731_v29 }
 0x32b   : > { %13344 = vmatprep.subr.bf16.mxu1 %v14538_v34 }
 0x32c   : > { %v13030_v44 = vpop.f32.mrf.mxu0  ;;  %10485 = vmatmul.mubr.bf16.vlgmr.msra.gmra.mxu0 %v1055_v35  ;;  %v14575_v35 = vld [vmem:[%s15156_s16 + $0x17f0] sm:$0xff]  }
 0x32d   : > { %v13052_v46 = vpop.f32.mrf.mxu1  ;;  %13323 = vmatpush3.bf16.msra.mxu0 %v14539_v36  ;;  %10525 = vmatmul.mubr.bf16.vlgmr.msra.gmra.mxu1 %v1057_v40 }
 0x32e   : > { %v13031_v48 = vpop.f32.mrf.mxu0  ;;  %13324 = vmatprep.subr.bf16.mxu0 %v14541_v41  ;;  %13345 = vmatpush3.bf16.msra.mxu1 %v14540_v39  ;;  %v14577_v39 = vld [vmem:[%s15156_s16 + $0x17b0] sm:$0xff]  }
 0x32f   : > { %v13032_v50 = vadd.f32 %v13031_v48, %v13030_v44  ;;  %v13053_v51 = vpop.f32.mrf.mxu1  ;;  %13346 = vmatprep.subr.bf16.mxu1 %v14542_v45  ;;  %10564 = vmatprep.mubr.bf16.mxu0 %v1060_v28  ;;  %v14609_v28 = vld [vmem:[%s15156_s16 + $0x1830] sm:$0xff]  }
 0x330   : > { %v13054_v53 = vadd.f32 %v13053_v51, %v13052_v46  ;;  %v13033_v54 = vpop.f32.mrf.mxu0  ;;  %10604 = vmatprep.mubr.bf16.mxu1 %v1062_v33  ;;  %v14579_v46 = vld [vmem:[%s15156_s16 + $0x17e8] sm:$0xff]  }
 0x331   : > { %v10007_v56 = vadd.f32 %v13032_v50, %v15967_v8  ;;  %v13055_v57 = vpop.f32.mrf.mxu1  ;;  %13325 = vmatpush3.bf16.msra.mxu0 %v14543_v47  ;;  %v14558_v8 = vld [vmem:[%s15156_s16 + $0x16d0] sm:$0xff]   ;;  %v14581_v51 = vld [vmem:[%s15156_s16 + $0x17a8] sm:$0xff]   ;;  %v14582_v54 = vld [vmem:[%s15156_s16 + $0x1760] sm:$0xff]  }
 0x332   : > { %v13034_v59 = vpop.f32.mrf.mxu0  ;;  %13326 = vmatprep.subr.bf16.mxu0 %v14545_v52  ;;  %13347 = vmatpush3.bf16.msra.mxu1 %v14544_v49  ;;  %v14580_v49 = vld [vmem:[%s15156_s16 + $0x1728] sm:$0xff]   ;;  %v14585_v57 = vld [vmem:[%s15156_s16 + $0x17a0] sm:$0xff]  }
 0x333   : > { %v16004_v61 = vadd.f32 %v13054_v53, %v10007_v56  ;;  %v13056_v62 = vpop.f32.mrf.mxu1  ;;  %13348 = vmatprep.subr.bf16.mxu1 %v14546_v55  ;;  %v14583_v55 = vld [vmem:[%s15156_s16 + $0x17e0] sm:$0xff]   ;;  %v14587_v59 = vld [vmem:[%s15156_s16 + $0x17d8] sm:$0xff]   ;;  %v14611_v33 = vld [vmem:[%s15156_s16 + $0x1868] sm:$0xff]  }
 0x334   : > { %v14584_v56 = vld [vmem:[%s15156_s16 + $0x1720] sm:$0xff]   ;;  %v14590_v62 = vld [vmem:[%s15156_s16 + $0x1750] sm:$0xff]  }
 0x335   : > { %13327 = vmatpush3.bf16.msra.mxu0 %v14547_v58  ;;  %v14586_v58 = vld [vmem:[%s15156_s16 + $0x1758] sm:$0xff]  }
 0x336   : > { %13328 = vmatprep.subr.bf16.mxu0 %v14549_v63  ;;  %13349 = vmatpush3.bf16.msra.mxu1 %v14548_v60  ;;  %v14588_v60 = vld [vmem:[%s15156_s16 + $0x1718] sm:$0xff]   ;;  %v14591_v63 = vld [vmem:[%s15156_s16 + $0x17d0] sm:$0xff]  }
 0x337   : > { %13350 = vmatprep.subr.bf16.mxu1 %v14550_v0  ;;  %v14592_v0 = vld [vmem:[%s15156_s16 + $0x1710] sm:$0xff]  }
 0x339   : > { %13329 = vmatpush3.bf16.msra.mxu0 %v14551_v1  ;;  %v14593_v1 = vld [vmem:[%s15156_s16 + $0x1790] sm:$0xff]  }
 0x33a   : > { %13330 = vmatprep.subr.bf16.mxu0 %v14553_v3  ;;  %13351 = vmatpush3.bf16.msra.mxu1 %v14552_v2  ;;  %v14594_v2 = vld [vmem:[%s15156_s16 + $0x1748] sm:$0xff]  }
 0x33b   : > { %13352 = vmatprep.subr.bf16.mxu1 %v14554_v4  ;;  %v14595_v3 = vld [vmem:[%s15156_s16 + $0x17c8] sm:$0xff]  }
 0x33c   : > { %v14596_v4 = vld [vmem:[%s15156_s16 + $0x1708] sm:$0xff]  }
 0x33d   : > { %13331 = vmatpush3.bf16.msra.mxu0 %v14555_v5  ;;  %v14597_v5 = vld [vmem:[%s15156_s16 + $0x1788] sm:$0xff]  }
 0x33e   : > { %13332 = vmatprep.subr.bf16.mxu0 %v14557_v7  ;;  %13353 = vmatpush3.bf16.msra.mxu1 %v14556_v6  ;;  %v14598_v6 = vld [vmem:[%s15156_s16 + $0x1740] sm:$0xff]  }
 0x33f   : > { %13354 = vmatprep.subr.bf16.mxu1 %v14558_v8  ;;  %v14599_v7 = vld [vmem:[%s15156_s16 + $0x17c0] sm:$0xff]  }
 0x340   : > { %v14600_v8 = vld [vmem:[%s15156_s16 + $0x1700] sm:$0xff]  }
 0x341   : > { %13333 = vmatpush3.bf16.msra.mxu0 %v14559_v9  ;;  %v304_v9 = vld [vmem:[%s15205_s15 + $0xb8] sm:$0xff] }
 0x342   : > { %13334 = vmatprep.subr.bf16.mxu0 %v14561_v11  ;;  %13355 = vmatpush3.bf16.msra.mxu1 %v14560_v10  ;;  %v14601_v10 = vld [vmem:[%s15156_s16 + $0x1780] sm:$0xff]   ;;  %v739_v11 = vrot.slane %v304_v9, %v15210_v42 }
 0x343   : > { %13356 = vmatprep.subr.bf16.mxu1 %v14562_v12  ;;  %v732_v12 = vcombine.high %v304_v9, %v304_v9  ;;  %v14638_v9 = vld [vmem:[%s15156_s16 + $0x1938] sm:$0xff]  }
 0x345   : > { %13335 = vmatpush3.bf16.msra.mxu0 %v14563_v13  ;;  %v14603_v13 = vld [vmem:[%s15156_s16 + $0x1878] sm:$0xff]  }
 0x346   : > { %13336 = vmatprep.subr.bf16.mxu0 %v14565_v15  ;;  %13357 = vmatpush3.bf16.msra.mxu1 %v14564_v14  ;;  %v747_v14 = vcombine.high %v739_v11, %v739_v11  ;;  %v746_v15 = vrot.slane %v732_v12, %v15210_v42  ;;  %v14639_v12 = vld [vmem:[%s15156_s16 + $0x19b8] sm:$0xff]  }
 0x347   : > { %13358 = vmatprep.subr.bf16.mxu1 %v14566_v16  ;;  %v14604_v16 = vld [vmem:[%s15156_s16 + $0x18f8] sm:$0xff]  }
 0x348   : > { %v748_v20 = vcombine.high %v746_v15, %v746_v15 }
 0x349   : > { %13337 = vmatpush3.bf16.msra.mxu0 %v14567_v17  ;;  %v1063_v17 = vpack.c.bf16 %v739_v11, %v739_v11 }
 0x34a   : > { %13366 = vmatprep.subr.bf16.mxu0 %v14570_v22  ;;  %13359 = vmatpush3.bf16.msra.mxu1 %v14568_v19  ;;  %v1064_v19 = vpack.c.bf16 %v747_v14, %v747_v14  ;;  %v1065_v22 = vpack.c.bf16 %v746_v15, %v746_v15  ;;  %v1066_v24 = vpack.c.bf16 %v748_v20, %v748_v20  ;;  %v14640_v15 = vld [vmem:[%s15156_s16 + $0x1970] sm:$0xff]  }
 0x34b   : > { %13388 = vmatprep.subr.bf16.mxu1 %v14571_v25  ;;  %v14642_v20 = vld [vmem:[%s15156_s16 + $0x1930] sm:$0xff]  }
 0x34c   : > { %v13074_v34 = vpop.f32.mrf.mxu0  ;;  %10565 = vmatmul.mubr.bf16.vlgmr.msra.gmra.mxu0 %v1059_v26  ;;  %v14608_v26 = vld [vmem:[%s15156_s16 + $0x18f0] sm:$0xff]  }
 0x34d   : > { %v13096_v36 = vpop.f32.mrf.mxu1  ;;  %13367 = vmatpush3.bf16.msra.mxu0 %v14572_v27  ;;  %10605 = vmatmul.mubr.bf16.vlgmr.msra.gmra.mxu1 %v1061_v31 }
 0x34e   : > { %v13075_v38 = vpop.f32.mrf.mxu0  ;;  %13368 = vmatprep.subr.bf16.mxu0 %v14574_v32  ;;  %13389 = vmatpush3.bf16.msra.mxu1 %v14573_v30  ;;  %v14610_v30 = vld [vmem:[%s15156_s16 + $0x18b0] sm:$0xff]  }
 0x34f   : > { %v13076_v40 = vadd.f32 %v13075_v38, %v13074_v34  ;;  %v13097_v41 = vpop.f32.mrf.mxu1  ;;  %13390 = vmatprep.subr.bf16.mxu1 %v14575_v35  ;;  %10644 = vmatprep.mubr.bf16.mxu0 %v1064_v19 }
 0x350   : > { %v13098_v44 = vadd.f32 %v13097_v41, %v13096_v36  ;;  %v13077_v45 = vpop.f32.mrf.mxu0  ;;  %10684 = vmatprep.mubr.bf16.mxu1 %v1066_v24  ;;  %v14612_v36 = vld [vmem:[%s15156_s16 + $0x18e8] sm:$0xff]  }
 0x351   : > { %v10087_v47 = vadd.f32 %v13076_v40, %v16004_v61  ;;  %v13099_v48 = vpop.f32.mrf.mxu1  ;;  %13369 = vmatpush3.bf16.msra.mxu0 %v14576_v37  ;;  %v14589_v61 = vld [vmem:[%s15156_s16 + $0x1798] sm:$0xff]   ;;  %v14614_v41 = vld [vmem:[%s15156_s16 + $0x18a8] sm:$0xff]   ;;  %v14615_v45 = vld [vmem:[%s15156_s16 + $0x1860] sm:$0xff]  }
 0x352   : > { %v13078_v50 = vpop.f32.mrf.mxu0  ;;  %13370 = vmatprep.subr.bf16.mxu0 %v14578_v43  ;;  %13391 = vmatpush3.bf16.msra.mxu1 %v14577_v39  ;;  %v14613_v39 = vld [vmem:[%s15156_s16 + $0x1828] sm:$0xff]   ;;  %v14618_v48 = vld [vmem:[%s15156_s16 + $0x18a0] sm:$0xff]  }
 0x353   : > { %v16042_v52 = vadd.f32 %v13098_v44, %v10087_v47  ;;  %v13100_v53 = vpop.f32.mrf.mxu1  ;;  %13392 = vmatprep.subr.bf16.mxu1 %v14579_v46  ;;  %v14616_v46 = vld [vmem:[%s15156_s16 + $0x18e0] sm:$0xff]   ;;  %v14620_v50 = vld [vmem:[%s15156_s16 + $0x18d8] sm:$0xff]  }
 0x354   : > { %v14617_v47 = vld [vmem:[%s15156_s16 + $0x1820] sm:$0xff]   ;;  %v14623_v53 = vld [vmem:[%s15156_s16 + $0x1850] sm:$0xff]  }
 0x355   : > { %13371 = vmatpush3.bf16.msra.mxu0 %v14580_v49  ;;  %v14619_v49 = vld [vmem:[%s15156_s16 + $0x1858] sm:$0xff]  }
 0x356   : > { %13372 = vmatprep.subr.bf16.mxu0 %v14582_v54  ;;  %13393 = vmatpush3.bf16.msra.mxu1 %v14581_v51  ;;  %v14621_v51 = vld [vmem:[%s15156_s16 + $0x1818] sm:$0xff]   ;;  %v14624_v54 = vld [vmem:[%s15156_s16 + $0x18d0] sm:$0xff]  }
 0x357   : > { %13394 = vmatprep.subr.bf16.mxu1 %v14583_v55  ;;  %v14625_v55 = vld [vmem:[%s15156_s16 + $0x1810] sm:$0xff]  }
 0x359   : > { %13373 = vmatpush3.bf16.msra.mxu0 %v14584_v56  ;;  %v14626_v56 = vld [vmem:[%s15156_s16 + $0x1890] sm:$0xff]  }
 0x35a   : > { %13374 = vmatprep.subr.bf16.mxu0 %v14586_v58  ;;  %13395 = vmatpush3.bf16.msra.mxu1 %v14585_v57  ;;  %v14627_v57 = vld [vmem:[%s15156_s16 + $0x1848] sm:$0xff]  }
 0x35b   : > { %13396 = vmatprep.subr.bf16.mxu1 %v14587_v59  ;;  %v14628_v58 = vld [vmem:[%s15156_s16 + $0x18c8] sm:$0xff]  }
 0x35c   : > { %v14629_v59 = vld [vmem:[%s15156_s16 + $0x1808] sm:$0xff]  }
 0x35d   : > { %13375 = vmatpush3.bf16.msra.mxu0 %v14588_v60  ;;  %v14630_v60 = vld [vmem:[%s15156_s16 + $0x1888] sm:$0xff]  }
 0x35e   : > { %13376 = vmatprep.subr.bf16.mxu0 %v14590_v62  ;;  %13397 = vmatpush3.bf16.msra.mxu1 %v14589_v61  ;;  %v14631_v61 = vld [vmem:[%s15156_s16 + $0x1840] sm:$0xff]  }
 0x35f   : > { %13398 = vmatprep.subr.bf16.mxu1 %v14591_v63  ;;  %v14632_v62 = vld [vmem:[%s15156_s16 + $0x18c0] sm:$0xff]  }
 0x360   : > { %v14633_v63 = vld [vmem:[%s15156_s16 + $0x1800] sm:$0xff]  }
 0x361   : > { %13377 = vmatpush3.bf16.msra.mxu0 %v14592_v0  ;;  %v305_v0 = vld [vmem:[%s15205_s15 + $0xc0] sm:$0xff] }
 0x362   : > { %13378 = vmatprep.subr.bf16.mxu0 %v14594_v2  ;;  %13399 = vmatpush3.bf16.msra.mxu1 %v14593_v1  ;;  %v756_v1 = vrot.slane %v305_v0, %v15210_v42  ;;  %v749_v2 = vcombine.high %v305_v0, %v305_v0  ;;  %v14671_v0 = vld [vmem:[%s15156_s16 + $0x1a38] sm:$0xff]  }
 0x363   : > { %13400 = vmatprep.subr.bf16.mxu1 %v14595_v3  ;;  %v14636_v3 = vld [vmem:[%s15156_s16 + $0x1978] sm:$0xff]  }
 0x365   : > { %13379 = vmatpush3.bf16.msra.mxu0 %v14596_v4  ;;  %v14634_v4 = vld [vmem:[%s15156_s16 + $0x1880] sm:$0xff]  }
 0x366   : > { %13380 = vmatprep.subr.bf16.mxu0 %v14598_v6  ;;  %13401 = vmatpush3.bf16.msra.mxu1 %v14597_v5  ;;  %v764_v5 = vcombine.high %v756_v1, %v756_v1  ;;  %v763_v6 = vrot.slane %v749_v2, %v15210_v42 }
 0x367   : > { %13402 = vmatprep.subr.bf16.mxu1 %v14599_v7  ;;  %v14637_v7 = vld [vmem:[%s15156_s16 + $0x19f8] sm:$0xff]  }
 0x368   : > { %v765_v11 = vcombine.high %v763_v6, %v763_v6  ;;  %v1069_v14 = vpack.c.bf16 %v763_v6, %v763_v6  ;;  %v14673_v6 = vld [vmem:[%s15156_s16 + $0x1a70] sm:$0xff]  }
 0x369   : > { %13381 = vmatpush3.bf16.msra.mxu0 %v14600_v8  ;;  %v1067_v8 = vpack.c.bf16 %v756_v1, %v756_v1 }
 0x36a   : > { %13410 = vmatprep.subr.bf16.mxu0 %v14603_v13  ;;  %13403 = vmatpush3.bf16.msra.mxu1 %v14601_v10  ;;  %v1068_v10 = vpack.c.bf16 %v764_v5, %v764_v5 }
 0x36b   : > { %13432 = vmatprep.subr.bf16.mxu1 %v14604_v16  ;;  %v1070_v16 = vpack.c.bf16 %v765_v11, %v765_v11  ;;  %v14675_v11 = vld [vmem:[%s15156_s16 + $0x1a30] sm:$0xff]  }
 0x36c   : > { %v13118_v25 = vpop.f32.mrf.mxu0  ;;  %10645 = vmatmul.mubr.bf16.vlgmr.msra.gmra.mxu0 %v1063_v17  ;;  %v14641_v17 = vld [vmem:[%s15156_s16 + $0x19f0] sm:$0xff]  }
 0x36d   : > { %v13140_v27 = vpop.f32.mrf.mxu1  ;;  %13411 = vmatpush3.bf16.msra.mxu0 %v14605_v18  ;;  %10685 = vmatmul.mubr.bf16.vlgmr.msra.gmra.mxu1 %v1065_v22  ;;  %v14643_v22 = vld [vmem:[%s15156_s16 + $0x19b0] sm:$0xff]  }
 0x36e   : > { %v13119_v29 = vpop.f32.mrf.mxu0  ;;  %13412 = vmatprep.subr.bf16.mxu0 %v14607_v23  ;;  %13433 = vmatpush3.bf16.msra.mxu1 %v14606_v21 }
 0x36f   : > { %v13120_v31 = vadd.f32 %v13119_v29, %v13118_v25  ;;  %v13141_v32 = vpop.f32.mrf.mxu1  ;;  %13434 = vmatprep.subr.bf16.mxu1 %v14608_v26  ;;  %10724 = vmatprep.mubr.bf16.mxu0 %v1068_v10  ;;  %v14644_v25 = vld [vmem:[%s15156_s16 + $0x1968] sm:$0xff]  }
 0x370   : > { %v13142_v34 = vadd.f32 %v13141_v32, %v13140_v27  ;;  %v13121_v35 = vpop.f32.mrf.mxu0  ;;  %10764 = vmatprep.mubr.bf16.mxu1 %v1070_v16  ;;  %v14677_v16 = vld [vmem:[%s15156_s16 + $0x1a68] sm:$0xff]  }
 0x371   : > { %v10167_v37 = vadd.f32 %v13120_v31, %v16042_v52  ;;  %v13143_v38 = vpop.f32.mrf.mxu1  ;;  %13413 = vmatpush3.bf16.msra.mxu0 %v14609_v28  ;;  %v14622_v52 = vld [vmem:[%s15156_s16 + $0x1898] sm:$0xff]   ;;  %v14645_v28 = vld [vmem:[%s15156_s16 + $0x19e8] sm:$0xff]   ;;  %v14648_v35 = vld [vmem:[%s15156_s16 + $0x1960] sm:$0xff]  }
 0x372   : > { %v13122_v40 = vpop.f32.mrf.mxu0  ;;  %13414 = vmatprep.subr.bf16.mxu0 %v14611_v33  ;;  %13435 = vmatpush3.bf16.msra.mxu1 %v14610_v30  ;;  %v14646_v31 = vld [vmem:[%s15156_s16 + $0x1928] sm:$0xff]   ;;  %v14651_v38 = vld [vmem:[%s15156_s16 + $0x19a0] sm:$0xff]  }
 0x373   : > { %v16080_v43 = vadd.f32 %v13142_v34, %v10167_v37  ;;  %v13144_v44 = vpop.f32.mrf.mxu1  ;;  %13436 = vmatprep.subr.bf16.mxu1 %v14612_v36  ;;  %v14647_v33 = vld [vmem:[%s15156_s16 + $0x19a8] sm:$0xff]   ;;  %v14649_v36 = vld [vmem:[%s15156_s16 + $0x19e0] sm:$0xff]   ;;  %v14653_v40 = vld [vmem:[%s15156_s16 + $0x19d8] sm:$0xff]  }
 0x374   : > { %v14650_v37 = vld [vmem:[%s15156_s16 + $0x1920] sm:$0xff]   ;;  %v14656_v44 = vld [vmem:[%s15156_s16 + $0x1950] sm:$0xff]  }
 0x375   : > { %13415 = vmatpush3.bf16.msra.mxu0 %v14613_v39  ;;  %v14652_v39 = vld [vmem:[%s15156_s16 + $0x1958] sm:$0xff]  }
 0x376   : > { %13416 = vmatprep.subr.bf16.mxu0 %v14615_v45  ;;  %13437 = vmatpush3.bf16.msra.mxu1 %v14614_v41  ;;  %v14654_v41 = vld [vmem:[%s15156_s16 + $0x1918] sm:$0xff]   ;;  %v14657_v45 = vld [vmem:[%s15156_s16 + $0x19d0] sm:$0xff]  }
 0x377   : > { %13438 = vmatprep.subr.bf16.mxu1 %v14616_v46  ;;  %v14658_v46 = vld [vmem:[%s15156_s16 + $0x1910] sm:$0xff]  }
 0x379   : > { %13417 = vmatpush3.bf16.msra.mxu0 %v14617_v47  ;;  %v14659_v47 = vld [vmem:[%s15156_s16 + $0x1990] sm:$0xff]  }
 0x37a   : > { %13418 = vmatprep.subr.bf16.mxu0 %v14619_v49  ;;  %13439 = vmatpush3.bf16.msra.mxu1 %v14618_v48  ;;  %v14660_v48 = vld [vmem:[%s15156_s16 + $0x1948] sm:$0xff]  }
 0x37b   : > { %13440 = vmatprep.subr.bf16.mxu1 %v14620_v50  ;;  %v14661_v49 = vld [vmem:[%s15156_s16 + $0x19c8] sm:$0xff]  }
 0x37c   : > { %v14662_v50 = vld [vmem:[%s15156_s16 + $0x1908] sm:$0xff]  }
 0x37d   : > { %13419 = vmatpush3.bf16.msra.mxu0 %v14621_v51  ;;  %v14663_v51 = vld [vmem:[%s15156_s16 + $0x1988] sm:$0xff]  }
 0x37e   : > { %13420 = vmatprep.subr.bf16.mxu0 %v14623_v53  ;;  %13441 = vmatpush3.bf16.msra.mxu1 %v14622_v52  ;;  %v14664_v52 = vld [vmem:[%s15156_s16 + $0x1940] sm:$0xff]  }
 0x37f   : > { %13442 = vmatprep.subr.bf16.mxu1 %v14624_v54  ;;  %v14665_v53 = vld [vmem:[%s15156_s16 + $0x19c0] sm:$0xff]  }
 0x380   : > { %v14666_v54 = vld [vmem:[%s15156_s16 + $0x1900] sm:$0xff]  }
 0x381   : > { %13421 = vmatpush3.bf16.msra.mxu0 %v14625_v55  ;;  %v306_v55 = vld [vmem:[%s15205_s15 + $0xc8] sm:$0xff] }
 0x382   : > { %13422 = vmatprep.subr.bf16.mxu0 %v14627_v57  ;;  %13443 = vmatpush3.bf16.msra.mxu1 %v14626_v56  ;;  %v14667_v56 = vld [vmem:[%s15156_s16 + $0x1980] sm:$0xff]   ;;  %v773_v57 = vrot.slane %v306_v55, %v15210_v42 }
 0x383   : > { %13444 = vmatprep.subr.bf16.mxu1 %v14628_v58  ;;  %v766_v58 = vcombine.high %v306_v55, %v306_v55  ;;  %v14704_v55 = vld [vmem:[%s15156_s16 + $0x1b38] sm:$0xff]  }
 0x385   : > { %13423 = vmatpush3.bf16.msra.mxu0 %v14629_v59  ;;  %v14669_v59 = vld [vmem:[%s15156_s16 + $0x1a78] sm:$0xff]  }
 0x386   : > { %13424 = vmatprep.subr.bf16.mxu0 %v14631_v61  ;;  %13445 = vmatpush3.bf16.msra.mxu1 %v14630_v60  ;;  %v781_v60 = vcombine.high %v773_v57, %v773_v57  ;;  %v780_v61 = vrot.slane %v766_v58, %v15210_v42  ;;  %v14705_v58 = vld [vmem:[%s15156_s16 + $0x1bb8] sm:$0xff]  }
 0x387   : > { %13446 = vmatprep.subr.bf16.mxu1 %v14632_v62  ;;  %v14670_v62 = vld [vmem:[%s15156_s16 + $0x1af8] sm:$0xff]  }
 0x388   : > { %v1072_v1 = vpack.c.bf16 %v781_v60, %v781_v60  ;;  %v782_v2 = vcombine.high %v780_v61, %v780_v61  ;;  %v1073_v5 = vpack.c.bf16 %v780_v61, %v780_v61  ;;  %v14706_v61 = vld [vmem:[%s15156_s16 + $0x1b70] sm:$0xff]  }
 0x389   : > { %13425 = vmatpush3.bf16.msra.mxu0 %v14633_v63  ;;  %v1071_v63 = vpack.c.bf16 %v773_v57, %v773_v57 }
 0x38a   : > { %13454 = vmatprep.subr.bf16.mxu0 %v14636_v3  ;;  %13447 = vmatpush3.bf16.msra.mxu1 %v14634_v4  ;;  %v14672_v3 = vld [vmem:[%s15156_s16 + $0x1ab8] sm:$0xff]  }
 0x38b   : > { %13476 = vmatprep.subr.bf16.mxu1 %v14637_v7  ;;  %v1074_v7 = vpack.c.bf16 %v782_v2, %v782_v2  ;;  %v14708_v2 = vld [vmem:[%s15156_s16 + $0x1b30] sm:$0xff]  }
 0x38c   : > { %v13162_v13 = vpop.f32.mrf.mxu0  ;;  %10725 = vmatmul.mubr.bf16.vlgmr.msra.gmra.mxu0 %v1067_v8  ;;  %v14674_v8 = vld [vmem:[%s15156_s16 + $0x1af0] sm:$0xff]  }
 0x38d   : > { %v13184_v18 = vpop.f32.mrf.mxu1  ;;  %13455 = vmatpush3.bf16.msra.mxu0 %v14638_v9  ;;  %10765 = vmatmul.mubr.bf16.vlgmr.msra.gmra.mxu1 %v1069_v14 }
 0x38e   : > { %v13163_v19 = vpop.f32.mrf.mxu0  ;;  %13456 = vmatprep.subr.bf16.mxu0 %v14640_v15  ;;  %13477 = vmatpush3.bf16.msra.mxu1 %v14639_v12 }
 0x38f   : > { %v13164_v21 = vadd.f32 %v13163_v19, %v13162_v13  ;;  %v13185_v23 = vpop.f32.mrf.mxu1  ;;  %13478 = vmatprep.subr.bf16.mxu1 %v14641_v17  ;;  %10804 = vmatprep.mubr.bf16.mxu0 %v1072_v1  ;;  %v14676_v13 = vld [vmem:[%s15156_s16 + $0x1ab0] sm:$0xff]   ;;  %v14678_v19 = vld [vmem:[%s15156_s16 + $0x1ae8] sm:$0xff]  }
 0x390   : > { %v13165_v24 = vpop.f32.mrf.mxu0  ;;  %v13186_v27 = vadd.f32 %v13185_v23, %v13184_v18  ;;  %10844 = vmatprep.mubr.bf16.mxu1 %v1074_v7  ;;  %v14710_v7 = vld [vmem:[%s15156_s16 + $0x1b68] sm:$0xff]  }
 0x391   : > { %v10247_v26 = vadd.f32 %v13164_v21, %v16080_v43  ;;  %v13187_v29 = vpop.f32.mrf.mxu1  ;;  %13457 = vmatpush3.bf16.msra.mxu0 %v14642_v20  ;;  %v14655_v43 = vld [vmem:[%s15156_s16 + $0x1998] sm:$0xff]   ;;  %v14680_v24 = vld [vmem:[%s15156_s16 + $0x1aa8] sm:$0xff]  }
 0x392   : > { %v13166_v30 = vpop.f32.mrf.mxu0  ;;  %13458 = vmatprep.subr.bf16.mxu0 %v14644_v25  ;;  %13479 = vmatpush3.bf16.msra.mxu1 %v14643_v22  ;;  %v14679_v22 = vld [vmem:[%s15156_s16 + $0x1a28] sm:$0xff]   ;;  %v14684_v29 = vld [vmem:[%s15156_s16 + $0x1aa0] sm:$0xff]  }
 0x393   : > { %v16117_v32 = vadd.f32 %v13186_v27, %v10247_v26  ;;  %v13188_v34 = vpop.f32.mrf.mxu1  ;;  %13480 = vmatprep.subr.bf16.mxu1 %v14645_v28  ;;  %v14681_v26 = vld [vmem:[%s15156_s16 + $0x1a60] sm:$0xff]   ;;  %v14685_v30 = vld [vmem:[%s15156_s16 + $0x1a58] sm:$0xff]  }
 0x394   : > { %v14682_v27 = vld [vmem:[%s15156_s16 + $0x1ae0] sm:$0xff]   ;;  %v14689_v34 = vld [vmem:[%s15156_s16 + $0x1a50] sm:$0xff]  }
 0x395   : > { %13459 = vmatpush3.bf16.msra.mxu0 %v14646_v31  ;;  %v14683_v28 = vld [vmem:[%s15156_s16 + $0x1a20] sm:$0xff]   ;;  %v14686_v31 = vld [vmem:[%s15156_s16 + $0x1ad8] sm:$0xff]  }
 0x396   : > { %13460 = vmatprep.subr.bf16.mxu0 %v14648_v35  ;;  %13481 = vmatpush3.bf16.msra.mxu1 %v14647_v33  ;;  %v14688_v33 = vld [vmem:[%s15156_s16 + $0x1a98] sm:$0xff]   ;;  %v14690_v35 = vld [vmem:[%s15156_s16 + $0x1ad0] sm:$0xff]  }
 0x397   : > { %13482 = vmatprep.subr.bf16.mxu1 %v14649_v36  ;;  %v14691_v36 = vld [vmem:[%s15156_s16 + $0x1a10] sm:$0xff]  }
 0x399   : > { %13461 = vmatpush3.bf16.msra.mxu0 %v14650_v37  ;;  %v14692_v37 = vld [vmem:[%s15156_s16 + $0x1a90] sm:$0xff]  }
 0x39a   : > { %13462 = vmatprep.subr.bf16.mxu0 %v14652_v39  ;;  %13483 = vmatpush3.bf16.msra.mxu1 %v14651_v38  ;;  %v14693_v38 = vld [vmem:[%s15156_s16 + $0x1a48] sm:$0xff]  }
 0x39b   : > { %13484 = vmatprep.subr.bf16.mxu1 %v14653_v40  ;;  %v14694_v39 = vld [vmem:[%s15156_s16 + $0x1ac8] sm:$0xff]  }
 0x39c   : > { %v14695_v40 = vld [vmem:[%s15156_s16 + $0x1a08] sm:$0xff]  }
 0x39d   : > { %13463 = vmatpush3.bf16.msra.mxu0 %v14654_v41  ;;  %v14696_v41 = vld [vmem:[%s15156_s16 + $0x1a88] sm:$0xff]  }
 0x39e   : > { %13464 = vmatprep.subr.bf16.mxu0 %v14656_v44  ;;  %13485 = vmatpush3.bf16.msra.mxu1 %v14655_v43  ;;  %v14697_v43 = vld [vmem:[%s15156_s16 + $0x1a40] sm:$0xff]  }
 0x39f   : > { %13486 = vmatprep.subr.bf16.mxu1 %v14657_v45  ;;  %v14698_v44 = vld [vmem:[%s15156_s16 + $0x1ac0] sm:$0xff]  }
 0x3a0   : > { %v14699_v45 = vld [vmem:[%s15156_s16 + $0x1a00] sm:$0xff]  }
 0x3a1   : > { %13465 = vmatpush3.bf16.msra.mxu0 %v14658_v46  ;;  %v307_v46 = vld [vmem:[%s15205_s15 + $0xd0] sm:$0xff] }
 0x3a2   : > { %13466 = vmatprep.subr.bf16.mxu0 %v14660_v48  ;;  %13487 = vmatpush3.bf16.msra.mxu1 %v14659_v47  ;;  %v14700_v47 = vld [vmem:[%s15156_s16 + $0x1a80] sm:$0xff]   ;;  %v790_v48 = vrot.slane %v307_v46, %v15210_v42 }
 0x3a3   : > { %13488 = vmatprep.subr.bf16.mxu1 %v14661_v49  ;;  %v783_v49 = vcombine.high %v307_v46, %v307_v46 }
 0x3a5   : > { %13467 = vmatpush3.bf16.msra.mxu0 %v14662_v50  ;;  %v14702_v50 = vld [vmem:[%s15156_s16 + $0x1b78] sm:$0xff]  }
 0x3a6   : > { %13468 = vmatprep.subr.bf16.mxu0 %v14664_v52  ;;  %13489 = vmatpush3.bf16.msra.mxu1 %v14663_v51  ;;  %v798_v51 = vcombine.high %v790_v48, %v790_v48  ;;  %v797_v52 = vrot.slane %v783_v49, %v15210_v42 }
 0x3a7   : > { %13490 = vmatprep.subr.bf16.mxu1 %v14665_v53  ;;  %v14703_v53 = vld [vmem:[%s15156_s16 + $0x1bf8] sm:$0xff]  }
 0x3a8   : > { %v799_v57 = vcombine.high %v797_v52, %v797_v52  ;;  %v1077_v60 = vpack.c.bf16 %v797_v52, %v797_v52 }
 0x3a9   : > { %13469 = vmatpush3.bf16.msra.mxu0 %v14666_v54  ;;  %v1075_v54 = vpack.c.bf16 %v790_v48, %v790_v48  ;;  %v14737_v48 = vld [vmem:[%s15156_s16 + $0x1c38] sm:$0xff]  }
 0x3aa   : > { %13498 = vmatprep.subr.bf16.mxu0 %v14669_v59  ;;  %13491 = vmatpush3.bf16.msra.mxu1 %v14667_v56  ;;  %v1076_v56 = vpack.c.bf16 %v798_v51, %v798_v51  ;;  %v14739_v51 = vld [vmem:[%s15156_s16 + $0x1c70] sm:$0xff]  }
 0x3ab   : > { %13520 = vmatprep.subr.bf16.mxu1 %v14670_v62  ;;  %v1078_v62 = vpack.c.bf16 %v799_v57, %v799_v57 }
 0x3ac   : > { %v13206_v4 = vpop.f32.mrf.mxu0  ;;  %10805 = vmatmul.mubr.bf16.vlgmr.msra.gmra.mxu0 %v1071_v63  ;;  %v14707_v63 = vld [vmem:[%s15156_s16 + $0x1bf0] sm:$0xff]  }
 0x3ad   : > { %v13228_v9 = vpop.f32.mrf.mxu1  ;;  %13499 = vmatpush3.bf16.msra.mxu0 %v14671_v0  ;;  %10845 = vmatmul.mubr.bf16.vlgmr.msra.gmra.mxu1 %v1073_v5 }
 0x3ae   : > { %v13207_v10 = vpop.f32.mrf.mxu0  ;;  %13500 = vmatprep.subr.bf16.mxu0 %v14673_v6  ;;  %13521 = vmatpush3.bf16.msra.mxu1 %v14672_v3 }
 0x3af   : > { %v13208_v12 = vadd.f32 %v13207_v10, %v13206_v4  ;;  %v13229_v14 = vpop.f32.mrf.mxu1  ;;  %13522 = vmatprep.subr.bf16.mxu1 %v14674_v8  ;;  %10884 = vmatprep.mubr.bf16.mxu0 %v1076_v56  ;;  %v14709_v4 = vld [vmem:[%s15156_s16 + $0x1bb0] sm:$0xff]   ;;  %v14711_v10 = vld [vmem:[%s15156_s16 + $0x1be8] sm:$0xff]  }
 0x3b0   : > { %v13209_v15 = vpop.f32.mrf.mxu0  ;;  %v13230_v18 = vadd.f32 %v13229_v14, %v13228_v9  ;;  %10924 = vmatprep.mubr.bf16.mxu1 %v1078_v62  ;;  %v14740_v56 = vld [vmem:[%s15156_s16 + $0x1cf0] sm:$0xff]  }
 0x3b1   : > { %v10327_v17 = vadd.f32 %v13208_v12, %v16117_v32  ;;  %v13231_v20 = vpop.f32.mrf.mxu1  ;;  %13501 = vmatpush3.bf16.msra.mxu0 %v14675_v11  ;;  %v14687_v32 = vld [vmem:[%s15156_s16 + $0x1a18] sm:$0xff]   ;;  %v14713_v15 = vld [vmem:[%s15156_s16 + $0x1ba8] sm:$0xff]  }
 0x3b2   : > { %v13210_v21 = vpop.f32.mrf.mxu0  ;;  %13502 = vmatprep.subr.bf16.mxu0 %v14677_v16  ;;  %13523 = vmatpush3.bf16.msra.mxu1 %v14676_v13  ;;  %v14712_v13 = vld [vmem:[%s15156_s16 + $0x1b28] sm:$0xff]   ;;  %v14717_v20 = vld [vmem:[%s15156_s16 + $0x1ba0] sm:$0xff]  }
 0x3b3   : > { %v16155_v23 = vadd.f32 %v13230_v18, %v10327_v17  ;;  %v13232_v25 = vpop.f32.mrf.mxu1  ;;  %13524 = vmatprep.subr.bf16.mxu1 %v14678_v19  ;;  %v14714_v17 = vld [vmem:[%s15156_s16 + $0x1b60] sm:$0xff]   ;;  %v14718_v21 = vld [vmem:[%s15156_s16 + $0x1b58] sm:$0xff]  }
 0x3b4   : > { %v14715_v18 = vld [vmem:[%s15156_s16 + $0x1be0] sm:$0xff]   ;;  %v14722_v25 = vld [vmem:[%s15156_s16 + $0x1b50] sm:$0xff]  }
 0x3b5   : > { %13503 = vmatpush3.bf16.msra.mxu0 %v14679_v22  ;;  %v14716_v19 = vld [vmem:[%s15156_s16 + $0x1b20] sm:$0xff]   ;;  %v14719_v22 = vld [vmem:[%s15156_s16 + $0x1bd8] sm:$0xff]  }
 0x3b6   : > { %13504 = vmatprep.subr.bf16.mxu0 %v14681_v26  ;;  %13525 = vmatpush3.bf16.msra.mxu1 %v14680_v24  ;;  %v14721_v24 = vld [vmem:[%s15156_s16 + $0x1b98] sm:$0xff]   ;;  %v14723_v26 = vld [vmem:[%s15156_s16 + $0x1bd0] sm:$0xff]  }
 0x3b7   : > { %13526 = vmatprep.subr.bf16.mxu1 %v14682_v27  ;;  %v14724_v27 = vld [vmem:[%s15156_s16 + $0x1b10] sm:$0xff]  }
 0x3b9   : > { %13505 = vmatpush3.bf16.msra.mxu0 %v14683_v28  ;;  %v14725_v28 = vld [vmem:[%s15156_s16 + $0x1b90] sm:$0xff]  }
 0x3ba   : > { %13506 = vmatprep.subr.bf16.mxu0 %v14685_v30  ;;  %13527 = vmatpush3.bf16.msra.mxu1 %v14684_v29  ;;  %v14726_v29 = vld [vmem:[%s15156_s16 + $0x1b48] sm:$0xff]  }
 0x3bb   : > { %13528 = vmatprep.subr.bf16.mxu1 %v14686_v31  ;;  %v14727_v30 = vld [vmem:[%s15156_s16 + $0x1bc8] sm:$0xff]  }
 0x3bc   : > { %v14728_v31 = vld [vmem:[%s15156_s16 + $0x1b08] sm:$0xff]  }
 0x3bd   : > { %13507 = vmatpush3.bf16.msra.mxu0 %v14687_v32  ;;  %v14729_v32 = vld [vmem:[%s15156_s16 + $0x1b88] sm:$0xff]  }
 0x3be   : > { %13508 = vmatprep.subr.bf16.mxu0 %v14689_v34  ;;  %13529 = vmatpush3.bf16.msra.mxu1 %v14688_v33  ;;  %v14730_v33 = vld [vmem:[%s15156_s16 + $0x1b40] sm:$0xff]  }
 0x3bf   : > { %13530 = vmatprep.subr.bf16.mxu1 %v14690_v35  ;;  %v14731_v34 = vld [vmem:[%s15156_s16 + $0x1bc0] sm:$0xff]  }
 0x3c0   : > { %v14732_v35 = vld [vmem:[%s15156_s16 + $0x1b00] sm:$0xff]  }
 0x3c1   : > { %13509 = vmatpush3.bf16.msra.mxu0 %v14691_v36  ;;  %v308_v36 = vld [vmem:[%s15205_s15 + $0xd8] sm:$0xff] }
 0x3c2   : > { %13510 = vmatprep.subr.bf16.mxu0 %v14693_v38  ;;  %13531 = vmatpush3.bf16.msra.mxu1 %v14692_v37  ;;  %v807_v37 = vrot.slane %v308_v36, %v15210_v42  ;;  %v800_v38 = vcombine.high %v308_v36, %v308_v36 }
 0x3c3   : > { %13532 = vmatprep.subr.bf16.mxu1 %v14694_v39  ;;  %v14735_v39 = vld [vmem:[%s15156_s16 + $0x1c78] sm:$0xff]  }
 0x3c5   : > { %13511 = vmatpush3.bf16.msra.mxu0 %v14695_v40  ;;  %v14733_v40 = vld [vmem:[%s15156_s16 + $0x1b80] sm:$0xff]  }
 0x3c6   : > { %13512 = vmatprep.subr.bf16.mxu0 %v14697_v43  ;;  %13533 = vmatpush3.bf16.msra.mxu1 %v14696_v41  ;;  %v815_v41 = vcombine.high %v807_v37, %v807_v37  ;;  %v814_v43 = vrot.slane %v800_v38, %v15210_v42  ;;  %v14770_v38 = vld [vmem:[%s15156_s16 + $0x1d38] sm:$0xff]  }
 0x3c7   : > { %13534 = vmatprep.subr.bf16.mxu1 %v14698_v44  ;;  %v14736_v44 = vld [vmem:[%s15156_s16 + $0x1cf8] sm:$0xff]  }
 0x3c8   : > { %v1080_v46 = vpack.c.bf16 %v815_v41, %v815_v41  ;;  %v14772_v41 = vld [vmem:[%s15156_s16 + $0x1d70] sm:$0xff]  }
 0x3c9   : > { %13513 = vmatpush3.bf16.msra.mxu0 %v14699_v45  ;;  %v1079_v45 = vpack.c.bf16 %v807_v37, %v807_v37 }
 0x3ca   : > { %13542 = vmatprep.subr.bf16.mxu0 %v14702_v50  ;;  %13535 = vmatpush3.bf16.msra.mxu1 %v14700_v47  ;;  %v816_v47 = vcombine.high %v814_v43, %v814_v43  ;;  %v1081_v50 = vpack.c.bf16 %v814_v43, %v814_v43 }
 0x3cb   : > { %13564 = vmatprep.subr.bf16.mxu1 %v14703_v53  ;;  %v14738_v53 = vld [vmem:[%s15156_s16 + $0x1cb8] sm:$0xff]  }
 0x3cc   : > { %v13250_v59 = vpop.f32.mrf.mxu0  ;;  %10885 = vmatmul.mubr.bf16.vlgmr.msra.gmra.mxu0 %v1075_v54  ;;  %v1082_v52 = vpack.c.bf16 %v816_v47, %v816_v47  ;;  %v14773_v47 = vld [vmem:[%s15156_s16 + $0x1df0] sm:$0xff]  }
 0x3cd   : > { %v13272_v0 = vpop.f32.mrf.mxu1  ;;  %13543 = vmatpush3.bf16.msra.mxu0 %v14704_v55  ;;  %10925 = vmatmul.mubr.bf16.vlgmr.msra.gmra.mxu1 %v1077_v60 }
 0x3ce   : > { %v13251_v1 = vpop.f32.mrf.mxu0  ;;  %13544 = vmatprep.subr.bf16.mxu0 %v14706_v61  ;;  %13565 = vmatpush3.bf16.msra.mxu1 %v14705_v58  ;;  %v14741_v58 = vld [vmem:[%s15156_s16 + $0x1c30] sm:$0xff]   ;;  %v14743_v61 = vld [vmem:[%s15156_s16 + $0x1c68] sm:$0xff]  }
 0x3cf   : > { %v13252_v3 = vadd.f32 %v13251_v1, %v13250_v59  ;;  %v13273_v5 = vpop.f32.mrf.mxu1  ;;  %13566 = vmatprep.subr.bf16.mxu1 %v14707_v63  ;;  %10964 = vmatprep.mubr.bf16.mxu0 %v1080_v46 }
 0x3d0   : > { %v13253_v6 = vpop.f32.mrf.mxu0  ;;  %v13274_v9 = vadd.f32 %v13273_v5, %v13272_v0  ;;  %11004 = vmatprep.mubr.bf16.mxu1 %v1082_v52  ;;  %v14742_v0 = vld [vmem:[%s15156_s16 + $0x1cb0] sm:$0xff]   ;;  %v14745_v5 = vld [vmem:[%s15156_s16 + $0x1c28] sm:$0xff]  }
 0x3d1   : > { %v10407_v8 = vadd.f32 %v13252_v3, %v16155_v23  ;;  %v13275_v11 = vpop.f32.mrf.mxu1  ;;  %13545 = vmatpush3.bf16.msra.mxu0 %v14708_v2  ;;  %v14720_v23 = vld [vmem:[%s15156_s16 + $0x1b18] sm:$0xff]   ;;  %v14744_v3 = vld [vmem:[%s15156_s16 + $0x1ce8] sm:$0xff]  }
 0x3d2   : > { %v13254_v12 = vpop.f32.mrf.mxu0  ;;  %13546 = vmatprep.subr.bf16.mxu0 %v14710_v7  ;;  %13567 = vmatpush3.bf16.msra.mxu1 %v14709_v4  ;;  %v14747_v7 = vld [vmem:[%s15156_s16 + $0x1c60] sm:$0xff]   ;;  %v14751_v11 = vld [vmem:[%s15156_s16 + $0x1c58] sm:$0xff]   ;;  %v14776_v52 = vld [vmem:[%s15156_s16 + $0x1d68] sm:$0xff]  }
 0x3d3   : > { %v16193_v14 = vadd.f32 %v13274_v9, %v10407_v8  ;;  %v13276_v16 = vpop.f32.mrf.mxu1  ;;  %13568 = vmatprep.subr.bf16.mxu1 %v14711_v10  ;;  %v14746_v8 = vld [vmem:[%s15156_s16 + $0x1ca8] sm:$0xff]   ;;  %v14748_v9 = vld [vmem:[%s15156_s16 + $0x1ce0] sm:$0xff]  }
 0x3d4   : > { %v14749_v10 = vld [vmem:[%s15156_s16 + $0x1c20] sm:$0xff]   ;;  %v14754_v16 = vld [vmem:[%s15156_s16 + $0x1c98] sm:$0xff]  }
 0x3d5   : > { %13547 = vmatpush3.bf16.msra.mxu0 %v14712_v13  ;;  %v14750_v12 = vld [vmem:[%s15156_s16 + $0x1ca0] sm:$0xff]   ;;  %v14752_v13 = vld [vmem:[%s15156_s16 + $0x1cd8] sm:$0xff]  }
 0x3d6   : > { %13548 = vmatprep.subr.bf16.mxu0 %v14714_v17  ;;  %13569 = vmatpush3.bf16.msra.mxu1 %v14713_v15  ;;  %v14755_v15 = vld [vmem:[%s15156_s16 + $0x1c50] sm:$0xff]  }
 0x3d7   : > { %13570 = vmatprep.subr.bf16.mxu1 %v14715_v18  ;;  %v14756_v17 = vld [vmem:[%s15156_s16 + $0x1cd0] sm:$0xff]  }
 0x3d8   : > { %v14757_v18 = vld [vmem:[%s15156_s16 + $0x1c10] sm:$0xff]  }
 0x3d9   : > { %13549 = vmatpush3.bf16.msra.mxu0 %v14716_v19  ;;  %v14759_v19 = vld [vmem:[%s15156_s16 + $0x1c48] sm:$0xff]  }
 0x3da   : > { %13550 = vmatprep.subr.bf16.mxu0 %v14718_v21  ;;  %13571 = vmatpush3.bf16.msra.mxu1 %v14717_v20  ;;  %v14758_v20 = vld [vmem:[%s15156_s16 + $0x1c90] sm:$0xff]   ;;  %v14760_v21 = vld [vmem:[%s15156_s16 + $0x1cc8] sm:$0xff]  }
 0x3db   : > { %13572 = vmatprep.subr.bf16.mxu1 %v14719_v22  ;;  %v14761_v22 = vld [vmem:[%s15156_s16 + $0x1c08] sm:$0xff]  }
 0x3dd   : > { %13551 = vmatpush3.bf16.msra.mxu0 %v14720_v23  ;;  %v14763_v23 = vld [vmem:[%s15156_s16 + $0x1c40] sm:$0xff]  }
 0x3de   : > { %13552 = vmatprep.subr.bf16.mxu0 %v14722_v25  ;;  %13573 = vmatpush3.bf16.msra.mxu1 %v14721_v24  ;;  %v14762_v24 = vld [vmem:[%s15156_s16 + $0x1c88] sm:$0xff]   ;;  %v14764_v25 = vld [vmem:[%s15156_s16 + $0x1cc0] sm:$0xff]  }
 0x3df   : > { %13574 = vmatprep.subr.bf16.mxu1 %v14723_v26  ;;  %v309_v26 = vld [vmem:[%s15205_s15 + $0xe0] sm:$0xff] }
 0x3e1   : > { %13553 = vmatpush3.bf16.msra.mxu0 %v14724_v27  ;;  %v14765_v27 = vld [vmem:[%s15156_s16 + $0x1c00] sm:$0xff]  }
 0x3e2   : > { %13554 = vmatprep.subr.bf16.mxu0 %v14726_v29  ;;  %13575 = vmatpush3.bf16.msra.mxu1 %v14725_v28  ;;  %v824_v28 = vrot.slane %v309_v26, %v15210_v42  ;;  %v817_v29 = vcombine.high %v309_v26, %v309_v26 }
 0x3e3   : > { %13576 = vmatprep.subr.bf16.mxu1 %v14727_v30  ;;  %v14768_v30 = vld [vmem:[%s15156_s16 + $0x1d78] sm:$0xff]  }
 0x3e5   : > { %13555 = vmatpush3.bf16.msra.mxu0 %v14728_v31  ;;  %v14766_v31 = vld [vmem:[%s15156_s16 + $0x1c80] sm:$0xff]  }
 0x3e6   : > { %13556 = vmatprep.subr.bf16.mxu0 %v14730_v33  ;;  %13577 = vmatpush3.bf16.msra.mxu1 %v14729_v32  ;;  %v832_v32 = vcombine.high %v824_v28, %v824_v28  ;;  %v831_v33 = vrot.slane %v817_v29, %v15210_v42 }
 0x3e7   : > { %13578 = vmatprep.subr.bf16.mxu1 %v14731_v34  ;;  %v1083_v34 = vpack.c.bf16 %v824_v28, %v824_v28 }
 0x3e8   : > { %v1084_v36 = vpack.c.bf16 %v832_v32, %v832_v32  ;;  %v833_v37 = vcombine.high %v831_v33, %v831_v33 }
 0x3e9   : > { %13557 = vmatpush3.bf16.msra.mxu0 %v14732_v35  ;;  %v14769_v35 = vld [vmem:[%s15156_s16 + $0x1df8] sm:$0xff]  }
 0x3ea   : > { %13586 = vmatprep.subr.bf16.mxu0 %v14735_v39  ;;  %13579 = vmatpush3.bf16.msra.mxu1 %v14733_v40  ;;  %v1085_v39 = vpack.c.bf16 %v831_v33, %v831_v33  ;;  %v1086_v43 = vpack.c.bf16 %v833_v37, %v833_v37 }
 0x3eb   : > { %13608 = vmatprep.subr.bf16.mxu1 %v14736_v44  ;;  %v14771_v44 = vld [vmem:[%s15156_s16 + $0x1db8] sm:$0xff]  }
 0x3ec   : > { %v13294_v49 = vpop.f32.mrf.mxu0  ;;  %10965 = vmatmul.mubr.bf16.vlgmr.msra.gmra.mxu0 %v1079_v45 }
 0x3ed   : > { %v13316_v54 = vpop.f32.mrf.mxu1  ;;  %13587 = vmatpush3.bf16.msra.mxu0 %v14737_v48  ;;  %11005 = vmatmul.mubr.bf16.vlgmr.msra.gmra.mxu1 %v1081_v50 }
 0x3ee   : > { %v13295_v55 = vpop.f32.mrf.mxu0  ;;  %13588 = vmatprep.subr.bf16.mxu0 %v14739_v51  ;;  %13609 = vmatpush3.bf16.msra.mxu1 %v14738_v53 }
 0x3ef   : > { %v13296_v57 = vadd.f32 %v13295_v55, %v13294_v49  ;;  %v13317_v59 = vpop.f32.mrf.mxu1  ;;  %13610 = vmatprep.subr.bf16.mxu1 %v14740_v56  ;;  %11044 = vmatprep.mubr.bf16.mxu0 %v1084_v36  ;;  %v14774_v49 = vld [vmem:[%s15156_s16 + $0x1d30] sm:$0xff]  }
 0x3f0   : > { %v13297_v60 = vpop.f32.mrf.mxu0  ;;  %v13318_v63 = vadd.f32 %v13317_v59, %v13316_v54  ;;  %11084 = vmatprep.mubr.bf16.mxu1 %v1086_v43  ;;  %v14775_v55 = vld [vmem:[%s15156_s16 + $0x1db0] sm:$0xff]  }
 0x3f1   : > { %v10487_v62 = vadd.f32 %v13296_v57, %v16193_v14  ;;  %v13319_v1 = vpop.f32.mrf.mxu1  ;;  %13589 = vmatpush3.bf16.msra.mxu0 %v14741_v58  ;;  %v14753_v14 = vld [vmem:[%s15156_s16 + $0x1c18] sm:$0xff]   ;;  %v14777_v58 = vld [vmem:[%s15156_s16 + $0x1de8] sm:$0xff]  }
 0x3f2   : > { %v13298_v2 = vpop.f32.mrf.mxu0  ;;  %13590 = vmatprep.subr.bf16.mxu0 %v14743_v61  ;;  %13611 = vmatpush3.bf16.msra.mxu1 %v14742_v0  ;;  %v14778_v60 = vld [vmem:[%s15156_s16 + $0x1d28] sm:$0xff]   ;;  %v14781_v0 = vld [vmem:[%s15156_s16 + $0x1de0] sm:$0xff]  }
 0x3f3   : > { %v16230_v4 = vadd.f32 %v13318_v63, %v10487_v62  ;;  %v13320_v6 = vpop.f32.mrf.mxu1  ;;  %13612 = vmatprep.subr.bf16.mxu1 %v14744_v3  ;;  %v14780_v62 = vld [vmem:[%s15156_s16 + $0x1d60] sm:$0xff]   ;;  %v14779_v63 = vld [vmem:[%s15156_s16 + $0x1da8] sm:$0xff]   ;;  %v14784_v2 = vld [vmem:[%s15156_s16 + $0x1d58] sm:$0xff]  }
 0x3f4   : > { %v14782_v1 = vld [vmem:[%s15156_s16 + $0x1d20] sm:$0xff]   ;;  %v14788_v6 = vld [vmem:[%s15156_s16 + $0x1d50] sm:$0xff]  }
 0x3f5   : > { %13591 = vmatpush3.bf16.msra.mxu0 %v14745_v5  ;;  %v14783_v3 = vld [vmem:[%s15156_s16 + $0x1da0] sm:$0xff]   ;;  %v14786_v5 = vld [vmem:[%s15156_s16 + $0x1d18] sm:$0xff]  }
 0x3f6   : > { %13592 = vmatprep.subr.bf16.mxu0 %v14747_v7  ;;  %13613 = vmatpush3.bf16.msra.mxu1 %v14746_v8  ;;  %v14787_v7 = vld [vmem:[%s15156_s16 + $0x1d98] sm:$0xff]   ;;  %v14789_v8 = vld [vmem:[%s15156_s16 + $0x1dd0] sm:$0xff]  }
 0x3f7   : > { %13614 = vmatprep.subr.bf16.mxu1 %v14748_v9  ;;  %v14790_v9 = vld [vmem:[%s15156_s16 + $0x1d10] sm:$0xff]  }
 0x3f9   : > { %13593 = vmatpush3.bf16.msra.mxu0 %v14749_v10  ;;  %v14792_v10 = vld [vmem:[%s15156_s16 + $0x1d48] sm:$0xff]  }
 0x3fa   : > { %13594 = vmatprep.subr.bf16.mxu0 %v14751_v11  ;;  %13615 = vmatpush3.bf16.msra.mxu1 %v14750_v12  ;;  %v14791_v11 = vld [vmem:[%s15156_s16 + $0x1d90] sm:$0xff]   ;;  %v14793_v12 = vld [vmem:[%s15156_s16 + $0x1dc8] sm:$0xff]  }
 0x3fb   : > { %13616 = vmatprep.subr.bf16.mxu1 %v14752_v13  ;;  %v14794_v13 = vld [vmem:[%s15156_s16 + $0x1d08] sm:$0xff]  }
 0x3fd   : > { %13595 = vmatpush3.bf16.msra.mxu0 %v14753_v14  ;;  %v14796_v14 = vld [vmem:[%s15156_s16 + $0x1d40] sm:$0xff]  }
 0x3fe   : > { %13596 = vmatprep.subr.bf16.mxu0 %v14755_v15  ;;  %13617 = vmatpush3.bf16.msra.mxu1 %v14754_v16  ;;  %v14795_v15 = vld [vmem:[%s15156_s16 + $0x1d88] sm:$0xff]   ;;  %v14797_v16 = vld [vmem:[%s15156_s16 + $0x1dc0] sm:$0xff]  }
 0x3ff   : > { %13618 = vmatprep.subr.bf16.mxu1 %v14756_v17  ;;  %v310_v17 = vld [vmem:[%s15205_s15 + $0xe8] sm:$0xff] }
 0x401   : > { %13597 = vmatpush3.bf16.msra.mxu0 %v14757_v18  ;;  %v14798_v18 = vld [vmem:[%s15156_s16 + $0x1d00] sm:$0xff]  }
 0x402   : > { %13598 = vmatprep.subr.bf16.mxu0 %v14759_v19  ;;  %13619 = vmatpush3.bf16.msra.mxu1 %v14758_v20  ;;  %v841_v19 = vrot.slane %v310_v17, %v15210_v42  ;;  %v834_v20 = vcombine.high %v310_v17, %v310_v17 }
 0x403   : > { %13620 = vmatprep.subr.bf16.mxu1 %v14760_v21  ;;  %v14799_v21 = vld [vmem:[%s15156_s16 + $0x1d80] sm:$0xff]  }
 0x405   : > { %13599 = vmatpush3.bf16.msra.mxu0 %v14761_v22  ;;  %v849_v22 = vcombine.high %v841_v19, %v841_v19 }
 0x406   : > { %13600 = vmatprep.subr.bf16.mxu0 %v14763_v23  ;;  %13621 = vmatpush3.bf16.msra.mxu1 %v14762_v24  ;;  %v848_v23 = vrot.slane %v834_v20, %v15210_v42  ;;  %v1087_v24 = vpack.c.bf16 %v841_v19, %v841_v19 }
 0x407   : > { %13622 = vmatprep.subr.bf16.mxu1 %v14764_v25  ;;  %v1088_v25 = vpack.c.bf16 %v849_v22, %v849_v22 }
 0x408   : > { %v850_v26 = vcombine.high %v848_v23, %v848_v23 }
 0x409   : > { %13601 = vmatpush3.bf16.msra.mxu0 %v14765_v27  ;;  %v1089_v27 = vpack.c.bf16 %v848_v23, %v848_v23 }
 0x40a   : > { %13630 = vmatprep.subr.bf16.mxu0 %v14768_v30  ;;  %13623 = vmatpush3.bf16.msra.mxu1 %v14766_v31  ;;  %v1090_v29 = vpack.c.bf16 %v850_v26, %v850_v26 }
 0x40b   : > { %13652 = vmatprep.subr.bf16.mxu1 %v14769_v35 }
 0x40c   : > { %v13338_v40 = vpop.f32.mrf.mxu0  ;;  %11045 = vmatmul.mubr.bf16.vlgmr.msra.gmra.mxu0 %v1083_v34 }
 0x40d   : > { %v13360_v45 = vpop.f32.mrf.mxu1  ;;  %13631 = vmatpush3.bf16.msra.mxu0 %v14770_v38  ;;  %11085 = vmatmul.mubr.bf16.vlgmr.msra.gmra.mxu1 %v1085_v39 }
 0x40e   : > { %v13339_v46 = vpop.f32.mrf.mxu0  ;;  %13632 = vmatprep.subr.bf16.mxu0 %v14772_v41  ;;  %13653 = vmatpush3.bf16.msra.mxu1 %v14771_v44 }
 0x40f   : > { %v13340_v48 = vadd.f32 %v13339_v46, %v13338_v40  ;;  %v13361_v50 = vpop.f32.mrf.mxu1  ;;  %13654 = vmatprep.subr.bf16.mxu1 %v14773_v47  ;;  %11124 = vmatprep.mubr.bf16.mxu0 %v1088_v25 }
 0x410   : > { %v13341_v51 = vpop.f32.mrf.mxu0  ;;  %v13362_v54 = vadd.f32 %v13361_v50, %v13360_v45  ;;  %11164 = vmatprep.mubr.bf16.mxu1 %v1090_v29 }
 0x411   : > { %v10567_v53 = vadd.f32 %v13340_v48, %v16230_v4  ;;  %v13363_v56 = vpop.f32.mrf.mxu1  ;;  %13633 = vmatpush3.bf16.msra.mxu0 %v14774_v49  ;;  %v14785_v4 = vld [vmem:[%s15156_s16 + $0x1dd8] sm:$0xff]  }
 0x412   : > { %v13342_v57 = vpop.f32.mrf.mxu0  ;;  %13634 = vmatprep.subr.bf16.mxu0 %v14776_v52  ;;  %13655 = vmatpush3.bf16.msra.mxu1 %v14775_v55 }
 0x413   : > { %v16268_v59 = vadd.f32 %v13362_v54, %v10567_v53  ;;  %v13364_v61 = vpop.f32.mrf.mxu1  ;;  %13656 = vmatprep.subr.bf16.mxu1 %v14777_v58 }
 0x415   : > { %13635 = vmatpush3.bf16.msra.mxu0 %v14778_v60 }
 0x416   : > { %13636 = vmatprep.subr.bf16.mxu0 %v14780_v62  ;;  %13657 = vmatpush3.bf16.msra.mxu1 %v14779_v63 }
 0x417   : > { %13658 = vmatprep.subr.bf16.mxu1 %v14781_v0 }
 0x419   : > { %13637 = vmatpush3.bf16.msra.mxu0 %v14782_v1 }
 0x41a   : > { %13638 = vmatprep.subr.bf16.mxu0 %v14784_v2  ;;  %13659 = vmatpush3.bf16.msra.mxu1 %v14783_v3 }
 0x41b   : > { %13660 = vmatprep.subr.bf16.mxu1 %v14785_v4 }
 0x41d   : > { %13639 = vmatpush3.bf16.msra.mxu0 %v14786_v5 }
 0x41e   : > { %13640 = vmatprep.subr.bf16.mxu0 %v14788_v6  ;;  %13661 = vmatpush3.bf16.msra.mxu1 %v14787_v7 }
 0x41f   : > { %13662 = vmatprep.subr.bf16.mxu1 %v14789_v8 }
 0x421   : > { %13641 = vmatpush3.bf16.msra.mxu0 %v14790_v9 }
 0x422   : > { %13642 = vmatprep.subr.bf16.mxu0 %v14792_v10  ;;  %13663 = vmatpush3.bf16.msra.mxu1 %v14791_v11 }
 0x423   : > { %13664 = vmatprep.subr.bf16.mxu1 %v14793_v12 }
 0x425   : > { %13643 = vmatpush3.bf16.msra.mxu0 %v14794_v13 }
 0x426   : > { %13644 = vmatprep.subr.bf16.mxu0 %v14796_v14  ;;  %13665 = vmatpush3.bf16.msra.mxu1 %v14795_v15 }
 0x427   : > { %13666 = vmatprep.subr.bf16.mxu1 %v14797_v16 }
 0x429   : > { %13645 = vmatpush3.bf16.msra.mxu0 %v14798_v18 }
 0x42a   : > { %13667 = vmatpush3.bf16.msra.mxu1 %v14799_v21 }
 0x42c   : > { %v13382_v28 = vpop.f32.mrf.mxu0  ;;  %11125 = vmatmul.mubr.bf16.vlgmr.msra.gmra.mxu0 %v1087_v24 }
 0x42d   : > { %v13404_v30 = vpop.f32.mrf.mxu1  ;;  %11165 = vmatmul.mubr.bf16.vlgmr.msra.gmra.mxu1 %v1089_v27 }
 0x42e   : > { %v13383_v31 = vpop.f32.mrf.mxu0 }
 0x42f   : > { %v13384_v32 = vadd.f32 %v13383_v31, %v13382_v28  ;;  %v13405_v33 = vpop.f32.mrf.mxu1 }
 0x430   : > { %v13385_v34 = vpop.f32.mrf.mxu0  ;;  %v13406_v35 = vadd.f32 %v13405_v33, %v13404_v30 }
 0x431   : > { %v10647_v42 = vadd.f32 %v13384_v32, %v16268_v59  ;;  %v13407_v36 = vpop.f32.mrf.mxu1 }
 0x432   : > { %v13386_v37 = vpop.f32.mrf.mxu0 }
 0x433   : > { %v10687_v38 = vadd.f32 %v13406_v35, %v10647_v42  ;;  %v13408_v39 = vpop.f32.mrf.mxu1 }
 0x44c   : > { %v13426_v40 = vpop.f32.mrf.mxu0 }
 0x44d   : > { %v13448_v41 = vpop.f32.mrf.mxu1 }
 0x44e   : > { %v13427_v43 = vpop.f32.mrf.mxu0 }
 0x44f   : > { %v13428_v44 = vadd.f32 %v13427_v43, %v13426_v40  ;;  %v13449_v45 = vpop.f32.mrf.mxu1 }
 0x450   : > { %v13429_v46 = vpop.f32.mrf.mxu0  ;;  %v13450_v48 = vadd.f32 %v13449_v45, %v13448_v41  ;;  %v1091_v45 = vld [vmem:[#allocation2] sm:$0x3] }
 0x451   : > { %v10727_v47 = vadd.f32 %v13428_v44, %v10687_v38  ;;  %v13451_v49 = vpop.f32.mrf.mxu1 }
 0x452   : > { %v13430_v50 = vpop.f32.mrf.mxu0 }
 0x453   : > { %v10767_v51 = vadd.f32 %v13450_v48, %v10727_v47  ;;  %v13452_v52 = vpop.f32.mrf.mxu1 }
 0x46c   : > { %v13470_v53 = vpop.f32.mrf.mxu0 }
 0x46d   : > { %v13492_v54 = vpop.f32.mrf.mxu1 }
 0x46e   : > { %v13471_v55 = vpop.f32.mrf.mxu0 }
 0x46f   : > { %v13472_v56 = vadd.f32 %v13471_v55, %v13470_v53  ;;  %v13493_v57 = vpop.f32.mrf.mxu1 }
 0x470   : > { %v13473_v58 = vpop.f32.mrf.mxu0  ;;  %v13494_v60 = vadd.f32 %v13493_v57, %v13492_v54 }
 0x471   : > { %v10807_v59 = vadd.f32 %v13472_v56, %v10767_v51  ;;  %v13495_v61 = vpop.f32.mrf.mxu1 }
 0x472   : > { %v13474_v62 = vpop.f32.mrf.mxu0 }
 0x473   : > { %v10847_v63 = vadd.f32 %v13494_v60, %v10807_v59  ;;  %v13496_v0 = vpop.f32.mrf.mxu1 }
 0x48c   : > { %v13514_v1 = vpop.f32.mrf.mxu0 }
 0x48d   : > { %v13536_v2 = vpop.f32.mrf.mxu1 }
 0x48e   : > { %v13515_v3 = vpop.f32.mrf.mxu0 }
 0x48f   : > { %v13516_v4 = vadd.f32 %v13515_v3, %v13514_v1  ;;  %v13537_v5 = vpop.f32.mrf.mxu1 }
 0x490   : > { %v13517_v6 = vpop.f32.mrf.mxu0  ;;  %v13538_v8 = vadd.f32 %v13537_v5, %v13536_v2 }
 0x491   : > { %v10887_v7 = vadd.f32 %v13516_v4, %v10847_v63  ;;  %v13539_v9 = vpop.f32.mrf.mxu1 }
 0x492   : > { %v13518_v10 = vpop.f32.mrf.mxu0 }
 0x493   : > { %v10927_v11 = vadd.f32 %v13538_v8, %v10887_v7  ;;  %v13540_v12 = vpop.f32.mrf.mxu1 }
 0x4ac   : > { %v13558_v13 = vpop.f32.mrf.mxu0 }
 0x4ad   : > { %v13580_v14 = vpop.f32.mrf.mxu1 }
 0x4ae   : > { %v13559_v15 = vpop.f32.mrf.mxu0 }
 0x4af   : > { %v13581_v16 = vpop.f32.mrf.mxu1  ;;  %v13560_v29 = vadd.f32 %v13559_v15, %v13558_v13 }
 0x4b0   : > { %v13561_v17 = vpop.f32.mrf.mxu0  ;;  %v13582_v31 = vadd.f32 %v13581_v16, %v13580_v14 }
 0x4b1   : > { %v13583_v18 = vpop.f32.mrf.mxu1  ;;  %v10967_v30 = vadd.f32 %v13560_v29, %v10927_v11 }
 0x4b2   : > { %v13562_v19 = vpop.f32.mrf.mxu0 }
 0x4b3   : > { %v13584_v20 = vpop.f32.mrf.mxu1  ;;  %v11007_v33 = vadd.f32 %v13582_v31, %v10967_v30 }
 0x4cc   : > { %v13602_v21 = vpop.f32.mrf.mxu0 }
 0x4cd   : > { %v13624_v22 = vpop.f32.mrf.mxu1 }
 0x4ce   : > { %v13603_v23 = vpop.f32.mrf.mxu0 }
 0x4cf   : > { %v13625_v24 = vpop.f32.mrf.mxu1  ;;  %v13604_v32 = vadd.f32 %v13603_v23, %v13602_v21 }
 0x4d0   : > { %v13605_v25 = vpop.f32.mrf.mxu0  ;;  %v13626_v42 = vadd.f32 %v13625_v24, %v13624_v22 }
 0x4d1   : > { %v13627_v26 = vpop.f32.mrf.mxu1  ;;  %v11047_v34 = vadd.f32 %v13604_v32, %v11007_v33 }
 0x4d2   : > { %v13606_v27 = vpop.f32.mrf.mxu0 }
 0x4d3   : > { %v13628_v28 = vpop.f32.mrf.mxu1  ;;  %v11087_v38 = vadd.f32 %v13626_v42, %v11047_v34 }
 0x4ec   : > { %v13646_v35 = vpop.f32.mrf.mxu0 }
 0x4ed   : > { %v13668_v36 = vpop.f32.mrf.mxu1 }
 0x4ee   : > { %v13647_v37 = vpop.f32.mrf.mxu0 }
 0x4ef   : > { %v13648_v39 = vadd.f32 %v13647_v37, %v13646_v35  ;;  %v13669_v40 = vpop.f32.mrf.mxu1 }
 0x4f0   : > { %v13649_v41 = vpop.f32.mrf.mxu0  ;;  %v13670_v44 = vadd.f32 %v13669_v40, %v13668_v36 }
 0x4f1   : > { %v11127_v43 = vadd.f32 %v13648_v39, %v11087_v38  ;;  %v13671_v46 = vpop.f32.mrf.mxu1 }
 0x4f2   : > { %v13650_v47 = vpop.f32.mrf.mxu0 }
 0x4f3   : > { %v11167_v48 = vadd.f32 %v13670_v44, %v11127_v43  ;;  %v13672_v49 = vpop.f32.mrf.mxu1  ;;  %11177 = sbr.rel (%p12346_p4) target bundleno = 1501 (0x5dd), region = 64 }
 0x4f5   : > { %v11172_v50 = vadd.f32 %v11167_v48, %v1091_v45 }
 0x4f7   : > { %11173 = vst [vmem:[#allocation2] sm:$0x3] %v11172_v50 }
 0x4f8   : > { %v11203_v51 = vld [vmem:[%s16373_s3 + $0x78] sm:$0xff]  ;;  %v14991_v52 = vmov 0.0   ;;  %v11202_v53 = vld [vmem:[%s16373_s3 + $0x70] sm:$0xff]  ;;  %vm14992_vm0 = vmmov 0   ;;  %v11201_v54 = vld [vmem:[%s16373_s3 + $0x68] sm:$0xff]  ;;  %vm11281_vm1 = vcmask 82944  }
 0x4f9   : > { %13691 = vmatprep.subr.mxu0 %v14991_v52  ;;  %13723 = vmatprep.mubr.msk.f32.mxu0 %vm14992_vm0, %v14991_v52  ;;  %v11200_v55 = vld [vmem:[%s16373_s3 + $0x60] sm:$0xff]  ;;  %v11199_v56 = vld [vmem:[%s16373_s3 + $0x58] sm:$0xff]  ;;  %v11198_v57 = vld [vmem:[%s16373_s3 + $0x50] sm:$0xff] }
 0x4fa   : > { %13692 = vmatpush3.msra.mxu0 %v11203_v51  ;;  %v11197_v58 = vld [vmem:[%s16373_s3 + $0x48] sm:$0xff]  ;;  %v11196_v59 = vld [vmem:[%s16373_s3 + $0x40] sm:$0xff]  ;;  %v11195_v60 = vld [vmem:[%s16373_s3 + $0x38] sm:$0xff] }
 0x4fb   : > { %13693 = vmatprep.subr.mxu0 %v14991_v52  ;;  %v11194_v61 = vld [vmem:[%s16373_s3 + $0x30] sm:$0xff]  ;;  %v11193_v62 = vld [vmem:[%s16373_s3 + $0x28] sm:$0xff]  ;;  %v11192_v63 = vld [vmem:[%s16373_s3 + $0x20] sm:$0xff] }
 0x4fc   : > { %13694 = vmatpush3.msra.mxu0 %v11202_v53  ;;  %v12347_v1 = vld [vmem:[#allocation8] ss:$0 sm:$0xff]  ;;  %v11191_v2 = vld [vmem:[%s16373_s3 + $0x18] sm:$0xff]  ;;  %v11190_v3 = vld [vmem:[%s16373_s3 + $0x10] sm:$0xff] }
 0x4fd   : > { %13695 = vmatprep.subr.mxu0 %v14991_v52  ;;  %v11189_v5 = vld [vmem:[%s16373_s3 + $0x8] sm:$0xff]  ;;  %v11188_v6 = vld [vmem:[%s16373_s3] sm:$0xff] }
 0x4fe   : > { %13696 = vmatpush3.msra.mxu0 %v11201_v54  ;;  %v11178_v0 = vld [vmem:[#allocation2] sm:$0x3]  ;;  %v12348_v8 = vld [vmem:[#allocation9] ss:$0 sm:$0xff] }
 0x4ff   : > { %13697 = vmatprep.subr.mxu0 %v14991_v52  ;;  %v11186_v4 = vadd.f32 %v12347_v1, %v11178_v0 }
 0x500   : > { %13698 = vmatpush3.msra.mxu0 %v11200_v55 }
 0x501   : > { %13699 = vmatprep.subr.mxu0 %v14991_v52  ;;  %v11187_v7 = vmax.f32 %v11186_v4, 0.0 }
 0x502   : > { %13700 = vmatpush3.msra.mxu0 %v11199_v56 }
 0x503   : > { %13701 = vmatprep.subr.mxu0 %v14991_v52 }
 0x504   : > { %13702 = vmatpush3.msra.mxu0 %v11198_v57 }
 0x505   : > { %13703 = vmatprep.subr.mxu0 %v14991_v52 }
 0x506   : > { %13704 = vmatpush3.msra.mxu0 %v11197_v58 }
 0x507   : > { %13705 = vmatprep.subr.mxu0 %v14991_v52 }
 0x508   : > { %13706 = vmatpush3.msra.mxu0 %v11196_v59 }
 0x509   : > { %13707 = vmatprep.subr.mxu0 %v14991_v52 }
 0x50a   : > { %13708 = vmatpush3.msra.mxu0 %v11195_v60 }
 0x50b   : > { %13709 = vmatprep.subr.mxu0 %v14991_v52 }
 0x50c   : > { %13710 = vmatpush3.msra.mxu0 %v11194_v61 }
 0x50d   : > { %13711 = vmatprep.subr.mxu0 %v14991_v52 }
 0x50e   : > { %13712 = vmatpush3.msra.mxu0 %v11193_v62 }
 0x50f   : > { %13713 = vmatprep.subr.mxu0 %v14991_v52 }
 0x510   : > { %13714 = vmatpush3.msra.mxu0 %v11192_v63 }
 0x511   : > { %13715 = vmatprep.subr.mxu0 %v14991_v52 }
 0x512   : > { %13716 = vmatpush3.msra.mxu0 %v11191_v2 }
 0x513   : > { %13717 = vmatprep.subr.mxu0 %v14991_v52 }
 0x514   : > { %13718 = vmatpush3.msra.mxu0 %v11190_v3 }
 0x515   : > { %13719 = vmatprep.subr.mxu0 %v14991_v52 }
 0x516   : > { %13720 = vmatpush3.msra.mxu0 %v11189_v5 }
 0x517   : > { %13721 = vmatprep.subr.mxu0 %v14991_v52 }
 0x518   : > { %13722 = vmatpush3.msra.mxu0 %v11188_v6 }
 0x519   : > { %13724 = vmatmul.mubr.f32.vlgmr.msra.gmra.mxu0 %v11187_v7 }
 0x5d9   : > { %v11277_v9 = vpop.f32.mrf.mxu0 }
 0x5da   : > { %v11278_v10 = vadd.f32 %v12348_v8, %v11277_v9 }
 0x5db   : > { %v13725_v11 = vpop.f32.mrf.mxu0 }
 0x5dc   : > { %11282 = vst.msk [vmem:[#allocation11] sm:$0x3] %vm11281_vm1, %v11278_v10 }
 0x5dd PF: > { %p13767_p12 = scmp.eq.s32.totalorder %s15043_s22, 1  ;;  %s14993_s17 = smov [#allocation11]  }
 0x5de   : > { %s11290_s24 = sshll.u32 %s14993_s17, 4  ;;  %s11291_s24 = int_to_ptr.vmem [resolvable:$true] %s11290_s24 }
 0x5df   : > { %s14907_s21 = scalar_lea.vmem %s11291_s24, 32  ;;  %p14914_p13 = scmp.lt.s32.totalorder %s11291_s24, %s11291_s24 }
 0x5e0   : > { %p14908_p2 = scmp.ne.s32.totalorder %s11291_s24, %s14907_s21  ;;  %p14915_p7 = scmp.lt.s32.totalorder %s14907_s21, %s14907_s21 }
 0x5e2   : > { %p14909_p1 = pnand %p14908_p2, %p13767_p12  ;;  %p14916_p9 = por %p14915_p7, %p14914_p13 }
 0x5e4   : > { %p14910_p3 = pneg %p14909_p1 }
 0x5e6   : > { %p14917_p10 = pnand %p14916_p9, %p14910_p3 }
 0x5e8   : > { %14920 = shalt.err (!%p14917_p10)
}
 0x5e9   : > { %13743 = dma.vmem_to_hbm [thread:$0]  (%p13767_p12), %s11291_s24, 32, %s16375_s5, [#allocation5]  }
 0x5ea   : > { %14964 = dma.done.wait (%p13767_p12), [#allocation5], 32  }
 0x5eb   : > { %14966 = vsyncadd (%p13767_p12), [#allocation5], 4294967264 }
 0x5ec PF: > { %p18_p0 = scmp.ge.s32.totalorder %s15046_s23, 4   ;;  %s16393_s18 = smov %s14973_s19 }
 0x5ed   : > { %s16394_s19 = smov %s14977_s20  ;;  %s16395_s20 = smov %s15056_s26 }
 0x5ee   : > { %s16396_s21 = smov %s15046_s23  ;;  %20 = sbr.rel (!%p18_p0) target bundleno = 6 (0x6), region = 99 }
 0x5f3   :  { %11303 = vsyncpa [#allocation4], 1 }
 0x5f4   :  { %11305 = vsyncpa [#allocation4 + $0x1], 1 }
 0x5f5   :  { %11306 = vsyncpa [#allocation7], 1 }
 0x5f6   :  { %11308 = vsyncpa [#allocation7 + $0x1], 1 }
 0x5f7   :  { %11309 = vsyncpa [#allocation10], 1 }
 0x5f8   :  { %11310 = vsyncpa [#allocation5], 1 }
 0x5f9   :  { %11312 = vsyncpa [#allocation5 + $0x1], 1 }

</bundles_post_ra>
